<compile_context>
chip_gen: v7x
topology: tpu7x:2x2x1
jax: 0.10.0
libtpu: 0.0.40
codegen_flags: <defaults>
</compile_context>

<pallas_src>
import functools

import jax
import jax.numpy as jnp
from jax import lax
from jax.experimental import pallas as pl
from jax.experimental.pallas import tpu as pltpu

D_MODEL = 32
N_HEAD = 4
D_HEAD = D_MODEL // N_HEAD
D_FF = 64
N_LAYERS = 2
LN_EPS = 1e-5


# --------------------------------------------------------------------------
# Kernel: the full encoder (all layers + optional final LayerNorm)
# --------------------------------------------------------------------------
def _layernorm(x, gamma, beta):
    mu = jnp.mean(x, axis=-1, keepdims=True)
    var = jnp.mean((x - mu) ** 2, axis=-1, keepdims=True)
    return (x - mu) * jax.lax.rsqrt(var + LN_EPS) * gamma + beta


def encoder_kernel(src_ref, pos_ref, wa_ref, wb_ref, vec_ref, fn_ref,
                   out_ref, *, apply_final_norm):
    """Whole TransformerEncoder forward for one [S, B, D] activation block.

    Packed parameter slabs (per layer l):
      wa_ref[l] : (D, 4D + F) = [ Wq*s | Wk | Wv | Wo | W1 ]
      wb_ref[l] : (F, D)      =   W2
      vec_ref[l]: (8, 128) rows: 0 -> [bq*s | bk | bv | bo]
                                 1 -> [b1 | b2]
                                 2 -> [g1 | be1 | g2 | be2]
      fn_ref    : (8, 128) rows: 0 -> final gamma, 1 -> final beta
    """
    S, B, D = src_ref.shape
    T = S * B
    H, Dh, F = N_HEAD, D_HEAD, D_FF
    L = wa_ref.shape[0]

    # Token slab, row index = s*B + b (pure leading-dim reshape, no transpose).
    x = src_ref[...].astype(jnp.float32).reshape(T, D)
    p = pos_ref[...].astype(jnp.float32).reshape(T, D)

    # Batch-separation mask for attention scores (computed once, reused by
    # every head of every layer): rows/cols with different batch ids get -1e30.
    ri = jax.lax.broadcasted_iota(jnp.int32, (T, T), 0)
    ci = jax.lax.broadcasted_iota(jnp.int32, (T, T), 1)
    neg_mask = jnp.where((ri % B) == (ci % B), 0.0, -1e30).astype(jnp.float32)

    for l in range(L):                                   # static unroll
        wa = wa_ref[l]                                   # (D, 4D + F)
        w2 = wb_ref[l]                                   # (F, D)
        vec = vec_ref[l]                                 # (8, 128)

        w_qk = wa[:, 0:2 * D]                            # (D, 2D) = [Wq*s | Wk]
        wv = wa[:, 2 * D:3 * D]                          # (D, D)
        wo = wa[:, 3 * D:4 * D]                          # (D, D)
        w1 = wa[:, 4 * D:4 * D + F]                      # (D, F)

        b_qk = vec[0:1, 0:2 * D]                         # (1, 2D)
        bv = vec[0:1, 2 * D:3 * D]
        bo = vec[0:1, 3 * D:4 * D]
        b1 = vec[1:2, 0:F]
        b2 = vec[1:2, F:F + D]
        g1 = vec[2:3, 0:D]
        be1 = vec[2:3, D:2 * D]
        g2 = vec[2:3, 2 * D:3 * D]
        be2 = vec[2:3, 3 * D:4 * D]

        # --- Q/K projection on (x + pos), V projection on x (no concat) ---
        qk_in = x + p                                    # (T, D)
        qk = jnp.dot(qk_in, w_qk, preferred_element_type=jnp.float32) + b_qk
        v = jnp.dot(x, wv, preferred_element_type=jnp.float32) + bv

        # --- multi-head attention; head outputs folded into Wo inside the
        # --- loop (no VMEM scratch, no lane-offset masked stores).
        attn_out = jnp.zeros((T, D), jnp.float32)
        for h in range(H):                               # static unroll
            qs = qk[:, h * Dh:(h + 1) * Dh]
            ks = qk[:, D + h * Dh:D + (h + 1) * Dh]
            vs = v[:, h * Dh:(h + 1) * Dh]
            # q @ k^T without materializing a transpose.
            sc = lax.dot_general(qs, ks, (((1,), (1,)), ((), ())),
                                 preferred_element_type=jnp.float32)
            sc = sc + neg_mask
            sc = sc - jnp.max(sc, axis=-1, keepdims=True)
            e = jnp.exp(sc)
            attn = e * pl.reciprocal(jnp.sum(e, axis=-1, keepdims=True),
                                     approx=True)
            head = jnp.dot(attn, vs, preferred_element_type=jnp.float32)
            attn_out = attn_out + jnp.dot(
                head, wo[h * Dh:(h + 1) * Dh, :],
                preferred_element_type=jnp.float32)
        attn_out = attn_out + bo

        # --- residual + LayerNorm 1 ---
        y = _layernorm(x + attn_out, g1, be1)

        # --- feed-forward ---
        h1 = jnp.maximum(
            jnp.dot(y, w1, preferred_element_type=jnp.float32) + b1, 0.0)
        h2 = jnp.dot(h1, w2, preferred_element_type=jnp.float32) + b2

        # --- residual + LayerNorm 2 ---
        x = _layernorm(y + h2, g2, be2)

    if apply_final_norm:
        x = _layernorm(x, fn_ref[0:1, 0:D], fn_ref[1:2, 0:D])

    out_ref[...] = x.reshape(S, B, D).astype(out_ref.dtype)


# --------------------------------------------------------------------------
# Parameter packing (one-time weight transform; scale folded into Wq/bq)
# --------------------------------------------------------------------------
def pack_layer_params(layer_params):
    scale = 1.0 / (D_HEAD ** 0.5)
    was, wbs, vecs = [], [], []
    for p in layer_params:
        wq = p["wq"] * scale
        bq = p["bq"] * scale
        wa = jnp.concatenate([wq, p["wk"], p["wv"], p["wo"], p["w1"]],
                             axis=1)                                   # (D, 4D+F)
        wb = p["w2"]                                                   # (F, D)

        vec = jnp.zeros((8, 128), jnp.float32)
        row0 = jnp.concatenate([bq, p["bk"], p["bv"], p["bo"]], axis=1)    # (1, 4D)
        row1 = jnp.concatenate([p["b1"], p["b2"]], axis=1)                 # (1, F+D)
        row2 = jnp.concatenate([p["g1"], p["be1"], p["g2"], p["be2"]], axis=1)
        vec = vec.at[0, 0:4 * D_MODEL].set(row0[0])
        vec = vec.at[1, 0:D_FF + D_MODEL].set(row1[0])
        vec = vec.at[2, 0:4 * D_MODEL].set(row2[0])

        was.append(wa); wbs.append(wb); vecs.append(vec)
    return jnp.stack(was), jnp.stack(wbs), jnp.stack(vecs)


def pack_final_norm(final_norm):
    fn = jnp.zeros((8, 128), jnp.float32)
    fn = fn.at[0, :D_MODEL].set(final_norm["gamma"].reshape(-1))
    fn = fn.at[1, :D_MODEL].set(final_norm["beta"].reshape(-1))
    return fn


# --------------------------------------------------------------------------
# Wrapper: single pallas_call for the whole encoder
# --------------------------------------------------------------------------
def _full_block(shape):
    nd = len(shape)
    return pl.BlockSpec(shape, lambda i, _nd=nd: (0,) * _nd)


@functools.partial(jax.jit, static_argnames=("apply_final_norm",))
def _encoder_call(src, pos, wa, wb, vec, fn, *, apply_final_norm):
    S, B, D = src.shape
    kernel = functools.partial(encoder_kernel,
                               apply_final_norm=apply_final_norm)
    return pl.pallas_call(
        kernel,
        out_shape=jax.ShapeDtypeStruct((S, B, D), src.dtype),
        grid_spec=pltpu.PrefetchScalarGridSpec(
            num_scalar_prefetch=0,
            grid=(1,),
            in_specs=[_full_block(src.shape),
                      _full_block(pos.shape),
                      _full_block(wa.shape),
                      _full_block(wb.shape),
                      _full_block(vec.shape),
                      _full_block(fn.shape)],
            out_specs=_full_block((S, B, D)),
        ),
        compiler_params=pltpu.CompilerParams(
            dimension_semantics=("arbitrary",)),
    )(src, pos, wa, wb, vec, fn)


def transformer_encoder(src_sbd, pos_sbd, layer_params, final_norm=None):
    """PyTorch-layout entry point: src/pos are [S, B, D] (seq-first)."""
    # TODO(synk): attn_mask / src_key_padding_mask paths not implemented (None only).
    wa, wb, vec = pack_layer_params(layer_params)
    if final_norm is not None:
        fn = pack_final_norm(final_norm)
        apply_fn = True
    else:
        fn = jnp.zeros((8, 128), jnp.float32)
        apply_fn = False
    return _encoder_call(src_sbd, pos_sbd, wa, wb, vec, fn,
                         apply_final_norm=apply_fn)


# --------------------------------------------------------------------------
# Deterministic parameter construction (math layout: y = x @ W + b)
# --------------------------------------------------------------------------
def make_layer_params(key):
    ks = jax.random.split(key, 12)
    scale_d = 1.0 / jnp.sqrt(D_MODEL)
    scale_f = 1.0 / jnp.sqrt(D_FF)
    return {
        "wq": jax.random.normal(ks[0], (D_MODEL, D_MODEL), jnp.float32) * scale_d,
        "bq": jax.random.normal(ks[6], (1, D_MODEL), jnp.float32) * 0.02,
        "wk": jax.random.normal(ks[1], (D_MODEL, D_MODEL), jnp.float32) * scale_d,
        "bk": jax.random.normal(ks[7], (1, D_MODEL), jnp.float32) * 0.02,
        "wv": jax.random.normal(ks[2], (D_MODEL, D_MODEL), jnp.float32) * scale_d,
        "bv": jax.random.normal(ks[8], (1, D_MODEL), jnp.float32) * 0.02,
        "wo": jax.random.normal(ks[3], (D_MODEL, D_MODEL), jnp.float32) * scale_d,
        "bo": jax.random.normal(ks[9], (1, D_MODEL), jnp.float32) * 0.02,
        "g1":  jnp.ones((1, D_MODEL), jnp.float32),
        "be1": jnp.zeros((1, D_MODEL), jnp.float32),
        "w1": jax.random.normal(ks[4], (D_MODEL, D_FF), jnp.float32) * scale_d,
        "b1": jax.random.normal(ks[10], (1, D_FF), jnp.float32) * 0.02,
        "w2": jax.random.normal(ks[5], (D_FF, D_MODEL), jnp.float32) * scale_f,
        "b2": jax.random.normal(ks[11], (1, D_MODEL), jnp.float32) * 0.02,
        "g2":  jnp.ones((1, D_MODEL), jnp.float32),
        "be2": jnp.zeros((1, D_MODEL), jnp.float32),
    }


# --------------------------------------------------------------------------
if __name__ == "__main__":
    S, B = 8, 2                                 # seq-first, like the PyTorch module
    key = jax.random.PRNGKey(0)
    k_src, k_pos, k_layers = jax.random.split(key, 3)

    src = jax.random.normal(k_src, (S, B, D_MODEL), jnp.float32)
    pos = jax.random.normal(k_pos, (S, B, D_MODEL), jnp.float32)

    layer_keys = jax.random.split(k_layers, N_LAYERS)
    layer_params = [make_layer_params(k) for k in layer_keys]

    # final norm (TransformerEncoder's optional `norm`); exercised here.
    final_norm = {"gamma": jnp.ones((1, D_MODEL), jnp.float32),
                  "beta": jnp.zeros((1, D_MODEL), jnp.float32)}

    out = transformer_encoder(src, pos, layer_params, final_norm=final_norm)
    out = jax.block_until_ready(out)

    assert out.shape == (S, B, D_MODEL)
    assert jnp.all(jnp.isfinite(out))
    print("KERNEL_OK")
</pallas_src>

<mosaic_0001>
module attributes {stable_mosaic.version = 11 : i64} {
  func.func @encoder_kernel(%arg0: i32, %arg1: memref<8x2x32xf32, #tpu.memory_space<vmem>>, %arg2: memref<8x2x32xf32, #tpu.memory_space<vmem>>, %arg3: memref<2x32x192xf32, #tpu.memory_space<vmem>>, %arg4: memref<2x64x32xf32, #tpu.memory_space<vmem>>, %arg5: memref<2x8x128xf32, #tpu.memory_space<vmem>>, %arg6: memref<8x128xf32, #tpu.memory_space<vmem>>, %arg7: memref<8x2x32xf32, #tpu.memory_space<vmem>>) attributes {dimension_semantics = [#tpu.dimension_semantics<arbitrary>], iteration_bounds = array<i64: 1>, scalar_prefetch = 0 : i64, scratch_operands = 0 : i64, tpu.core_type = #tpu.core_type<tc>, window_params = [{pipeline_mode = #tpu.pipeline_mode<synchronous>, transform_indices = @transform_0, window_bounds = array<i64: 8, 2, 32>}, {pipeline_mode = #tpu.pipeline_mode<synchronous>, transform_indices = @transform_1, window_bounds = array<i64: 8, 2, 32>}, {pipeline_mode = #tpu.pipeline_mode<synchronous>, transform_indices = @transform_2, window_bounds = array<i64: 2, 32, 192>}, {pipeline_mode = #tpu.pipeline_mode<synchronous>, transform_indices = @transform_3, window_bounds = array<i64: 2, 64, 32>}, {pipeline_mode = #tpu.pipeline_mode<synchronous>, transform_indices = @transform_4, window_bounds = array<i64: 2, 8, 128>}, {pipeline_mode = #tpu.pipeline_mode<synchronous>, transform_indices = @transform_5, window_bounds = array<i64: 8, 128>}, {pipeline_mode = #tpu.pipeline_mode<synchronous>, transform_indices = @transform_6, window_bounds = array<i64: 8, 2, 32>}]} {
    %c0 = arith.constant 0 : index
    %c0_0 = arith.constant 0 : index
    %c0_1 = arith.constant 0 : index
    %0 = vector.load %arg1[%c0, %c0_0, %c0_1] : memref<8x2x32xf32, #tpu.memory_space<vmem>>, vector<8x2x32xf32>
    %1 = vector.shape_cast %0 : vector<8x2x32xf32> to vector<16x32xf32>
    %c0_2 = arith.constant 0 : index
    %c0_3 = arith.constant 0 : index
    %c0_4 = arith.constant 0 : index
    %2 = vector.load %arg2[%c0_2, %c0_3, %c0_4] : memref<8x2x32xf32, #tpu.memory_space<vmem>>, vector<8x2x32xf32>
    %3 = vector.shape_cast %2 : vector<8x2x32xf32> to vector<16x32xf32>
    %4 = tpu.iota {dimensions = array<i32: 0>} : vector<16x16xi32>
    %5 = tpu.iota {dimensions = array<i32: 1>} : vector<16x16xi32>
    %c2_i32 = arith.constant 2 : i32
    %c0_i32 = arith.constant 0 : i32
    %6 = arith.cmpi eq, %c2_i32, %c0_i32 : i32
    %c1_i32 = arith.constant 1 : i32
    %7 = arith.select %6, %c1_i32, %c2_i32 : i32
    %8 = vector.broadcast %7 : i32 to vector<16x16xi32>
    %9 = arith.remsi %4, %8 : vector<16x16xi32>
    %c0_i32_5 = arith.constant 0 : i32
    %10 = vector.broadcast %c0_i32_5 : i32 to vector<16x16xi32>
    %11 = arith.cmpi ne, %9, %10 : vector<16x16xi32>
    %c0_i32_6 = arith.constant 0 : i32
    %12 = vector.broadcast %c0_i32_6 : i32 to vector<16x16xi32>
    %13 = arith.cmpi slt, %9, %12 : vector<16x16xi32>
    %c0_i32_7 = arith.constant 0 : i32
    %14 = arith.cmpi slt, %7, %c0_i32_7 : i32
    %15 = vector.broadcast %14 : i1 to vector<16x16xi1>
    %16 = vector.broadcast %15 : vector<16x16xi1> to vector<16x16xi1>
    %17 = arith.xori %13, %16 : vector<16x16xi1>
    %18 = arith.andi %17, %11 : vector<16x16xi1>
    %19 = vector.broadcast %7 : i32 to vector<16x16xi32>
    %20 = arith.addi %9, %19 : vector<16x16xi32>
    %21 = arith.select %18, %20, %9 : vector<16x16xi1>, vector<16x16xi32>
    %c2_i32_8 = arith.constant 2 : i32
    %c0_i32_9 = arith.constant 0 : i32
    %22 = arith.cmpi eq, %c2_i32_8, %c0_i32_9 : i32
    %c1_i32_10 = arith.constant 1 : i32
    %23 = arith.select %22, %c1_i32_10, %c2_i32_8 : i32
    %24 = vector.broadcast %23 : i32 to vector<16x16xi32>
    %25 = arith.remsi %5, %24 : vector<16x16xi32>
    %c0_i32_11 = arith.constant 0 : i32
    %26 = vector.broadcast %c0_i32_11 : i32 to vector<16x16xi32>
    %27 = arith.cmpi ne, %25, %26 : vector<16x16xi32>
    %c0_i32_12 = arith.constant 0 : i32
    %28 = vector.broadcast %c0_i32_12 : i32 to vector<16x16xi32>
    %29 = arith.cmpi slt, %25, %28 : vector<16x16xi32>
    %c0_i32_13 = arith.constant 0 : i32
    %30 = arith.cmpi slt, %23, %c0_i32_13 : i32
    %31 = vector.broadcast %30 : i1 to vector<16x16xi1>
    %32 = vector.broadcast %31 : vector<16x16xi1> to vector<16x16xi1>
    %33 = arith.xori %29, %32 : vector<16x16xi1>
    %34 = arith.andi %33, %27 : vector<16x16xi1>
    %35 = vector.broadcast %23 : i32 to vector<16x16xi32>
    %36 = arith.addi %25, %35 : vector<16x16xi32>
    %37 = arith.select %34, %36, %25 : vector<16x16xi1>, vector<16x16xi32>
    %38 = arith.cmpi eq, %21, %37 : vector<16x16xi32>
    %cst = arith.constant 0.000000e+00 : f32
    %cst_14 = arith.constant -1.000000e+30 : f32
    %39 = vector.broadcast %cst : f32 to vector<16x16xf32>
    %40 = vector.broadcast %cst_14 : f32 to vector<16x16xf32>
    %41 = arith.select %38, %39, %40 : vector<16x16xi1>, vector<16x16xf32>
    %c0_15 = arith.constant 0 : index
    %c0_16 = arith.constant 0 : index
    %c0_17 = arith.constant 0 : index
    %42 = vector.load %arg3[%c0_15, %c0_16, %c0_17] : memref<2x32x192xf32, #tpu.memory_space<vmem>>, vector<1x32x192xf32>
    %43 = vector.shape_cast %42 : vector<1x32x192xf32> to vector<32x192xf32>
    %c0_18 = arith.constant 0 : index
    %c0_19 = arith.constant 0 : index
    %c0_20 = arith.constant 0 : index
    %44 = vector.load %arg4[%c0_18, %c0_19, %c0_20] : memref<2x64x32xf32, #tpu.memory_space<vmem>>, vector<1x64x32xf32>
    %45 = vector.shape_cast %44 : vector<1x64x32xf32> to vector<64x32xf32>
    %c0_21 = arith.constant 0 : index
    %c0_22 = arith.constant 0 : index
    %c0_23 = arith.constant 0 : index
    %46 = vector.load %arg5[%c0_21, %c0_22, %c0_23] : memref<2x8x128xf32, #tpu.memory_space<vmem>>, vector<1x8x128xf32>
    %47 = vector.shape_cast %46 : vector<1x8x128xf32> to vector<8x128xf32>
    %48 = vector.extract_strided_slice %43 {offsets = [0, 0], sizes = [32, 64], strides = [1, 1]} : vector<32x192xf32> to vector<32x64xf32>
    %49 = vector.extract_strided_slice %43 {offsets = [0, 64], sizes = [32, 32], strides = [1, 1]} : vector<32x192xf32> to vector<32x32xf32>
    %50 = vector.extract_strided_slice %43 {offsets = [0, 96], sizes = [32, 32], strides = [1, 1]} : vector<32x192xf32> to vector<32x32xf32>
    %51 = vector.extract_strided_slice %43 {offsets = [0, 128], sizes = [32, 64], strides = [1, 1]} : vector<32x192xf32> to vector<32x64xf32>
    %52 = vector.extract_strided_slice %47 {offsets = [0, 0], sizes = [1, 64], strides = [1, 1]} : vector<8x128xf32> to vector<1x64xf32>
    %53 = vector.extract_strided_slice %47 {offsets = [0, 64], sizes = [1, 32], strides = [1, 1]} : vector<8x128xf32> to vector<1x32xf32>
    %54 = vector.extract_strided_slice %47 {offsets = [0, 96], sizes = [1, 32], strides = [1, 1]} : vector<8x128xf32> to vector<1x32xf32>
    %55 = vector.extract_strided_slice %47 {offsets = [1, 0], sizes = [1, 64], strides = [1, 1]} : vector<8x128xf32> to vector<1x64xf32>
    %56 = vector.extract_strided_slice %47 {offsets = [1, 64], sizes = [1, 32], strides = [1, 1]} : vector<8x128xf32> to vector<1x32xf32>
    %57 = vector.extract_strided_slice %47 {offsets = [2, 0], sizes = [1, 32], strides = [1, 1]} : vector<8x128xf32> to vector<1x32xf32>
    %58 = vector.extract_strided_slice %47 {offsets = [2, 32], sizes = [1, 32], strides = [1, 1]} : vector<8x128xf32> to vector<1x32xf32>
    %59 = vector.extract_strided_slice %47 {offsets = [2, 64], sizes = [1, 32], strides = [1, 1]} : vector<8x128xf32> to vector<1x32xf32>
    %60 = vector.extract_strided_slice %47 {offsets = [2, 96], sizes = [1, 32], strides = [1, 1]} : vector<8x128xf32> to vector<1x32xf32>
    %61 = arith.addf %1, %3 : vector<16x32xf32>
    %cst_24 = arith.constant dense<0.000000e+00> : vector<16x64xf32>
    %62 = tpu.matmul %61, %48, %cst_24 {dimension_numbers = #tpu.dot_dimension_numbers<[1], [0], [0], [1], [0, 0, 1, 1], [], []>} : vector<16x32xf32>, vector<32x64xf32>, vector<16x64xf32> -> vector<16x64xf32>
    %63 = vector.broadcast %52 : vector<1x64xf32> to vector<16x64xf32>
    %64 = arith.addf %62, %63 : vector<16x64xf32>
    %cst_25 = arith.constant dense<0.000000e+00> : vector<16x32xf32>
    %65 = tpu.matmul %1, %49, %cst_25 {dimension_numbers = #tpu.dot_dimension_numbers<[1], [0], [0], [1], [0, 0, 1, 1], [], []>} : vector<16x32xf32>, vector<32x32xf32>, vector<16x32xf32> -> vector<16x32xf32>
    %66 = vector.broadcast %53 : vector<1x32xf32> to vector<16x32xf32>
    %67 = arith.addf %65, %66 : vector<16x32xf32>
    %cst_26 = arith.constant 0.000000e+00 : f32
    %68 = vector.broadcast %cst_26 : f32 to vector<16x32xf32>
    %69 = vector.extract_strided_slice %64 {offsets = [0, 0], sizes = [16, 8], strides = [1, 1]} : vector<16x64xf32> to vector<16x8xf32>
    %70 = vector.extract_strided_slice %64 {offsets = [0, 32], sizes = [16, 8], strides = [1, 1]} : vector<16x64xf32> to vector<16x8xf32>
    %71 = vector.extract_strided_slice %67 {offsets = [0, 0], sizes = [16, 8], strides = [1, 1]} : vector<16x32xf32> to vector<16x8xf32>
    %cst_27 = arith.constant dense<0.000000e+00> : vector<16x16xf32>
    %72 = tpu.matmul %69, %70, %cst_27 {dimension_numbers = #tpu.dot_dimension_numbers<[1], [1], [0], [0], [0, 0, 1, 0], [], []>} : vector<16x8xf32>, vector<16x8xf32>, vector<16x16xf32> -> vector<16x16xf32>
    %73 = arith.addf %72, %41 : vector<16x16xf32>
    %cst_28 = arith.constant dense<0xFF800000> : vector<16xf32>
    %74 = vector.multi_reduction <maximumf>, %73, %cst_28 [1] : vector<16x16xf32> to vector<16xf32>
    %75 = vector.shape_cast %74 : vector<16xf32> to vector<16x1xf32>
    %76 = vector.broadcast %75 : vector<16x1xf32> to vector<16x16xf32>
    %77 = arith.subf %73, %76 : vector<16x16xf32>
    %78 = math.exp %77 : vector<16x16xf32>
    %cst_29 = arith.constant dense<0.000000e+00> : vector<16xf32>
    %79 = vector.multi_reduction <add>, %78, %cst_29 [1] : vector<16x16xf32> to vector<16xf32>
    %80 = vector.shape_cast %79 : vector<16xf32> to vector<16x1xf32>
    %81 = tpu.reciprocal %80 {approx = true} : vector<16x1xf32> -> vector<16x1xf32>
    %82 = vector.broadcast %81 : vector<16x1xf32> to vector<16x16xf32>
    %83 = arith.mulf %78, %82 : vector<16x16xf32>
    %cst_30 = arith.constant dense<0.000000e+00> : vector<16x8xf32>
    %84 = tpu.matmul %83, %71, %cst_30 {dimension_numbers = #tpu.dot_dimension_numbers<[1], [0], [0], [1], [0, 0, 1, 1], [], []>} : vector<16x16xf32>, vector<16x8xf32>, vector<16x8xf32> -> vector<16x8xf32>
    %85 = vector.extract_strided_slice %50 {offsets = [0, 0], sizes = [8, 32], strides = [1, 1]} : vector<32x32xf32> to vector<8x32xf32>
    %cst_31 = arith.constant dense<0.000000e+00> : vector<16x32xf32>
    %86 = tpu.matmul %84, %85, %cst_31 {dimension_numbers = #tpu.dot_dimension_numbers<[1], [0], [0], [1], [0, 0, 1, 1], [], []>} : vector<16x8xf32>, vector<8x32xf32>, vector<16x32xf32> -> vector<16x32xf32>
    %87 = arith.addf %68, %86 : vector<16x32xf32>
    %88 = vector.extract_strided_slice %64 {offsets = [0, 8], sizes = [16, 8], strides = [1, 1]} : vector<16x64xf32> to vector<16x8xf32>
    %89 = vector.extract_strided_slice %64 {offsets = [0, 40], sizes = [16, 8], strides = [1, 1]} : vector<16x64xf32> to vector<16x8xf32>
    %90 = vector.extract_strided_slice %67 {offsets = [0, 8], sizes = [16, 8], strides = [1, 1]} : vector<16x32xf32> to vector<16x8xf32>
    %cst_32 = arith.constant dense<0.000000e+00> : vector<16x16xf32>
    %91 = tpu.matmul %88, %89, %cst_32 {dimension_numbers = #tpu.dot_dimension_numbers<[1], [1], [0], [0], [0, 0, 1, 0], [], []>} : vector<16x8xf32>, vector<16x8xf32>, vector<16x16xf32> -> vector<16x16xf32>
    %92 = arith.addf %91, %41 : vector<16x16xf32>
    %cst_33 = arith.constant dense<0xFF800000> : vector<16xf32>
    %93 = vector.multi_reduction <maximumf>, %92, %cst_33 [1] : vector<16x16xf32> to vector<16xf32>
    %94 = vector.shape_cast %93 : vector<16xf32> to vector<16x1xf32>
    %95 = vector.broadcast %94 : vector<16x1xf32> to vector<16x16xf32>
    %96 = arith.subf %92, %95 : vector<16x16xf32>
    %97 = math.exp %96 : vector<16x16xf32>
    %cst_34 = arith.constant dense<0.000000e+00> : vector<16xf32>
    %98 = vector.multi_reduction <add>, %97, %cst_34 [1] : vector<16x16xf32> to vector<16xf32>
    %99 = vector.shape_cast %98 : vector<16xf32> to vector<16x1xf32>
    %100 = tpu.reciprocal %99 {approx = true} : vector<16x1xf32> -> vector<16x1xf32>
    %101 = vector.broadcast %100 : vector<16x1xf32> to vector<16x16xf32>
    %102 = arith.mulf %97, %101 : vector<16x16xf32>
    %cst_35 = arith.constant dense<0.000000e+00> : vector<16x8xf32>
    %103 = tpu.matmul %102, %90, %cst_35 {dimension_numbers = #tpu.dot_dimension_numbers<[1], [0], [0], [1], [0, 0, 1, 1], [], []>} : vector<16x16xf32>, vector<16x8xf32>, vector<16x8xf32> -> vector<16x8xf32>
    %104 = vector.extract_strided_slice %50 {offsets = [8, 0], sizes = [8, 32], strides = [1, 1]} : vector<32x32xf32> to vector<8x32xf32>
    %cst_36 = arith.constant dense<0.000000e+00> : vector<16x32xf32>
    %105 = tpu.matmul %103, %104, %cst_36 {dimension_numbers = #tpu.dot_dimension_numbers<[1], [0], [0], [1], [0, 0, 1, 1], [], []>} : vector<16x8xf32>, vector<8x32xf32>, vector<16x32xf32> -> vector<16x32xf32>
    %106 = arith.addf %87, %105 : vector<16x32xf32>
    %107 = vector.extract_strided_slice %64 {offsets = [0, 16], sizes = [16, 8], strides = [1, 1]} : vector<16x64xf32> to vector<16x8xf32>
    %108 = vector.extract_strided_slice %64 {offsets = [0, 48], sizes = [16, 8], strides = [1, 1]} : vector<16x64xf32> to vector<16x8xf32>
    %109 = vector.extract_strided_slice %67 {offsets = [0, 16], sizes = [16, 8], strides = [1, 1]} : vector<16x32xf32> to vector<16x8xf32>
    %cst_37 = arith.constant dense<0.000000e+00> : vector<16x16xf32>
    %110 = tpu.matmul %107, %108, %cst_37 {dimension_numbers = #tpu.dot_dimension_numbers<[1], [1], [0], [0], [0, 0, 1, 0], [], []>} : vector<16x8xf32>, vector<16x8xf32>, vector<16x16xf32> -> vector<16x16xf32>
    %111 = arith.addf %110, %41 : vector<16x16xf32>
    %cst_38 = arith.constant dense<0xFF800000> : vector<16xf32>
    %112 = vector.multi_reduction <maximumf>, %111, %cst_38 [1] : vector<16x16xf32> to vector<16xf32>
    %113 = vector.shape_cast %112 : vector<16xf32> to vector<16x1xf32>
    %114 = vector.broadcast %113 : vector<16x1xf32> to vector<16x16xf32>
    %115 = arith.subf %111, %114 : vector<16x16xf32>
    %116 = math.exp %115 : vector<16x16xf32>
    %cst_39 = arith.constant dense<0.000000e+00> : vector<16xf32>
    %117 = vector.multi_reduction <add>, %116, %cst_39 [1] : vector<16x16xf32> to vector<16xf32>
    %118 = vector.shape_cast %117 : vector<16xf32> to vector<16x1xf32>
    %119 = tpu.reciprocal %118 {approx = true} : vector<16x1xf32> -> vector<16x1xf32>
    %120 = vector.broadcast %119 : vector<16x1xf32> to vector<16x16xf32>
    %121 = arith.mulf %116, %120 : vector<16x16xf32>
    %cst_40 = arith.constant dense<0.000000e+00> : vector<16x8xf32>
    %122 = tpu.matmul %121, %109, %cst_40 {dimension_numbers = #tpu.dot_dimension_numbers<[1], [0], [0], [1], [0, 0, 1, 1], [], []>} : vector<16x16xf32>, vector<16x8xf32>, vector<16x8xf32> -> vector<16x8xf32>
    %123 = vector.extract_strided_slice %50 {offsets = [16, 0], sizes = [8, 32], strides = [1, 1]} : vector<32x32xf32> to vector<8x32xf32>
    %cst_41 = arith.constant dense<0.000000e+00> : vector<16x32xf32>
    %124 = tpu.matmul %122, %123, %cst_41 {dimension_numbers = #tpu.dot_dimension_numbers<[1], [0], [0], [1], [0, 0, 1, 1], [], []>} : vector<16x8xf32>, vector<8x32xf32>, vector<16x32xf32> -> vector<16x32xf32>
    %125 = arith.addf %106, %124 : vector<16x32xf32>
    %126 = vector.extract_strided_slice %64 {offsets = [0, 24], sizes = [16, 8], strides = [1, 1]} : vector<16x64xf32> to vector<16x8xf32>
    %127 = vector.extract_strided_slice %64 {offsets = [0, 56], sizes = [16, 8], strides = [1, 1]} : vector<16x64xf32> to vector<16x8xf32>
    %128 = vector.extract_strided_slice %67 {offsets = [0, 24], sizes = [16, 8], strides = [1, 1]} : vector<16x32xf32> to vector<16x8xf32>
    %cst_42 = arith.constant dense<0.000000e+00> : vector<16x16xf32>
    %129 = tpu.matmul %126, %127, %cst_42 {dimension_numbers = #tpu.dot_dimension_numbers<[1], [1], [0], [0], [0, 0, 1, 0], [], []>} : vector<16x8xf32>, vector<16x8xf32>, vector<16x16xf32> -> vector<16x16xf32>
    %130 = arith.addf %129, %41 : vector<16x16xf32>
    %cst_43 = arith.constant dense<0xFF800000> : vector<16xf32>
    %131 = vector.multi_reduction <maximumf>, %130, %cst_43 [1] : vector<16x16xf32> to vector<16xf32>
    %132 = vector.shape_cast %131 : vector<16xf32> to vector<16x1xf32>
    %133 = vector.broadcast %132 : vector<16x1xf32> to vector<16x16xf32>
    %134 = arith.subf %130, %133 : vector<16x16xf32>
    %135 = math.exp %134 : vector<16x16xf32>
    %cst_44 = arith.constant dense<0.000000e+00> : vector<16xf32>
    %136 = vector.multi_reduction <add>, %135, %cst_44 [1] : vector<16x16xf32> to vector<16xf32>
    %137 = vector.shape_cast %136 : vector<16xf32> to vector<16x1xf32>
    %138 = tpu.reciprocal %137 {approx = true} : vector<16x1xf32> -> vector<16x1xf32>
    %139 = vector.broadcast %138 : vector<16x1xf32> to vector<16x16xf32>
    %140 = arith.mulf %135, %139 : vector<16x16xf32>
    %cst_45 = arith.constant dense<0.000000e+00> : vector<16x8xf32>
    %141 = tpu.matmul %140, %128, %cst_45 {dimension_numbers = #tpu.dot_dimension_numbers<[1], [0], [0], [1], [0, 0, 1, 1], [], []>} : vector<16x16xf32>, vector<16x8xf32>, vector<16x8xf32> -> vector<16x8xf32>
    %142 = vector.extract_strided_slice %50 {offsets = [24, 0], sizes = [8, 32], strides = [1, 1]} : vector<32x32xf32> to vector<8x32xf32>
    %cst_46 = arith.constant dense<0.000000e+00> : vector<16x32xf32>
    %143 = tpu.matmul %141, %142, %cst_46 {dimension_numbers = #tpu.dot_dimension_numbers<[1], [0], [0], [1], [0, 0, 1, 1], [], []>} : vector<16x8xf32>, vector<8x32xf32>, vector<16x32xf32> -> vector<16x32xf32>
    %144 = arith.addf %125, %143 : vector<16x32xf32>
    %145 = vector.broadcast %54 : vector<1x32xf32> to vector<16x32xf32>
    %146 = arith.addf %144, %145 : vector<16x32xf32>
    %147 = arith.addf %1, %146 : vector<16x32xf32>
    %cst_47 = arith.constant dense<0.000000e+00> : vector<16xf32>
    %148 = vector.multi_reduction <add>, %147, %cst_47 [1] : vector<16x32xf32> to vector<16xf32>
    %149 = vector.shape_cast %148 : vector<16xf32> to vector<16x1xf32>
    %cst_48 = arith.constant 3.200000e+01 : f32
    %150 = vector.broadcast %cst_48 : f32 to vector<16x1xf32>
    %151 = arith.divf %149, %150 : vector<16x1xf32>
    %152 = vector.broadcast %151 : vector<16x1xf32> to vector<16x32xf32>
    %153 = arith.subf %147, %152 : vector<16x32xf32>
    %154 = arith.mulf %153, %153 : vector<16x32xf32>
    %cst_49 = arith.constant dense<0.000000e+00> : vector<16xf32>
    %155 = vector.multi_reduction <add>, %154, %cst_49 [1] : vector<16x32xf32> to vector<16xf32>
    %156 = vector.shape_cast %155 : vector<16xf32> to vector<16x1xf32>
    %cst_50 = arith.constant 3.200000e+01 : f32
    %157 = vector.broadcast %cst_50 : f32 to vector<16x1xf32>
    %158 = arith.divf %156, %157 : vector<16x1xf32>
    %159 = vector.broadcast %151 : vector<16x1xf32> to vector<16x32xf32>
    %160 = arith.subf %147, %159 : vector<16x32xf32>
    %cst_51 = arith.constant 9.99999974E-6 : f32
    %161 = vector.broadcast %cst_51 : f32 to vector<16x1xf32>
    %162 = arith.addf %158, %161 : vector<16x1xf32>
    %163 = math.rsqrt %162 : vector<16x1xf32>
    %164 = vector.broadcast %163 : vector<16x1xf32> to vector<16x32xf32>
    %165 = arith.mulf %160, %164 : vector<16x32xf32>
    %166 = vector.broadcast %57 : vector<1x32xf32> to vector<16x32xf32>
    %167 = arith.mulf %165, %166 : vector<16x32xf32>
    %168 = vector.broadcast %58 : vector<1x32xf32> to vector<16x32xf32>
    %169 = arith.addf %167, %168 : vector<16x32xf32>
    %cst_52 = arith.constant dense<0.000000e+00> : vector<16x64xf32>
    %170 = tpu.matmul %169, %51, %cst_52 {dimension_numbers = #tpu.dot_dimension_numbers<[1], [0], [0], [1], [0, 0, 1, 1], [], []>} : vector<16x32xf32>, vector<32x64xf32>, vector<16x64xf32> -> vector<16x64xf32>
    %171 = vector.broadcast %55 : vector<1x64xf32> to vector<16x64xf32>
    %172 = arith.addf %170, %171 : vector<16x64xf32>
    %cst_53 = arith.constant 0.000000e+00 : f32
    %173 = vector.broadcast %cst_53 : f32 to vector<16x64xf32>
    %174 = arith.maximumf %172, %173 : vector<16x64xf32>
    %cst_54 = arith.constant dense<0.000000e+00> : vector<16x32xf32>
    %175 = tpu.matmul %174, %45, %cst_54 {dimension_numbers = #tpu.dot_dimension_numbers<[1], [0], [0], [1], [0, 0, 1, 1], [], []>} : vector<16x64xf32>, vector<64x32xf32>, vector<16x32xf32> -> vector<16x32xf32>
    %176 = vector.broadcast %56 : vector<1x32xf32> to vector<16x32xf32>
    %177 = arith.addf %175, %176 : vector<16x32xf32>
    %178 = arith.addf %169, %177 : vector<16x32xf32>
    %cst_55 = arith.constant dense<0.000000e+00> : vector<16xf32>
    %179 = vector.multi_reduction <add>, %178, %cst_55 [1] : vector<16x32xf32> to vector<16xf32>
    %180 = vector.shape_cast %179 : vector<16xf32> to vector<16x1xf32>
    %cst_56 = arith.constant 3.200000e+01 : f32
    %181 = vector.broadcast %cst_56 : f32 to vector<16x1xf32>
    %182 = arith.divf %180, %181 : vector<16x1xf32>
    %183 = vector.broadcast %182 : vector<16x1xf32> to vector<16x32xf32>
    %184 = arith.subf %178, %183 : vector<16x32xf32>
    %185 = arith.mulf %184, %184 : vector<16x32xf32>
    %cst_57 = arith.constant dense<0.000000e+00> : vector<16xf32>
    %186 = vector.multi_reduction <add>, %185, %cst_57 [1] : vector<16x32xf32> to vector<16xf32>
    %187 = vector.shape_cast %186 : vector<16xf32> to vector<16x1xf32>
    %cst_58 = arith.constant 3.200000e+01 : f32
    %188 = vector.broadcast %cst_58 : f32 to vector<16x1xf32>
    %189 = arith.divf %187, %188 : vector<16x1xf32>
    %190 = vector.broadcast %182 : vector<16x1xf32> to vector<16x32xf32>
    %191 = arith.subf %178, %190 : vector<16x32xf32>
    %cst_59 = arith.constant 9.99999974E-6 : f32
    %192 = vector.broadcast %cst_59 : f32 to vector<16x1xf32>
    %193 = arith.addf %189, %192 : vector<16x1xf32>
    %194 = math.rsqrt %193 : vector<16x1xf32>
    %195 = vector.broadcast %194 : vector<16x1xf32> to vector<16x32xf32>
    %196 = arith.mulf %191, %195 : vector<16x32xf32>
    %197 = vector.broadcast %59 : vector<1x32xf32> to vector<16x32xf32>
    %198 = arith.mulf %196, %197 : vector<16x32xf32>
    %199 = vector.broadcast %60 : vector<1x32xf32> to vector<16x32xf32>
    %200 = arith.addf %198, %199 : vector<16x32xf32>
    %c1 = arith.constant 1 : index
    %c0_60 = arith.constant 0 : index
    %c0_61 = arith.constant 0 : index
    %201 = vector.load %arg3[%c1, %c0_60, %c0_61] : memref<2x32x192xf32, #tpu.memory_space<vmem>>, vector<1x32x192xf32>
    %202 = vector.shape_cast %201 : vector<1x32x192xf32> to vector<32x192xf32>
    %c1_62 = arith.constant 1 : index
    %c0_63 = arith.constant 0 : index
    %c0_64 = arith.constant 0 : index
    %203 = vector.load %arg4[%c1_62, %c0_63, %c0_64] : memref<2x64x32xf32, #tpu.memory_space<vmem>>, vector<1x64x32xf32>
    %204 = vector.shape_cast %203 : vector<1x64x32xf32> to vector<64x32xf32>
    %c1_65 = arith.constant 1 : index
    %c0_66 = arith.constant 0 : index
    %c0_67 = arith.constant 0 : index
    %205 = vector.load %arg5[%c1_65, %c0_66, %c0_67] : memref<2x8x128xf32, #tpu.memory_space<vmem>>, vector<1x8x128xf32>
    %206 = vector.shape_cast %205 : vector<1x8x128xf32> to vector<8x128xf32>
    %207 = vector.extract_strided_slice %202 {offsets = [0, 0], sizes = [32, 64], strides = [1, 1]} : vector<32x192xf32> to vector<32x64xf32>
    %208 = vector.extract_strided_slice %202 {offsets = [0, 64], sizes = [32, 32], strides = [1, 1]} : vector<32x192xf32> to vector<32x32xf32>
    %209 = vector.extract_strided_slice %202 {offsets = [0, 96], sizes = [32, 32], strides = [1, 1]} : vector<32x192xf32> to vector<32x32xf32>
    %210 = vector.extract_strided_slice %202 {offsets = [0, 128], sizes = [32, 64], strides = [1, 1]} : vector<32x192xf32> to vector<32x64xf32>
    %211 = vector.extract_strided_slice %206 {offsets = [0, 0], sizes = [1, 64], strides = [1, 1]} : vector<8x128xf32> to vector<1x64xf32>
    %212 = vector.extract_strided_slice %206 {offsets = [0, 64], sizes = [1, 32], strides = [1, 1]} : vector<8x128xf32> to vector<1x32xf32>
    %213 = vector.extract_strided_slice %206 {offsets = [0, 96], sizes = [1, 32], strides = [1, 1]} : vector<8x128xf32> to vector<1x32xf32>
    %214 = vector.extract_strided_slice %206 {offsets = [1, 0], sizes = [1, 64], strides = [1, 1]} : vector<8x128xf32> to vector<1x64xf32>
    %215 = vector.extract_strided_slice %206 {offsets = [1, 64], sizes = [1, 32], strides = [1, 1]} : vector<8x128xf32> to vector<1x32xf32>
    %216 = vector.extract_strided_slice %206 {offsets = [2, 0], sizes = [1, 32], strides = [1, 1]} : vector<8x128xf32> to vector<1x32xf32>
    %217 = vector.extract_strided_slice %206 {offsets = [2, 32], sizes = [1, 32], strides = [1, 1]} : vector<8x128xf32> to vector<1x32xf32>
    %218 = vector.extract_strided_slice %206 {offsets = [2, 64], sizes = [1, 32], strides = [1, 1]} : vector<8x128xf32> to vector<1x32xf32>
    %219 = vector.extract_strided_slice %206 {offsets = [2, 96], sizes = [1, 32], strides = [1, 1]} : vector<8x128xf32> to vector<1x32xf32>
    %220 = arith.addf %200, %3 : vector<16x32xf32>
    %cst_68 = arith.constant dense<0.000000e+00> : vector<16x64xf32>
    %221 = tpu.matmul %220, %207, %cst_68 {dimension_numbers = #tpu.dot_dimension_numbers<[1], [0], [0], [1], [0, 0, 1, 1], [], []>} : vector<16x32xf32>, vector<32x64xf32>, vector<16x64xf32> -> vector<16x64xf32>
    %222 = vector.broadcast %211 : vector<1x64xf32> to vector<16x64xf32>
    %223 = arith.addf %221, %222 : vector<16x64xf32>
    %cst_69 = arith.constant dense<0.000000e+00> : vector<16x32xf32>
    %224 = tpu.matmul %200, %208, %cst_69 {dimension_numbers = #tpu.dot_dimension_numbers<[1], [0], [0], [1], [0, 0, 1, 1], [], []>} : vector<16x32xf32>, vector<32x32xf32>, vector<16x32xf32> -> vector<16x32xf32>
    %225 = vector.broadcast %212 : vector<1x32xf32> to vector<16x32xf32>
    %226 = arith.addf %224, %225 : vector<16x32xf32>
    %cst_70 = arith.constant 0.000000e+00 : f32
    %227 = vector.broadcast %cst_70 : f32 to vector<16x32xf32>
    %228 = vector.extract_strided_slice %223 {offsets = [0, 0], sizes = [16, 8], strides = [1, 1]} : vector<16x64xf32> to vector<16x8xf32>
    %229 = vector.extract_strided_slice %223 {offsets = [0, 32], sizes = [16, 8], strides = [1, 1]} : vector<16x64xf32> to vector<16x8xf32>
    %230 = vector.extract_strided_slice %226 {offsets = [0, 0], sizes = [16, 8], strides = [1, 1]} : vector<16x32xf32> to vector<16x8xf32>
    %cst_71 = arith.constant dense<0.000000e+00> : vector<16x16xf32>
    %231 = tpu.matmul %228, %229, %cst_71 {dimension_numbers = #tpu.dot_dimension_numbers<[1], [1], [0], [0], [0, 0, 1, 0], [], []>} : vector<16x8xf32>, vector<16x8xf32>, vector<16x16xf32> -> vector<16x16xf32>
    %232 = arith.addf %231, %41 : vector<16x16xf32>
    %cst_72 = arith.constant dense<0xFF800000> : vector<16xf32>
    %233 = vector.multi_reduction <maximumf>, %232, %cst_72 [1] : vector<16x16xf32> to vector<16xf32>
    %234 = vector.shape_cast %233 : vector<16xf32> to vector<16x1xf32>
    %235 = vector.broadcast %234 : vector<16x1xf32> to vector<16x16xf32>
    %236 = arith.subf %232, %235 : vector<16x16xf32>
    %237 = math.exp %236 : vector<16x16xf32>
    %cst_73 = arith.constant dense<0.000000e+00> : vector<16xf32>
    %238 = vector.multi_reduction <add>, %237, %cst_73 [1] : vector<16x16xf32> to vector<16xf32>
    %239 = vector.shape_cast %238 : vector<16xf32> to vector<16x1xf32>
    %240 = tpu.reciprocal %239 {approx = true} : vector<16x1xf32> -> vector<16x1xf32>
    %241 = vector.broadcast %240 : vector<16x1xf32> to vector<16x16xf32>
    %242 = arith.mulf %237, %241 : vector<16x16xf32>
    %cst_74 = arith.constant dense<0.000000e+00> : vector<16x8xf32>
    %243 = tpu.matmul %242, %230, %cst_74 {dimension_numbers = #tpu.dot_dimension_numbers<[1], [0], [0], [1], [0, 0, 1, 1], [], []>} : vector<16x16xf32>, vector<16x8xf32>, vector<16x8xf32> -> vector<16x8xf32>
    %244 = vector.extract_strided_slice %209 {offsets = [0, 0], sizes = [8, 32], strides = [1, 1]} : vector<32x32xf32> to vector<8x32xf32>
    %cst_75 = arith.constant dense<0.000000e+00> : vector<16x32xf32>
    %245 = tpu.matmul %243, %244, %cst_75 {dimension_numbers = #tpu.dot_dimension_numbers<[1], [0], [0], [1], [0, 0, 1, 1], [], []>} : vector<16x8xf32>, vector<8x32xf32>, vector<16x32xf32> -> vector<16x32xf32>
    %246 = arith.addf %227, %245 : vector<16x32xf32>
    %247 = vector.extract_strided_slice %223 {offsets = [0, 8], sizes = [16, 8], strides = [1, 1]} : vector<16x64xf32> to vector<16x8xf32>
    %248 = vector.extract_strided_slice %223 {offsets = [0, 40], sizes = [16, 8], strides = [1, 1]} : vector<16x64xf32> to vector<16x8xf32>
    %249 = vector.extract_strided_slice %226 {offsets = [0, 8], sizes = [16, 8], strides = [1, 1]} : vector<16x32xf32> to vector<16x8xf32>
    %cst_76 = arith.constant dense<0.000000e+00> : vector<16x16xf32>
    %250 = tpu.matmul %247, %248, %cst_76 {dimension_numbers = #tpu.dot_dimension_numbers<[1], [1], [0], [0], [0, 0, 1, 0], [], []>} : vector<16x8xf32>, vector<16x8xf32>, vector<16x16xf32> -> vector<16x16xf32>
    %251 = arith.addf %250, %41 : vector<16x16xf32>
    %cst_77 = arith.constant dense<0xFF800000> : vector<16xf32>
    %252 = vector.multi_reduction <maximumf>, %251, %cst_77 [1] : vector<16x16xf32> to vector<16xf32>
    %253 = vector.shape_cast %252 : vector<16xf32> to vector<16x1xf32>
    %254 = vector.broadcast %253 : vector<16x1xf32> to vector<16x16xf32>
    %255 = arith.subf %251, %254 : vector<16x16xf32>
    %256 = math.exp %255 : vector<16x16xf32>
    %cst_78 = arith.constant dense<0.000000e+00> : vector<16xf32>
    %257 = vector.multi_reduction <add>, %256, %cst_78 [1] : vector<16x16xf32> to vector<16xf32>
    %258 = vector.shape_cast %257 : vector<16xf32> to vector<16x1xf32>
    %259 = tpu.reciprocal %258 {approx = true} : vector<16x1xf32> -> vector<16x1xf32>
    %260 = vector.broadcast %259 : vector<16x1xf32> to vector<16x16xf32>
    %261 = arith.mulf %256, %260 : vector<16x16xf32>
    %cst_79 = arith.constant dense<0.000000e+00> : vector<16x8xf32>
    %262 = tpu.matmul %261, %249, %cst_79 {dimension_numbers = #tpu.dot_dimension_numbers<[1], [0], [0], [1], [0, 0, 1, 1], [], []>} : vector<16x16xf32>, vector<16x8xf32>, vector<16x8xf32> -> vector<16x8xf32>
    %263 = vector.extract_strided_slice %209 {offsets = [8, 0], sizes = [8, 32], strides = [1, 1]} : vector<32x32xf32> to vector<8x32xf32>
    %cst_80 = arith.constant dense<0.000000e+00> : vector<16x32xf32>
    %264 = tpu.matmul %262, %263, %cst_80 {dimension_numbers = #tpu.dot_dimension_numbers<[1], [0], [0], [1], [0, 0, 1, 1], [], []>} : vector<16x8xf32>, vector<8x32xf32>, vector<16x32xf32> -> vector<16x32xf32>
    %265 = arith.addf %246, %264 : vector<16x32xf32>
    %266 = vector.extract_strided_slice %223 {offsets = [0, 16], sizes = [16, 8], strides = [1, 1]} : vector<16x64xf32> to vector<16x8xf32>
    %267 = vector.extract_strided_slice %223 {offsets = [0, 48], sizes = [16, 8], strides = [1, 1]} : vector<16x64xf32> to vector<16x8xf32>
    %268 = vector.extract_strided_slice %226 {offsets = [0, 16], sizes = [16, 8], strides = [1, 1]} : vector<16x32xf32> to vector<16x8xf32>
    %cst_81 = arith.constant dense<0.000000e+00> : vector<16x16xf32>
    %269 = tpu.matmul %266, %267, %cst_81 {dimension_numbers = #tpu.dot_dimension_numbers<[1], [1], [0], [0], [0, 0, 1, 0], [], []>} : vector<16x8xf32>, vector<16x8xf32>, vector<16x16xf32> -> vector<16x16xf32>
    %270 = arith.addf %269, %41 : vector<16x16xf32>
    %cst_82 = arith.constant dense<0xFF800000> : vector<16xf32>
    %271 = vector.multi_reduction <maximumf>, %270, %cst_82 [1] : vector<16x16xf32> to vector<16xf32>
    %272 = vector.shape_cast %271 : vector<16xf32> to vector<16x1xf32>
    %273 = vector.broadcast %272 : vector<16x1xf32> to vector<16x16xf32>
    %274 = arith.subf %270, %273 : vector<16x16xf32>
    %275 = math.exp %274 : vector<16x16xf32>
    %cst_83 = arith.constant dense<0.000000e+00> : vector<16xf32>
    %276 = vector.multi_reduction <add>, %275, %cst_83 [1] : vector<16x16xf32> to vector<16xf32>
    %277 = vector.shape_cast %276 : vector<16xf32> to vector<16x1xf32>
    %278 = tpu.reciprocal %277 {approx = true} : vector<16x1xf32> -> vector<16x1xf32>
    %279 = vector.broadcast %278 : vector<16x1xf32> to vector<16x16xf32>
    %280 = arith.mulf %275, %279 : vector<16x16xf32>
    %cst_84 = arith.constant dense<0.000000e+00> : vector<16x8xf32>
    %281 = tpu.matmul %280, %268, %cst_84 {dimension_numbers = #tpu.dot_dimension_numbers<[1], [0], [0], [1], [0, 0, 1, 1], [], []>} : vector<16x16xf32>, vector<16x8xf32>, vector<16x8xf32> -> vector<16x8xf32>
    %282 = vector.extract_strided_slice %209 {offsets = [16, 0], sizes = [8, 32], strides = [1, 1]} : vector<32x32xf32> to vector<8x32xf32>
    %cst_85 = arith.constant dense<0.000000e+00> : vector<16x32xf32>
    %283 = tpu.matmul %281, %282, %cst_85 {dimension_numbers = #tpu.dot_dimension_numbers<[1], [0], [0], [1], [0, 0, 1, 1], [], []>} : vector<16x8xf32>, vector<8x32xf32>, vector<16x32xf32> -> vector<16x32xf32>
    %284 = arith.addf %265, %283 : vector<16x32xf32>
    %285 = vector.extract_strided_slice %223 {offsets = [0, 24], sizes = [16, 8], strides = [1, 1]} : vector<16x64xf32> to vector<16x8xf32>
    %286 = vector.extract_strided_slice %223 {offsets = [0, 56], sizes = [16, 8], strides = [1, 1]} : vector<16x64xf32> to vector<16x8xf32>
    %287 = vector.extract_strided_slice %226 {offsets = [0, 24], sizes = [16, 8], strides = [1, 1]} : vector<16x32xf32> to vector<16x8xf32>
    %cst_86 = arith.constant dense<0.000000e+00> : vector<16x16xf32>
    %288 = tpu.matmul %285, %286, %cst_86 {dimension_numbers = #tpu.dot_dimension_numbers<[1], [1], [0], [0], [0, 0, 1, 0], [], []>} : vector<16x8xf32>, vector<16x8xf32>, vector<16x16xf32> -> vector<16x16xf32>
    %289 = arith.addf %288, %41 : vector<16x16xf32>
    %cst_87 = arith.constant dense<0xFF800000> : vector<16xf32>
    %290 = vector.multi_reduction <maximumf>, %289, %cst_87 [1] : vector<16x16xf32> to vector<16xf32>
    %291 = vector.shape_cast %290 : vector<16xf32> to vector<16x1xf32>
    %292 = vector.broadcast %291 : vector<16x1xf32> to vector<16x16xf32>
    %293 = arith.subf %289, %292 : vector<16x16xf32>
    %294 = math.exp %293 : vector<16x16xf32>
    %cst_88 = arith.constant dense<0.000000e+00> : vector<16xf32>
    %295 = vector.multi_reduction <add>, %294, %cst_88 [1] : vector<16x16xf32> to vector<16xf32>
    %296 = vector.shape_cast %295 : vector<16xf32> to vector<16x1xf32>
    %297 = tpu.reciprocal %296 {approx = true} : vector<16x1xf32> -> vector<16x1xf32>
    %298 = vector.broadcast %297 : vector<16x1xf32> to vector<16x16xf32>
    %299 = arith.mulf %294, %298 : vector<16x16xf32>
    %cst_89 = arith.constant dense<0.000000e+00> : vector<16x8xf32>
    %300 = tpu.matmul %299, %287, %cst_89 {dimension_numbers = #tpu.dot_dimension_numbers<[1], [0], [0], [1], [0, 0, 1, 1], [], []>} : vector<16x16xf32>, vector<16x8xf32>, vector<16x8xf32> -> vector<16x8xf32>
    %301 = vector.extract_strided_slice %209 {offsets = [24, 0], sizes = [8, 32], strides = [1, 1]} : vector<32x32xf32> to vector<8x32xf32>
    %cst_90 = arith.constant dense<0.000000e+00> : vector<16x32xf32>
    %302 = tpu.matmul %300, %301, %cst_90 {dimension_numbers = #tpu.dot_dimension_numbers<[1], [0], [0], [1], [0, 0, 1, 1], [], []>} : vector<16x8xf32>, vector<8x32xf32>, vector<16x32xf32> -> vector<16x32xf32>
    %303 = arith.addf %284, %302 : vector<16x32xf32>
    %304 = vector.broadcast %213 : vector<1x32xf32> to vector<16x32xf32>
    %305 = arith.addf %303, %304 : vector<16x32xf32>
    %306 = arith.addf %200, %305 : vector<16x32xf32>
    %cst_91 = arith.constant dense<0.000000e+00> : vector<16xf32>
    %307 = vector.multi_reduction <add>, %306, %cst_91 [1] : vector<16x32xf32> to vector<16xf32>
    %308 = vector.shape_cast %307 : vector<16xf32> to vector<16x1xf32>
    %cst_92 = arith.constant 3.200000e+01 : f32
    %309 = vector.broadcast %cst_92 : f32 to vector<16x1xf32>
    %310 = arith.divf %308, %309 : vector<16x1xf32>
    %311 = vector.broadcast %310 : vector<16x1xf32> to vector<16x32xf32>
    %312 = arith.subf %306, %311 : vector<16x32xf32>
    %313 = arith.mulf %312, %312 : vector<16x32xf32>
    %cst_93 = arith.constant dense<0.000000e+00> : vector<16xf32>
    %314 = vector.multi_reduction <add>, %313, %cst_93 [1] : vector<16x32xf32> to vector<16xf32>
    %315 = vector.shape_cast %314 : vector<16xf32> to vector<16x1xf32>
    %cst_94 = arith.constant 3.200000e+01 : f32
    %316 = vector.broadcast %cst_94 : f32 to vector<16x1xf32>
    %317 = arith.divf %315, %316 : vector<16x1xf32>
    %318 = vector.broadcast %310 : vector<16x1xf32> to vector<16x32xf32>
    %319 = arith.subf %306, %318 : vector<16x32xf32>
    %cst_95 = arith.constant 9.99999974E-6 : f32
    %320 = vector.broadcast %cst_95 : f32 to vector<16x1xf32>
    %321 = arith.addf %317, %320 : vector<16x1xf32>
    %322 = math.rsqrt %321 : vector<16x1xf32>
    %323 = vector.broadcast %322 : vector<16x1xf32> to vector<16x32xf32>
    %324 = arith.mulf %319, %323 : vector<16x32xf32>
    %325 = vector.broadcast %216 : vector<1x32xf32> to vector<16x32xf32>
    %326 = arith.mulf %324, %325 : vector<16x32xf32>
    %327 = vector.broadcast %217 : vector<1x32xf32> to vector<16x32xf32>
    %328 = arith.addf %326, %327 : vector<16x32xf32>
    %cst_96 = arith.constant dense<0.000000e+00> : vector<16x64xf32>
    %329 = tpu.matmul %328, %210, %cst_96 {dimension_numbers = #tpu.dot_dimension_numbers<[1], [0], [0], [1], [0, 0, 1, 1], [], []>} : vector<16x32xf32>, vector<32x64xf32>, vector<16x64xf32> -> vector<16x64xf32>
    %330 = vector.broadcast %214 : vector<1x64xf32> to vector<16x64xf32>
    %331 = arith.addf %329, %330 : vector<16x64xf32>
    %cst_97 = arith.constant 0.000000e+00 : f32
    %332 = vector.broadcast %cst_97 : f32 to vector<16x64xf32>
    %333 = arith.maximumf %331, %332 : vector<16x64xf32>
    %cst_98 = arith.constant dense<0.000000e+00> : vector<16x32xf32>
    %334 = tpu.matmul %333, %204, %cst_98 {dimension_numbers = #tpu.dot_dimension_numbers<[1], [0], [0], [1], [0, 0, 1, 1], [], []>} : vector<16x64xf32>, vector<64x32xf32>, vector<16x32xf32> -> vector<16x32xf32>
    %335 = vector.broadcast %215 : vector<1x32xf32> to vector<16x32xf32>
    %336 = arith.addf %334, %335 : vector<16x32xf32>
    %337 = arith.addf %328, %336 : vector<16x32xf32>
    %cst_99 = arith.constant dense<0.000000e+00> : vector<16xf32>
    %338 = vector.multi_reduction <add>, %337, %cst_99 [1] : vector<16x32xf32> to vector<16xf32>
    %339 = vector.shape_cast %338 : vector<16xf32> to vector<16x1xf32>
    %cst_100 = arith.constant 3.200000e+01 : f32
    %340 = vector.broadcast %cst_100 : f32 to vector<16x1xf32>
    %341 = arith.divf %339, %340 : vector<16x1xf32>
    %342 = vector.broadcast %341 : vector<16x1xf32> to vector<16x32xf32>
    %343 = arith.subf %337, %342 : vector<16x32xf32>
    %344 = arith.mulf %343, %343 : vector<16x32xf32>
    %cst_101 = arith.constant dense<0.000000e+00> : vector<16xf32>
    %345 = vector.multi_reduction <add>, %344, %cst_101 [1] : vector<16x32xf32> to vector<16xf32>
    %346 = vector.shape_cast %345 : vector<16xf32> to vector<16x1xf32>
    %cst_102 = arith.constant 3.200000e+01 : f32
    %347 = vector.broadcast %cst_102 : f32 to vector<16x1xf32>
    %348 = arith.divf %346, %347 : vector<16x1xf32>
    %349 = vector.broadcast %341 : vector<16x1xf32> to vector<16x32xf32>
    %350 = arith.subf %337, %349 : vector<16x32xf32>
    %cst_103 = arith.constant 9.99999974E-6 : f32
    %351 = vector.broadcast %cst_103 : f32 to vector<16x1xf32>
    %352 = arith.addf %348, %351 : vector<16x1xf32>
    %353 = math.rsqrt %352 : vector<16x1xf32>
    %354 = vector.broadcast %353 : vector<16x1xf32> to vector<16x32xf32>
    %355 = arith.mulf %350, %354 : vector<16x32xf32>
    %356 = vector.broadcast %218 : vector<1x32xf32> to vector<16x32xf32>
    %357 = arith.mulf %355, %356 : vector<16x32xf32>
    %358 = vector.broadcast %219 : vector<1x32xf32> to vector<16x32xf32>
    %359 = arith.addf %357, %358 : vector<16x32xf32>
    %c0_104 = arith.constant 0 : index
    %c0_105 = arith.constant 0 : index
    %360 = vector.load %arg6[%c0_104, %c0_105] : memref<8x128xf32, #tpu.memory_space<vmem>>, vector<1x32xf32>
    %c1_106 = arith.constant 1 : index
    %c0_107 = arith.constant 0 : index
    %361 = vector.load %arg6[%c1_106, %c0_107] : memref<8x128xf32, #tpu.memory_space<vmem>>, vector<1x32xf32>
    %cst_108 = arith.constant dense<0.000000e+00> : vector<16xf32>
    %362 = vector.multi_reduction <add>, %359, %cst_108 [1] : vector<16x32xf32> to vector<16xf32>
    %363 = vector.shape_cast %362 : vector<16xf32> to vector<16x1xf32>
    %cst_109 = arith.constant 3.200000e+01 : f32
    %364 = vector.broadcast %cst_109 : f32 to vector<16x1xf32>
    %365 = arith.divf %363, %364 : vector<16x1xf32>
    %366 = vector.broadcast %365 : vector<16x1xf32> to vector<16x32xf32>
    %367 = arith.subf %359, %366 : vector<16x32xf32>
    %368 = arith.mulf %367, %367 : vector<16x32xf32>
    %cst_110 = arith.constant dense<0.000000e+00> : vector<16xf32>
    %369 = vector.multi_reduction <add>, %368, %cst_110 [1] : vector<16x32xf32> to vector<16xf32>
    %370 = vector.shape_cast %369 : vector<16xf32> to vector<16x1xf32>
    %cst_111 = arith.constant 3.200000e+01 : f32
    %371 = vector.broadcast %cst_111 : f32 to vector<16x1xf32>
    %372 = arith.divf %370, %371 : vector<16x1xf32>
    %373 = vector.broadcast %365 : vector<16x1xf32> to vector<16x32xf32>
    %374 = arith.subf %359, %373 : vector<16x32xf32>
    %cst_112 = arith.constant 9.99999974E-6 : f32
    %375 = vector.broadcast %cst_112 : f32 to vector<16x1xf32>
    %376 = arith.addf %372, %375 : vector<16x1xf32>
    %377 = math.rsqrt %376 : vector<16x1xf32>
    %378 = vector.broadcast %377 : vector<16x1xf32> to vector<16x32xf32>
    %379 = arith.mulf %374, %378 : vector<16x32xf32>
    %380 = vector.broadcast %360 : vector<1x32xf32> to vector<16x32xf32>
    %381 = arith.mulf %379, %380 : vector<16x32xf32>
    %382 = vector.broadcast %361 : vector<1x32xf32> to vector<16x32xf32>
    %383 = arith.addf %381, %382 : vector<16x32xf32>
    %384 = vector.shape_cast %383 : vector<16x32xf32> to vector<8x2x32xf32>
    %c0_113 = arith.constant 0 : index
    %c0_114 = arith.constant 0 : index
    %c0_115 = arith.constant 0 : index
    %385 = vector.load %arg7[%c0_113, %c0_114, %c0_115] : memref<8x2x32xf32, #tpu.memory_space<vmem>>, vector<8x2x32xf32>
    tpu.vector_store %arg7[%c0_113, %c0_114, %c0_115], %384 {strides = array<i32>} : memref<8x2x32xf32, #tpu.memory_space<vmem>>, vector<8x2x32xf32>,
    return
  }
  func.func @transform_0(%arg0: i32) -> (i32, i32, i32) {
    %c0_i32 = arith.constant 0 : i32
    %c0_i32_0 = arith.constant 0 : i32
    %c0_i32_1 = arith.constant 0 : i32
    %c0_i32_2 = arith.constant 0 : i32
    return %c0_i32, %c0_i32_0, %c0_i32_1 : i32, i32, i32
  }
  func.func @transform_1(%arg0: i32) -> (i32, i32, i32) {
    %c0_i32 = arith.constant 0 : i32
    %c0_i32_0 = arith.constant 0 : i32
    %c0_i32_1 = arith.constant 0 : i32
    %c0_i32_2 = arith.constant 0 : i32
    return %c0_i32, %c0_i32_0, %c0_i32_1 : i32, i32, i32
  }
  func.func @transform_2(%arg0: i32) -> (i32, i32, i32) {
    %c0_i32 = arith.constant 0 : i32
    %c0_i32_0 = arith.constant 0 : i32
    %c0_i32_1 = arith.constant 0 : i32
    %c0_i32_2 = arith.constant 0 : i32
    return %c0_i32, %c0_i32_0, %c0_i32_1 : i32, i32, i32
  }
  func.func @transform_3(%arg0: i32) -> (i32, i32, i32) {
    %c0_i32 = arith.constant 0 : i32
    %c0_i32_0 = arith.constant 0 : i32
    %c0_i32_1 = arith.constant 0 : i32
    %c0_i32_2 = arith.constant 0 : i32
    return %c0_i32, %c0_i32_0, %c0_i32_1 : i32, i32, i32
  }
  func.func @transform_4(%arg0: i32) -> (i32, i32, i32) {
    %c0_i32 = arith.constant 0 : i32
    %c0_i32_0 = arith.constant 0 : i32
    %c0_i32_1 = arith.constant 0 : i32
    %c0_i32_2 = arith.constant 0 : i32
    return %c0_i32, %c0_i32_0, %c0_i32_1 : i32, i32, i32
  }
  func.func @transform_5(%arg0: i32) -> (i32, i32) {
    %c0_i32 = arith.constant 0 : i32
    %c0_i32_0 = arith.constant 0 : i32
    %c0_i32_1 = arith.constant 0 : i32
    return %c0_i32, %c0_i32_0 : i32, i32
  }
  func.func @transform_6(%arg0: i32) -> (i32, i32, i32) {
    %c0_i32 = arith.constant 0 : i32
    %c0_i32_0 = arith.constant 0 : i32
    %c0_i32_1 = arith.constant 0 : i32
    %c0_i32_2 = arith.constant 0 : i32
    return %c0_i32, %c0_i32_0, %c0_i32_1 : i32, i32, i32
  }
}

</mosaic_0001>

<bundles_post_ra>
// kernel: _encoder_call.1
= control target key start
LH: loop header
LB: loop body
LE: loop exit
PB: predicated region body
PF: predicated region fallthrough
CT: control target
= control target key end

     0   :  { %v40_v3 = vlaneseq  ;;  %v6082_v8 = vmov 1983009808   ;;  %s7195_s0 = inlined_call_operand.vmem [shape: f32[8,2,32], index: 0, kind: input, shape index: {}]   ;;  %s7196_s1 = inlined_call_operand.vmem [shape: f32[8,2,32], index: 1, kind: input, shape index: {}]   ;;  %s7197_s2 = inlined_call_operand.vmem [shape: f32[2,32,192], index: 2, kind: input, shape index: {}]   ;;  %s7198_s3 = inlined_call_operand.vmem [shape: f32[2,64,32], index: 3, kind: input, shape index: {}]   ;;  %s7199_s4 = inlined_call_operand.vmem [shape: f32[2,8,128], index: 4, kind: input, shape index: {}]   ;;  %s7200_s5 = inlined_call_operand.vmem [shape: f32[8,128], index: 5, kind: input, shape index: {}]   ;;  %s7201_s6 = inlined_call_operand.hbm [shape: f32[8,2,32], index: 6, kind: output, shape index: {}]  }
   0x1   :  { %v6137_v0 = vld [vmem:[%s7197_s2] sm:$0xff]  ;;  %v6142_v1 = vld [vmem:[%s7197_s2 + $0x10] sm:$0xff]  ;;  %v125_v9 = vunpack.c.l.s4 %v6082_v8  ;;  %v6200_v23 = vld [vmem:[%s7195_s0 + $0x8] sm:$0x3] }
   0x2   :  { %v6147_v2 = vld [vmem:[%s7197_s2 + $0x20] sm:$0xff]  ;;  %v5687_v4 = vpack.c.bf16 %v6142_v1, %v6137_v0  ;;  %v6154_v5 = vld [vmem:[%s7197_s2 + $0x30] sm:$0xff]  ;;  %v6192_v19 = vshrl.u32 %v40_v3, 7  ;;  %v6205_v24 = vld [vmem:[%s7195_s0 + $0xa] sm:$0x3] }
   0x3   :  { %v6159_v6 = vld [vmem:[%s7195_s0] sm:$0x3]  ;;  %v6164_v7 = vld [vmem:[%s7195_s0 + $0x2] sm:$0x3]  ;;  %v5691_v10 = vpack.c.bf16 %v6154_v5, %v6147_v2  ;;  %v6171_v11 = vld [vmem:[%s7195_s0 + $0x4] sm:$0x3]  ;;  %v126_v18 = vunpack.c.0.s8 %v125_v9 }
   0x4   :  { %v6176_v12 = vld [vmem:[%s7195_s0 + $0x6] sm:$0x3]  ;;  %v32_v13 = vld [vmem:[%s7196_s1] sm:$0x3]  ;;  %5688 = vmatprep.subr.bf16.mxu1 %v5687_v4  ;;  %v33_v14 = vld [vmem:[%s7196_s1 + $0x2] sm:$0x3] }
   0x5   :  { %v34_v15 = vld [vmem:[%s7196_s1 + $0x4] sm:$0x3]  ;;  %v35_v16 = vld [vmem:[%s7196_s1 + $0x6] sm:$0x3]  ;;  %v102_v17 = vadd.f32 %v32_v13, %v6159_v6  ;;  %5690 = vmatpush3.bf16.msra.mxu1 %v5687_v4  ;;  %v103_v20 = vadd.f32 %v33_v14, %v6164_v7  ;;  %v6210_v25 = vld [vmem:[%s7195_s0 + $0xc] sm:$0x3]  ;;  %v6221_v30 = vsub.s32 %v126_v18, %v6192_v19 }
   0x6   :  { %v104_v21 = vadd.f32 %v34_v15, %v6171_v11  ;;  %v105_v22 = vadd.f32 %v35_v16, %v6176_v12  ;;  %5692 = vmatprep.subr.bf16.mxu1 %v5691_v10  ;;  %v6215_v26 = vld [vmem:[%s7195_s0 + $0xe] sm:$0x3]  ;;  %v36_v27 = vld [vmem:[%s7196_s1 + $0x8] sm:$0x3]  ;;  %v37_v31 = vld [vmem:[%s7196_s1 + $0xa] sm:$0x3] }
   0x7   :  { %v122_v28 = vcombine.low %v102_v17, %v103_v20  ;;  %v38_v32 = vld [vmem:[%s7196_s1 + $0xc] sm:$0x3]  ;;  %v39_v33 = vld [vmem:[%s7196_s1 + $0xe] sm:$0x3]  ;;  %v106_v34 = vadd.f32 %v36_v27, %v6200_v23  ;;  %v107_v35 = vadd.f32 %v37_v31, %v6205_v24 }
   0x8   :  { %v123_v29 = vcombine.low %v104_v21, %v105_v22  ;;  %v108_v36 = vadd.f32 %v38_v32, %v6210_v25  ;;  %v109_v37 = vadd.f32 %v39_v33, %v6215_v26 }
   0x9   :  { %11 = vsyncpa [#allocation3], 0  ;;  %5694 = vmatpush3.bf16.msra.mxu1 %v5691_v10  ;;  %v130_v38 = vrot.slane %v122_v28, %v6221_v30  ;;  %vm156_vm0 = vcmask 261120   ;;  %v139_v40 = vcombine.low %v106_v34, %v107_v35  ;;  %v112_v46 = vsub.s32 0, %v6192_v19  ;;  %v6246_v47 = vld [vmem:[%s7199_s4] sm:$0xff]  ;;  %s6083_s14 = smov 96  }
   0xa   :  { %v137_v39 = vrot.slane %v123_v29, %v6221_v30  ;;  %v140_v41 = vcombine.low %v108_v36, %v109_v37  ;;  %vm383_vm1 = vcmask 64512   ;;  %v5886_v54 = vpack.i.bf16 %v6154_v5, %v6147_v2  ;;  %s6084_s15 = smov 64   ;;  %s6086_s16 = smov 88  }
   0xb   :  { %v147_v43 = vrot.slane %v139_v40, %v6221_v30  ;;  %v6251_v48 = vrot.slane %v6246_v47, %v112_v46  ;;  %v5881_v55 = vpack.i.bf16 %v6142_v1, %v6137_v0  ;;  %vm6275_vm2 = vmpackc.low %vm383_vm1, %vm383_vm1  ;;  %v244_v63 = vcombine.low %v6159_v6, %v6164_v7  ;;  %s6087_s17 = smov 120   ;;  %s6088_s18 = smov 80  }
   0xc   :  { %v138_v42 = vcombine.low %v130_v38, %v137_v39  ;;  %v154_v44 = vrot.slane %v140_v41, %v6221_v30  ;;  %5887 = vrot.lane.b32.xlu1 %v5886_v54, %s6084_s15  ;;  %v245_v4 = vcombine.low %v6171_v11, %v6176_v12  ;;  %v261_v8 = vcombine.low %v6200_v23, %v6205_v24  ;;  %s6089_s19 = smov 112   ;;  %s6090_s20 = smov 104  }
   0xd   :  { %v262_v9 = vcombine.low %v6210_v25, %v6215_v26  ;;  %v252_v16 = vrot.slane %v244_v63, %v6221_v30  ;;  %v42_v29 = vadd.s32 8, %v6192_v19  ;;  %v44_v31 = vand.u32 127, %v40_v3  ;;  %s6091_s21 = smov 32   ;;  %s6092_s22 = smov 72  }
   0xe   :  { %5439 = vmatprep.mubr.msk.f32.mxu1 %vm156_vm0, %v138_v42  ;;  %v155_v45 = vcombine.low %v147_v43, %v154_v44  ;;  %v259_v17 = vrot.slane %v245_v4, %v6221_v30  ;;  %v269_v22 = vrot.slane %v261_v8, %v6221_v30  ;;  %v49_v34 = vand.u32 1, %v6192_v19 }
   0xf   :  { %v276_v27 = vrot.slane %v262_v9, %v6221_v30  ;;  %v56_v32 = vand.u32 1, %v42_v29  ;;  %v73_v33 = vand.u32 1, %v44_v31  ;;  %v6085_v35 = vmov -1e+30  }
  0x10   :  { %5440 = vmatmul.mubr.msk.f32.vlgmr.msra.gmra.mrb[0].mxu1 %vm156_vm0, %v155_v45  ;;  %v260_v21 = vcombine.low %v252_v16, %v259_v17  ;;  %vm467_vm5 = vcmask 130048   ;;  %vm2020_vm6 = vcmask 523264   ;;  %vm5163_vm7 = vcmask 254976  }
  0x11   :  { %v277_v28 = vcombine.low %v269_v22, %v276_v27  ;;  %vm82_vm3 = vcmp.eq.s32.totalorder %v56_v32, %v73_v33  ;;  %vm81_vm4 = vcmp.eq.s32.totalorder %v49_v34, %v73_v33 }
  0x12   :  { %5450 = vmatprep.mubr.msk.f32.mxu1 %vm156_vm0, %v260_v21  ;;  %v6302_v36 = vsel %vm82_vm3, 0.0, %v6085_v35  ;;  %v6304_v37 = vsel %vm81_vm4, 0.0, %v6085_v35 }
  0x7e   :  { %v5888_v62 = vpop.permute.xlu1 %5887 }
  0x7f   :  { %v5890_v14 = vunpack.i.h.bf16 %v5888_v62  ;;  %v5889_v15 = vunpack.i.l.bf16 %v5888_v62 }
  0x81   :  { %v5699_v20 = vpack.c.bf16 %v5890_v14, %v5889_v15 }
  0xe3   :  { %v5441_v49 = vpop.f32.mrb[0].mxu1 }
  0xe4   :  { %v6254_v50 = vadd.f32 %v5441_v49, %v6251_v48  ;;  %v227_v51 = vpop.f32.mrb[1].mxu1 }
  0xe5   :  { %v6257_v52 = vadd.f32 %v227_v51, %v6251_v48 }
  0xe7   :  { %5457 = vmatprep.mubr.msk.f32.mxu0 %vm383_vm1, %v6257_v52  ;;  %v6263_v53 = vpack.i.bf16 %v6254_v50, %v6257_v52 }
  0xe9   :  { %5877 = vrot.lane.b32.xlu0 %v6263_v53, %s6083_s14 }
  0xed   :  { %5882 = vrot.lane.b32.xlu0 %v5881_v55, %s6084_s15 }
 0x15b   :  { %v5878_v56 = vpop.permute.xlu0 %5877 }
 0x15c   :  { %v5880_v57 = vunpack.i.h.bf16 %v5878_v56  ;;  %v5879_v58 = vunpack.i.l.bf16 %v5878_v56 }
 0x15e   :  { %v5703_v60 = vpack.c.bf16 %v5880_v57, %v5879_v58 }
 0x15f   :  { %v5883_v61 = vpop.permute.xlu0 %5882 }
 0x160   :  { %5705 = vmatprep.subr.msk.bf16.mxu0 %vm6275_vm2, %v5703_v60  ;;  %v5885_v10 = vunpack.i.h.bf16 %v5883_v61  ;;  %v5884_v13 = vunpack.i.l.bf16 %v5883_v61 }
 0x161   :  { %5708 = vmatpush3.bf16.xpose.msk.msra.mxu0 %vm6275_vm2, %v5703_v60 }
 0x162   :  { %v5695_v18 = vpack.c.bf16 %v5885_v10, %v5884_v13 }
 0x164   :  { %5696 = vmatprep.subr.bf16.mxu1 %v5695_v18 }
 0x165   :  { %5698 = vmatpush3.bf16.msra.mxu1 %v5695_v18 }
 0x166   :  { %5700 = vmatprep.subr.bf16.mxu1 %v5699_v20 }
 0x168   :  { %5458 = vmatmul.mubr.msk.f32.vlgmr.msra.gmra.mrb[0].mxu0 %vm383_vm1, %v6254_v50 }
 0x169   :  { %5702 = vmatpush3.bf16.msra.mxu1 %v5699_v20 }
 0x16c   :  { %5451 = vmatmul.mubr.msk.f32.vlgmr.msra.gmra.mrb[2].mxu1 %vm156_vm0, %v277_v28 }
 0x23b   :  { %v5459_v38 = vpop.f32.mrb[0].mxu0 }
 0x23c   :  { %v464_v39 = vadd.f32 %v5459_v38, %v6302_v36  ;;  %v458_v40 = vpop.f32.mrb[1].mxu0 }
 0x23d   :  { %v459_v41 = vadd.f32 %v458_v40, %v6304_v37 }
 0x23e   :  { %v471_v3 = vsel %vm467_vm5, %v464_v39, -inf }
 0x23f   :  { %472 = vmax.xlane.f32.xlu0 %v471_v3  ;;  %v468_v42 = vsel %vm467_vm5, %v459_v41, -inf  ;;  %v5452_v60 = vpop.f32.mrb[2].mxu1 }
 0x240   :  { %469 = vmax.xlane.f32.xlu1 %v468_v42  ;;  %v368_v61 = vpop.f32.mrb[3].mxu1 }
 0x2cc   :  { %v473_v43 = vpop.xlane.xlu0 %472 }
 0x2cd   :  { %v475_v44 = vsub.f32 %v464_v39, %v473_v43  ;;  %v470_v45 = vpop.xlane.xlu1 %469 }
 0x2ce   :  { %v474_v49 = vsub.f32 %v459_v41, %v470_v45 }
 0x2cf   :  { %v478_v51 = vmul.f32 1.442695, %v475_v44 }
 0x2d0   :  { %v476_v54 = vmul.f32 1.442695, %v474_v49 }
 0x2d1   :  { %5966 = vpow2.f32 %v478_v51 }
 0x2d2   :  { %5968 = vpow2.f32 %v476_v54 }
 0x2db   :  { %v5967_v55 = vpop.eup %5966 }
 0x2dc   :  { %v5969_v56 = vpop.eup %5968  ;;  %v483_v57 = vsel %vm467_vm5, %v5967_v55, 0.0 }
 0x2dd   :  { %484 = vadd.xlane.f32.xlu1 %v483_v57  ;;  %v480_v58 = vsel %vm467_vm5, %v5969_v56, 0.0 }
 0x2de   :  { %481 = vadd.xlane.f32.xlu0 %v480_v58 }
 0x2ee   :  { %5892 = vrot.lane.b32.xlu1 %v6263_v53, %s6086_s16 }
 0x2f2   :  { %571 = vrot.lane.b32.xlu1 %v6257_v52, %s6087_s17 }
 0x2f4   :  { %295 = vrot.lane.b32.xlu0 %v6251_v48, %s6084_s15 }
 0x2f6   :  { %5897 = vrot.lane.b32.xlu1 %v6263_v53, %s6088_s18 }
 0x2f8   :  { %573 = vrot.lane.b32.xlu0 %v6254_v50, %s6087_s17 }
 0x2fa   :  { %943 = vrot.lane.b32.xlu1 %v6254_v50, %s6089_s19 }
 0x2fc   :  { %941 = vrot.lane.b32.xlu0 %v6257_v52, %s6089_s19 }
 0x36a   :  { %v485_v62 = vpop.xlane.xlu1 %484 }
 0x36b   :  { %5970 = vrcp.f32 %v485_v62  ;;  %v482_v63 = vpop.xlane.xlu0 %481 }
 0x36c   :  { %5972 = vrcp.f32 %v482_v63 }
 0x36e   :  { %v5893_v4 = vpop.permute.xlu1 %5892 }
 0x36f   :  { %v296_v8 = vpop.permute.xlu0 %295  ;;  %v5895_v9 = vunpack.i.h.bf16 %v5893_v4  ;;  %v5894_v10 = vunpack.i.l.bf16 %v5893_v4 }
 0x370   :  { %v369_v13 = vadd.f32 %v368_v61, %v296_v8  ;;  %v374_v14 = vadd.f32 %v5452_v60, %v296_v8 }
 0x371   :  { %v5713_v18 = vpack.c.bf16 %v5895_v9, %v5894_v10 }
 0x372   :  { %v572_v15 = vpop.permute.xlu1 %571  ;;  %v5709_v16 = vpack.c.bf16 %v374_v14, %v369_v13  ;;  %v6326_v17 = vpack.i.bf16 %v374_v14, %v369_v13 }
 0x373   :  { %v574_v33 = vpop.permute.xlu0 %573 }
 0x374   :  { %5710 = vmatprep.subr.bf16.mxu1 %v5709_v16 }
 0x375   :  { %v5971_v20 = vpop.eup %5970  ;;  %5712 = vmatpush3.bf16.msra.mxu1 %v5709_v16 }
 0x376   :  { %v5973_v21 = vpop.eup %5972  ;;  %v5898_v22 = vpop.permute.xlu1 %5897  ;;  %5715 = vmatprep.subr.msk.bf16.mxu1 %vm6275_vm2, %v5713_v18  ;;  %v489_v28 = vmul.f32 %v5971_v20, %v5967_v55 }
 0x377   :  { %v488_v27 = vmul.f32 %v5973_v21, %v5969_v56  ;;  %v5900_v29 = vunpack.i.h.bf16 %v5898_v22  ;;  %v5899_v31 = vunpack.i.l.bf16 %v5898_v22  ;;  %v942_v34 = vpop.permute.xlu0 %941 }
 0x379   :  { %5464 = vmatprep.mubr.msk.f32.mxu1 %vm467_vm5, %v488_v27  ;;  %v5723_v32 = vpack.c.bf16 %v5900_v29, %v5899_v31 }
 0x37a   :  { %5465 = vmatmul.mubr.msk.f32.vlgmr.msra.gmra.mrb[4].mxu1 %vm467_vm5, %v489_v28  ;;  %v944_v35 = vpop.permute.xlu1 %943 }
 0x37b   :  { %5471 = vmatprep.mubr.msk.f32.mxu1 %vm383_vm1, %v572_v15 }
 0x37e   :  { %5718 = vmatpush3.bf16.xpose.msk.msra.mxu1 %vm6275_vm2, %v5713_v18 }
 0x37f   :  { %5725 = vmatprep.subr.msk.bf16.mxu1 %vm6275_vm2, %v5723_v32 }
 0x385   :  { %5472 = vmatmul.mubr.msk.f32.vlgmr.msra.gmra.mrb[6].mxu1 %vm383_vm1, %v574_v33 }
 0x386   :  { %5728 = vmatpush3.bf16.xpose.msk.msra.mxu1 %vm6275_vm2, %v5723_v32  ;;  %5495 = vmatprep.mubr.msk.f32.mxu1 %vm383_vm1, %v942_v34 }
 0x38d   :  { %5496 = vmatmul.mubr.msk.f32.vlgmr.msra.gmra.mrb[8].mxu1 %vm383_vm1, %v944_v35 }
 0x44d   :  { %v6342_v38 = vpop.f32.mrb[4].mxu1 }
 0x44e   :  { %v6344_v39 = vpop.f32.mrb[5].mxu1 }
 0x458   :  { %v5473_v40 = vpop.f32.mrb[6].mxu1 }
 0x459   :  { %v659_v41 = vadd.f32 %v5473_v40, %v6302_v36  ;;  %v653_v3 = vpop.f32.mrb[7].mxu1 }
 0x45a   :  { %v654_v42 = vadd.f32 %v653_v3, %v6304_v37 }
 0x45b   :  { %v665_v43 = vsel %vm467_vm5, %v659_v41, -inf }
 0x45c   :  { %666 = vmax.xlane.f32.xlu1 %v665_v43  ;;  %v662_v44 = vsel %vm467_vm5, %v654_v42, -inf }
 0x45d   :  { %663 = vmax.xlane.f32.xlu0 %v662_v44 }
 0x460   :  { %v5497_v45 = vpop.f32.mrb[8].mxu1 }
 0x461   :  { %v1023_v49 = vpop.f32.mrb[9].mxu1  ;;  %v1029_v51 = vadd.f32 %v5497_v45, %v6302_v36 }
 0x462   :  { %v1024_v20 = vadd.f32 %v1023_v49, %v6304_v37 }
 0x463   :  { %v1035_v54 = vsel %vm467_vm5, %v1029_v51, -inf }
 0x464   :  { %v1032_v21 = vsel %vm467_vm5, %v1024_v20, -inf }
 0x46d   :  { %5902 = vrot.lane.b32.xlu1 %v6326_v17, %s6087_s17 }
 0x471   :  { %1227 = vrot.lane.b32.xlu1 %v6257_v52, %s6090_s20 }
 0x475   :  { %1229 = vrot.lane.b32.xlu1 %v6254_v50, %s6090_s20 }
 0x499   :  { %1036 = vmax.xlane.f32.xlu1 %v1035_v54 }
 0x4aa   :  { %773 = vrot.lane.b32.xlu1 %v6142_v1, %s6091_s21 }
 0x4ae   :  { %5912 = vrot.lane.b32.xlu1 %v6326_v17, %s6089_s19 }
 0x4e9   :  { %v667_v55 = vpop.xlane.xlu1 %666 }
 0x4ea   :  { %v669_v56 = vsub.f32 %v659_v41, %v667_v55  ;;  %v664_v57 = vpop.xlane.xlu0 %663 }
 0x4eb   :  { %v668_v58 = vsub.f32 %v654_v42, %v664_v57 }
 0x4ec   :  { %v672_v52 = vmul.f32 1.442695, %v669_v56 }
 0x4ed   :  { %v670_v60 = vmul.f32 1.442695, %v668_v58  ;;  %v5903_v61 = vpop.permute.xlu1 %5902 }
 0x4ee   :  { %v5905_v50 = vunpack.i.h.bf16 %v5903_v61  ;;  %v5904_v62 = vunpack.i.l.bf16 %v5903_v61 }
 0x4ef   :  { %5974 = vpow2.f32 %v670_v60 }
 0x4f0   :  { %v5719_v63 = vpack.c.bf16 %v5905_v50, %v5904_v62  ;;  %5976 = vpow2.f32 %v672_v52 }
 0x4f1   :  { %v1228_v4 = vpop.permute.xlu1 %1227 }
 0x4f2   :  { %5720 = vmatprep.subr.bf16.mxu0 %v5719_v63  ;;  %5514 = vmatprep.mubr.msk.f32.mxu1 %vm383_vm1, %v1228_v4 }
 0x4f3   :  { %5722 = vmatpush3.bf16.msra.mxu0 %v5719_v63 }
 0x4f5   :  { %v1230_v13 = vpop.permute.xlu1 %1229 }
 0x4f9   :  { %v5975_v1 = vpop.eup %5974 }
 0x4fa   :  { %v674_v8 = vsel %vm467_vm5, %v5975_v1, 0.0  ;;  %v5977_v9 = vpop.eup %5976 }
 0x4fb   :  { %675 = vadd.xlane.f32.xlu0 %v674_v8  ;;  %v677_v10 = vsel %vm467_vm5, %v5977_v9, 0.0 }
 0x4ff   :  { %678 = vadd.xlane.f32.xlu0 %v677_v10 }
 0x515   :  { %5907 = vrot.lane.b32.xlu0 %v6263_v53, %s6092_s22 }
 0x526   :  { %v1037_v14 = vpop.xlane.xlu1 %1036 }
 0x527   :  { %v1039_v15 = vsub.f32 %v1029_v51, %v1037_v14 }
 0x529   :  { %v1042_v16 = vmul.f32 1.442695, %v1039_v15 }
 0x52a   :  { %v774_v18 = vpop.permute.xlu1 %773 }
 0x52b   :  { %5978 = vpow2.f32 %v1042_v16  ;;  %5481 = vmatprep.subr.mxu0 %v774_v18 }
 0x52e   :  { %v5913_v55 = vpop.permute.xlu1 %5912 }
 0x52f   :  { %v5915_v56 = vunpack.i.h.bf16 %v5913_v55  ;;  %v5914_v57 = vunpack.i.l.bf16 %v5913_v55 }
 0x531   :  { %v5729_v60 = vpack.c.bf16 %v5915_v56, %v5914_v57 }
 0x534   :  { %1033 = vmax.xlane.f32.xlu0 %v1032_v21 }
 0x535   :  { %v5979_v22 = vpop.eup %5978 }
 0x536   :  { %v1047_v27 = vsel %vm467_vm5, %v5979_v22, 0.0 }
 0x538   :  { %1048 = vadd.xlane.f32.xlu0 %v1047_v27 }
 0x588   :  { %v676_v28 = vpop.xlane.xlu0 %675 }
 0x589   :  { %5980 = vrcp.f32 %v676_v28 }
 0x58c   :  { %v679_v29 = vpop.xlane.xlu0 %678 }
 0x58d   :  { %5982 = vrcp.f32 %v679_v29 }
 0x590   :  { %v5908_v53 = vpop.permute.xlu0 %5907 }
 0x591   :  { %v5910_v31 = vunpack.i.h.bf16 %v5908_v53  ;;  %v5909_v32 = vunpack.i.l.bf16 %v5908_v53 }
 0x593   :  { %v5981_v33 = vpop.eup %5980  ;;  %v5733_v34 = vpack.c.bf16 %v5910_v31, %v5909_v32 }
 0x594   :  { %v682_v35 = vmul.f32 %v5981_v33, %v5975_v1 }
 0x595   :  { %5735 = vmatprep.subr.msk.bf16.mxu1 %vm6275_vm2, %v5733_v34 }
 0x596   :  { %5478 = vmatprep.mubr.msk.f32.mxu0 %vm467_vm5, %v682_v35  ;;  %5738 = vmatpush3.bf16.xpose.msk.msra.mxu1 %vm6275_vm2, %v5733_v34 }
 0x597   :  { %v5983_v40 = vpop.eup %5982 }
 0x598   :  { %v683_v41 = vmul.f32 %v5983_v40, %v5977_v9 }
 0x59a   :  { %5479 = vmatmul.mubr.msk.f32.vlgmr.msra.gmra.mrb[2].mxu0 %vm467_vm5, %v683_v41 }
 0x59b   :  { %5482 = vmatpush3.msra.mxu0 %v774_v18 }
 0x59d   :  { %5515 = vmatmul.mubr.msk.f32.vlgmr.msra.gmra.mrb[10].mxu1 %vm383_vm1, %v1230_v13 }
 0x5c1   :  { %v1034_v3 = vpop.xlane.xlu0 %1033 }
 0x5c2   :  { %v1038_v42 = vsub.f32 %v1024_v20, %v1034_v3 }
 0x5c4   :  { %v1040_v43 = vmul.f32 1.442695, %v1038_v42 }
 0x5c5   :  { %v1049_v49 = vpop.xlane.xlu0 %1048 }
 0x5c6   :  { %5984 = vpow2.f32 %v1040_v43 }
 0x5d0   :  { %v5985_v44 = vpop.eup %5984 }
 0x5d1   :  { %v1044_v45 = vsel %vm467_vm5, %v5985_v44, 0.0 }
 0x5d2   :  { %1045 = vadd.xlane.f32.xlu0 %v1044_v45 }
 0x5e8   :  { %857 = vrot.lane.b32.xlu0 %v6137_v0, %s6091_s21 }
 0x65f   :  { %v1046_v51 = vpop.xlane.xlu0 %1045 }
 0x660   :  { %5986 = vrcp.f32 %v1046_v51 }
 0x661   :  { %5988 = vrcp.f32 %v1049_v49 }
 0x663   :  { %v858_v54 = vpop.permute.xlu0 %857 }
 0x664   :  { %5486 = vmatprep.subr.mxu0 %v858_v54 }
 0x66a   :  { %v5987_v4 = vpop.eup %5986 }
 0x66b   :  { %v5989_v8 = vpop.eup %5988  ;;  %v1052_v9 = vmul.f32 %v5987_v4, %v5985_v44 }
 0x66d   :  { %v5480_v58 = vpop.f32.mrb[2].mxu0 }
 0x66e   :  { %v764_v52 = vpop.f32.mrb[3].mxu0 }
 0x66f   :  { %5483 = vmatprep.mubr.msk.f32.mxu0 %vm383_vm1, %v764_v52 }
 0x670   :  { %5484 = vmatmul.mubr.msk.f32.vlgmr.msra.gmra.mrb[4].mxu0 %vm383_vm1, %v5480_v58  ;;  %v5516_v61 = vpop.f32.mrb[10].mxu1 }
 0x671   :  { %5487 = vmatpush3.msra.mxu0 %v858_v54  ;;  %v1315_v0 = vadd.f32 %v5516_v61, %v6302_v36  ;;  %5488 = vmatprep.mubr.msk.f32.mxu0 %vm383_vm1, %v6344_v39  ;;  %v1309_v50 = vpop.f32.mrb[11].mxu1  ;;  %v1053_v39 = vmul.f32 %v5989_v8, %v5979_v22 }
 0x672   :  { %5730 = vmatprep.subr.bf16.mxu0 %v5729_v60  ;;  %v1310_v62 = vadd.f32 %v1309_v50, %v6304_v37 }
 0x673   :  { %v1321_v63 = vsel %vm467_vm5, %v1315_v0, -inf }
 0x674   :  { %1322 = vmax.xlane.f32.xlu0 %v1321_v63  ;;  %v1318_v1 = vsel %vm467_vm5, %v1310_v62, -inf }
 0x675   :  { %1319 = vmax.xlane.f32.xlu1 %v1318_v1 }
 0x678   :  { %5489 = vmatmul.mubr.msk.f32.vlgmr.msra.gmra.mrb[4].mxu0 %vm383_vm1, %v6342_v38 }
 0x679   :  { %5732 = vmatpush3.bf16.msra.mxu0 %v5729_v60  ;;  %5502 = vmatprep.mubr.msk.f32.mxu0 %vm467_vm5, %v1052_v9 }
 0x67c   :  { %5503 = vmatmul.mubr.msk.f32.vlgmr.msra.gmra.mrb[6].mxu0 %vm467_vm5, %v1053_v39 }
 0x701   :  { %v1323_v10 = vpop.xlane.xlu0 %1322 }
 0x702   :  { %v1325_v13 = vsub.f32 %v1315_v0, %v1323_v10  ;;  %v1320_v14 = vpop.xlane.xlu1 %1319 }
 0x703   :  { %v1324_v15 = vsub.f32 %v1310_v62, %v1320_v14 }
 0x704   :  { %v1328_v16 = vmul.f32 1.442695, %v1325_v13 }
 0x705   :  { %v1326_v18 = vmul.f32 1.442695, %v1324_v15 }
 0x706   :  { %5990 = vpow2.f32 %v1328_v16 }
 0x707   :  { %5992 = vpow2.f32 %v1326_v18 }
 0x710   :  { %v5991_v20 = vpop.eup %5990 }
 0x711   :  { %v5993_v21 = vpop.eup %5992  ;;  %v1333_v27 = vsel %vm467_vm5, %v5991_v20, 0.0 }
 0x712   :  { %1334 = vadd.xlane.f32.xlu1 %v1333_v27  ;;  %v1330_v38 = vsel %vm467_vm5, %v5993_v21, 0.0  ;;  %v6095_v27 = vmov 1414812756  }
 0x713   :  { %1331 = vadd.xlane.f32.xlu0 %v1330_v38  ;;  %v1640_v38 = vunpack.c.l.s4 %v6095_v27 }
 0x723   :  { %5917 = vrot.lane.b32.xlu1 %v6326_v17, %s6090_s20 }
 0x727   :  { %1427 = vrot.lane.b32.xlu1 %v6154_v5, %s6091_s21 }
 0x729   :  { %1141 = vrot.lane.b32.xlu0 %v6147_v2, %s6091_s21 }
 0x72d   :  { %1513 = vrot.lane.b32.xlu0 %v6251_v48, %s6091_s21 }
 0x74f   :  { %v5504_v22 = vpop.f32.mrb[6].mxu0 }
 0x750   :  { %v1132_v28 = vpop.f32.mrb[7].mxu0 }
 0x751   :  { %5507 = vmatprep.mubr.msk.f32.mxu0 %vm383_vm1, %v1132_v28 }
 0x79f   :  { %v1335_v29 = vpop.xlane.xlu1 %1334 }
 0x7a0   :  { %5994 = vrcp.f32 %v1335_v29  ;;  %v1332_v53 = vpop.xlane.xlu0 %1331 }
 0x7a1   :  { %5996 = vrcp.f32 %v1332_v53 }
 0x7a3   :  { %v5918_v31 = vpop.permute.xlu1 %5917 }
 0x7a4   :  { %v5920_v32 = vunpack.i.h.bf16 %v5918_v31  ;;  %v5919_v17 = vunpack.i.l.bf16 %v5918_v31  ;;  %v1142_v33 = vpop.permute.xlu0 %1141  ;;  %v1641_v31 = vunpack.c.0.s8 %v1640_v38 }
 0x7a5   :  { %5505 = vmatprep.subr.mxu0 %v1142_v33 }
 0x7a6   :  { %v5739_v5 = vpack.c.bf16 %v5920_v32, %v5919_v17  ;;  %5506 = vmatpush3.msra.mxu0 %v1142_v33 }
 0x7a7   :  { %5508 = vmatmul.mubr.msk.f32.vlgmr.msra.gmra.mrb[4].mxu0 %vm383_vm1, %v5504_v22  ;;  %v1428_v2 = vpop.permute.xlu1 %1427  ;;  %v6096_v22 = vmov 1987475062  }
 0x7a8   :  { %5740 = vmatprep.subr.bf16.mxu0 %v5739_v5  ;;  %v1514_v42 = vpop.permute.xlu0 %1513  ;;  %v1647_v28 = vunpack.c.l.s4 %v6096_v22  ;;  %v86_v22 = vld [vmem:[%s7197_s2 + $0x8] sm:$0xff] }
 0x7a9   :  { %5742 = vmatpush3.bf16.msra.mxu0 %v5739_v5  ;;  %v6433_v5 = vsub.s32 %v1641_v31, %v6192_v19  ;;  %v92_v31 = vld [vmem:[%s7197_s2 + $0x38] sm:$0xff] }
 0x7aa   :  { %v5995_v48 = vpop.eup %5994  ;;  %5524 = vmatprep.subr.mxu0 %v1428_v2  ;;  %v1648_v32 = vunpack.c.0.s8 %v1647_v28  ;;  %v88_v28 = vld [vmem:[%s7197_s2 + $0x18] sm:$0xff] }
 0x7ab   :  { %v5997_v34 = vpop.eup %5996  ;;  %v1339_v40 = vmul.f32 %v5995_v48, %v5991_v20  ;;  %v6094_v20 = vmov 842150450  }
 0x7ac   :  { %v1338_v35 = vmul.f32 %v5997_v34, %v5993_v21  ;;  %v1633_v21 = vunpack.c.l.s4 %v6094_v20 }
 0x7ae   :  { %5521 = vmatprep.mubr.msk.f32.mxu0 %vm467_vm5, %v1338_v35  ;;  %v1634_v53 = vunpack.c.0.s8 %v1633_v21 }
 0x7af   :  { %5522 = vmatmul.mubr.msk.f32.vlgmr.msra.gmra.mrb[8].mxu0 %vm467_vm5, %v1339_v40 }
 0x7b0   :  { %5525 = vmatpush3.msra.mxu0 %v1428_v2  ;;  %v6430_v33 = vsub.s32 %v1634_v53, %v6192_v19  ;;  %v6436_v2 = vsub.s32 %v1648_v32, %v6192_v19  ;;  %v90_v53 = vld [vmem:[%s7197_s2 + $0x28] sm:$0xff] }
 0x7b1   :  { %v5747_v32 = vpack.c.bf16 %v92_v31, %v90_v53 }
 0x882   :  { %v5523_v41 = vpop.f32.mrb[8].mxu0 }
 0x883   :  { %v1418_v3 = vpop.f32.mrb[9].mxu0 }
 0x884   :  { %5526 = vmatprep.mubr.msk.f32.mxu0 %vm383_vm1, %v1418_v3 }
 0x885   :  { %5527 = vmatmul.mubr.msk.f32.vlgmr.msra.gmra.mrb[4].mxu0 %vm383_vm1, %v5523_v41 }
 0x958   :  { %v5528_v43 = vpop.f32.mrb[4].mxu0 }
 0x959   :  { %v1517_v44 = vadd.f32 %v5528_v43, %v1514_v42  ;;  %v1502_v45 = vpop.f32.mrb[5].mxu0 }
 0x95a   :  { %v1516_v49 = vadd.f32 %v1514_v42, %v1502_v45 }
 0x95b   :  { %v1537_v51 = vcombine.high %v1517_v44, %v1517_v44  ;;  %v1544_v54 = vrot.slane %v1517_v44, %v6221_v30 }
 0x95c   :  { %v1520_v55 = vcombine.high %v1516_v49, %v1516_v49  ;;  %v1527_v56 = vrot.slane %v1516_v49, %v6221_v30 }
 0x95d   :  { %v1551_v57 = vrot.slane %v1537_v51, %v6221_v30  ;;  %v1552_v58 = vcombine.high %v1544_v54, %v1544_v54  ;;  %v1566_v0 = vadd.f32 %v1544_v54, %v6200_v23 }
 0x95e   :  { %v1534_v52 = vrot.slane %v1520_v55, %v6221_v30  ;;  %v1535_v60 = vcombine.high %v1527_v56, %v1527_v56  ;;  %v1562_v63 = vadd.f32 %v1527_v56, %v6159_v6 }
 0x95f   :  { %v1553_v61 = vcombine.high %v1551_v57, %v1551_v57  ;;  %v1567_v50 = vadd.f32 %v1552_v58, %v6205_v24  ;;  %v1568_v1 = vadd.f32 %v1551_v57, %v6210_v25 }
 0x960   :  { %v1536_v62 = vcombine.high %v1534_v52, %v1534_v52  ;;  %v1563_v4 = vadd.f32 %v1535_v60, %v6164_v7  ;;  %v1564_v39 = vadd.f32 %v1534_v52, %v6171_v11 }
 0x961   :  { %v1569_v8 = vadd.f32 %v1553_v61, %v6215_v26  ;;  %v1595_v9 = vcombine.low %v1566_v0, %v1567_v50 }
 0x962   :  { %v1565_v10 = vadd.f32 %v1536_v62, %v6176_v12  ;;  %v1578_v13 = vcombine.low %v1562_v63, %v1563_v4  ;;  %v6093_v12 = vmov 269488144  }
 0x963   :  { %v1596_v14 = vcombine.low %v1568_v1, %v1569_v8  ;;  %v1603_v23 = vrot.slane %v1595_v9, %v6221_v30  ;;  %v1626_v18 = vunpack.c.l.s4 %v6093_v12 }
 0x964   :  { %v1579_v15 = vcombine.low %v1564_v39, %v1565_v10  ;;  %v1586_v6 = vrot.slane %v1578_v13, %v6221_v30 }
 0x965   :  { %v1610_v24 = vrot.slane %v1596_v14, %v6221_v30  ;;  %v1627_v29 = vunpack.c.0.s8 %v1626_v18 }
 0x966   :  { %v1593_v7 = vrot.slane %v1579_v15, %v6221_v30 }
 0x967   :  { %v1611_v16 = vcombine.low %v1603_v23, %v1610_v24  ;;  %v6427_v17 = vsub.s32 %v1627_v29, %v6192_v19  ;;  %v5743_v29 = vpack.c.bf16 %v88_v28, %v86_v22 }
 0x968   :  { %v1594_v25 = vcombine.low %v1586_v6, %v1593_v7 }
 0x969   :  { %v1617_v26 = vsel %vm156_vm0, %v1611_v16, 0.0  ;;  %5744 = vmatprep.subr.bf16.mxu1 %v5743_v29 }
 0x96a   :  { %1618 = vadd.xlane.f32.xlu0 %v1617_v26  ;;  %v1614_v11 = vsel %vm156_vm0, %v1594_v25, 0.0  ;;  %5746 = vmatpush3.bf16.msra.mxu1 %v5743_v29 }
 0x96b   :  { %1615 = vadd.xlane.f32.xlu1 %v1614_v11  ;;  %v1837_v11 = vsub.s32 2, %v6192_v19  ;;  %5748 = vmatprep.subr.bf16.mxu1 %v5747_v32 }
 0x96d   :  { %v1838_v12 = vrot.slane %v6246_v47, %v1837_v11 }
 0x96e   :  { %5750 = vmatpush3.bf16.msra.mxu1 %v5747_v32 }
 0x96f   :  { %v6489_v18 = vrot.slane %v1838_v12, %v6221_v30  ;;  %v1840_v21 = vcombine.high %v1838_v12, %v1838_v12 }
 0x971   :  { %v6493_v20 = vcombine.high %v6489_v18, %v6489_v18  ;;  %v6498_v27 = vrot.slane %v1840_v21, %v6221_v30 }
 0x973   :  { %v6506_v38 = vcombine.high %v6498_v27, %v6498_v27 }
 0x9f7   :  { %v1619_v48 = vpop.xlane.xlu0 %1618 }
 0x9f8   :  { %v1622_v34 = vmul.f32 0.03125, %v1619_v48  ;;  %v1616_v35 = vpop.xlane.xlu1 %1615  ;;  %v93_v48 = vld [vmem:[%s7198_s3] sm:$0xff] }
 0x9f9   :  { %v1621_v40 = vmul.f32 0.03125, %v1616_v35  ;;  %v95_v35 = vld [vmem:[%s7198_s3 + $0x10] sm:$0xff] }
 0x9fa   :  { %v1659_v41 = vrot.slane %v1622_v34, %v6427_v17  ;;  %v1666_v3 = vrot.slane %v1622_v34, %v6430_v33  ;;  %v1673_v42 = vrot.slane %v1622_v34, %v6433_v5  ;;  %v1680_v43 = vrot.slane %v1622_v34, %v6436_v2  ;;  %v94_v34 = vld [vmem:[%s7198_s3 + $0x8] sm:$0xff] }
 0x9fb   :  { %v1631_v44 = vrot.slane %v1621_v40, %v6427_v17  ;;  %v1638_v45 = vrot.slane %v1621_v40, %v6430_v33  ;;  %v1645_v49 = vrot.slane %v1621_v40, %v6433_v5  ;;  %v1652_v51 = vrot.slane %v1621_v40, %v6436_v2 }
 0x9fc   :  { %v6446_v54 = vsub.f32 %v1566_v0, %v1659_v41  ;;  %v6448_v55 = vsub.f32 %v1567_v50, %v1666_v3  ;;  %v6450_v56 = vsub.f32 %v1568_v1, %v1673_v42  ;;  %v6452_v57 = vsub.f32 %v1569_v8, %v1680_v43  ;;  %v96_v3 = vld [vmem:[%s7198_s3 + $0x18] sm:$0xff]  ;;  %v97_v43 = vld [vmem:[%s7198_s3 + $0x20] sm:$0xff] }
 0x9fd   :  { %v6454_v58 = vsub.f32 %v1562_v63, %v1631_v44  ;;  %v6456_v52 = vsub.f32 %v1563_v4, %v1638_v45  ;;  %v6458_v60 = vsub.f32 %v1564_v39, %v1645_v49  ;;  %v6460_v61 = vsub.f32 %v1565_v10, %v1652_v51  ;;  %v98_v44 = vld [vmem:[%s7198_s3 + $0x28] sm:$0xff] }
 0x9fe   :  { %v1701_v62 = vmul.f32 %v6446_v54, %v6446_v54  ;;  %v1702_v0 = vmul.f32 %v6448_v55, %v6448_v55  ;;  %v1703_v50 = vmul.f32 %v6450_v56, %v6450_v56  ;;  %v1704_v1 = vmul.f32 %v6452_v57, %v6452_v57 }
 0x9ff   :  { %v1697_v63 = vmul.f32 %v6454_v58, %v6454_v58  ;;  %v1698_v4 = vmul.f32 %v6456_v52, %v6456_v52  ;;  %v1699_v8 = vmul.f32 %v6458_v60, %v6458_v60  ;;  %v1700_v9 = vmul.f32 %v6460_v61, %v6460_v61 }
 0xa00   :  { %v1730_v39 = vcombine.low %v1701_v62, %v1702_v0  ;;  %v1731_v10 = vcombine.low %v1703_v50, %v1704_v1  ;;  %v1891_v40 = vsub.s32 1, %v6192_v19  ;;  %v5751_v41 = vpack.c.bf16 %v94_v34, %v93_v48 }
 0xa01   :  { %v1713_v13 = vcombine.low %v1697_v63, %v1698_v4  ;;  %v1714_v14 = vcombine.low %v1699_v8, %v1700_v9  ;;  %v5755_v42 = vpack.c.bf16 %v96_v3, %v95_v35  ;;  %v5759_v49 = vpack.c.bf16 %v98_v44, %v97_v43 }
 0xa02   :  { %v1738_v15 = vrot.slane %v1730_v39, %v6221_v30  ;;  %v1745_v23 = vrot.slane %v1731_v10, %v6221_v30  ;;  %v6544_v45 = vrot.slane %v6246_v47, %v1891_v40  ;;  %5752 = vmatprep.subr.bf16.mxu0 %v5751_v41 }
 0xa03   :  { %v1721_v24 = vrot.slane %v1713_v13, %v6221_v30  ;;  %v1728_v6 = vrot.slane %v1714_v14, %v6221_v30  ;;  %5754 = vmatpush3.bf16.msra.mxu0 %v5751_v41 }
 0xa04   :  { %v1746_v7 = vcombine.low %v1738_v15, %v1745_v23  ;;  %5756 = vmatprep.subr.bf16.mxu0 %v5755_v42 }
 0xa05   :  { %v1729_v16 = vcombine.low %v1721_v24, %v1728_v6 }
 0xa06   :  { %v1752_v25 = vsel %vm156_vm0, %v1746_v7, 0.0 }
 0xa07   :  { %1753 = vadd.xlane.f32.xlu1 %v1752_v25  ;;  %v1749_v26 = vsel %vm156_vm0, %v1729_v16, 0.0  ;;  %5758 = vmatpush3.bf16.msra.mxu0 %v5755_v42 }
 0xa08   :  { %1750 = vadd.xlane.f32.xlu0 %v1749_v26  ;;  %5760 = vmatprep.subr.bf16.mxu0 %v5759_v49 }
 0xa0b   :  { %5762 = vmatpush3.bf16.msra.mxu0 %v5759_v49 }
 0xa18   :  { %1871 = vrot.lane.b32.xlu1 %v6493_v20, %s6083_s14 }
 0xa1c   :  { %1873 = vrot.lane.b32.xlu1 %v6498_v27, %s6083_s14 }
 0xa1e   :  { %1869 = vrot.lane.b32.xlu0 %v6489_v18, %s6083_s14 }
 0xa20   :  { %2017 = vrot.lane.b32.xlu1 %v6544_v45, %s6084_s15 }
 0xa22   :  { %1875 = vrot.lane.b32.xlu0 %v6506_v38, %s6083_s14 }
 0xa94   :  { %v1754_v51 = vpop.xlane.xlu1 %1753 }
 0xa95   :  { %v1756_v62 = vmul.f32 0.03125, %v1754_v51  ;;  %v1751_v0 = vpop.xlane.xlu0 %1750 }
 0xa96   :  { %v1755_v50 = vmul.f32 0.03125, %v1751_v0 }
 0xa97   :  { %v1758_v1 = vadd.f32 1e-05, %v1756_v62 }
 0xa98   :  { %v1757_v63 = vadd.f32 1e-05, %v1755_v50  ;;  %v1872_v4 = vpop.permute.xlu1 %1871 }
 0xa99   :  { %5998 = vrsqrt.f32 %v1758_v1  ;;  %v1870_v47 = vpop.permute.xlu0 %1869 }
 0xa9a   :  { %6000 = vrsqrt.f32 %v1757_v63 }
 0xa9c   :  { %v1874_v53 = vpop.permute.xlu1 %1873 }
 0xa9d   :  { %v1876_v28 = vpop.permute.xlu0 %1875 }
 0xaa3   :  { %v5999_v8 = vpop.eup %5998 }
 0xaa4   :  { %v6001_v9 = vpop.eup %6000  ;;  %v1797_v39 = vrot.slane %v5999_v8, %v6427_v17  ;;  %v1804_v10 = vrot.slane %v5999_v8, %v6430_v33  ;;  %v1818_v13 = vrot.slane %v5999_v8, %v6436_v2  ;;  %v1811_v14 = vrot.slane %v5999_v8, %v6433_v5 }
 0xaa5   :  { %v1769_v15 = vrot.slane %v6001_v9, %v6427_v17  ;;  %v1776_v23 = vrot.slane %v6001_v9, %v6430_v33  ;;  %v1790_v24 = vrot.slane %v6001_v9, %v6436_v2  ;;  %v1783_v6 = vrot.slane %v6001_v9, %v6433_v5 }
 0xaa6   :  { %v1831_v7 = vmul.f32 %v1797_v39, %v6446_v54  ;;  %v1832_v16 = vmul.f32 %v1804_v10, %v6448_v55  ;;  %v1834_v25 = vmul.f32 %v1818_v13, %v6452_v57  ;;  %v1833_v26 = vmul.f32 %v1811_v14, %v6450_v56 }
 0xaa7   :  { %v1827_v12 = vmul.f32 %v1769_v15, %v6454_v58  ;;  %v1828_v21 = vmul.f32 %v1776_v23, %v6456_v52  ;;  %v1830_v22 = vmul.f32 %v1790_v24, %v6460_v61  ;;  %v1829_v29 = vmul.f32 %v1783_v6, %v6458_v60  ;;  %v2018_v24 = vpop.permute.xlu1 %2017 }
 0xaa8   :  { %v1865_v31 = vmul.f32 %v6489_v18, %v1831_v7  ;;  %v1866_v54 = vmul.f32 %v6493_v20, %v1832_v16  ;;  %v1868_v55 = vmul.f32 %v6506_v38, %v1834_v25  ;;  %v1867_v57 = vmul.f32 %v6498_v27, %v1833_v26 }
 0xaa9   :  { %v1861_v56 = vmul.f32 %v6489_v18, %v1827_v12  ;;  %v1862_v58 = vmul.f32 %v6493_v20, %v1828_v21  ;;  %v1864_v52 = vmul.f32 %v6506_v38, %v1830_v22  ;;  %v1863_v61 = vmul.f32 %v6498_v27, %v1829_v29 }
 0xaaa   :  { %v1885_v32 = vadd.f32 %v1870_v47, %v1865_v31  ;;  %v1886_v48 = vadd.f32 %v1872_v4, %v1866_v54  ;;  %v1888_v60 = vadd.f32 %v1876_v28, %v1868_v55  ;;  %v1887_v34 = vadd.f32 %v1874_v53, %v1867_v57 }
 0xaab   :  { %v1881_v35 = vadd.f32 %v1870_v47, %v1861_v56  ;;  %v1882_v41 = vadd.f32 %v1872_v4, %v1862_v58  ;;  %v1884_v3 = vadd.f32 %v1876_v28, %v1864_v52  ;;  %v1883_v42 = vadd.f32 %v1874_v53, %v1863_v61  ;;  %v99_v47 = vld [vmem:[%s7198_s3 + $0x30] sm:$0xff]  ;;  %v100_v4 = vld [vmem:[%s7198_s3 + $0x38] sm:$0xff] }
 0xaac   :  { %v1918_v43 = vcombine.low %v1885_v32, %v1886_v48  ;;  %v1919_v44 = vcombine.low %v1887_v34, %v1888_v60  ;;  %v5763_v9 = vpack.c.bf16 %v100_v4, %v99_v47 }
 0xaad   :  { %v1901_v49 = vcombine.low %v1881_v35, %v1882_v41  ;;  %v1902_v51 = vcombine.low %v1883_v42, %v1884_v3 }
 0xaae   :  { %v1926_v62 = vrot.slane %v1918_v43, %v6221_v30  ;;  %v1933_v0 = vrot.slane %v1919_v44, %v6221_v30  ;;  %5764 = vmatprep.subr.bf16.mxu0 %v5763_v9 }
 0xaaf   :  { %v1909_v50 = vrot.slane %v1901_v49, %v6221_v30  ;;  %v1916_v1 = vrot.slane %v1902_v51, %v6221_v30  ;;  %5766 = vmatpush3.bf16.msra.mxu0 %v5763_v9 }
 0xab0   :  { %v1934_v8 = vcombine.low %v1926_v62, %v1933_v0 }
 0xab1   :  { %v1917_v63 = vcombine.low %v1909_v50, %v1916_v1 }
 0xab3   :  { %5537 = vmatprep.mubr.msk.f32.mxu1 %vm156_vm0, %v1917_v63 }
 0xab4   :  { %5538 = vmatmul.mubr.msk.f32.vlgmr.msra.gmra.mrb[12].mxu1 %vm156_vm0, %v1934_v8 }
 0xb87   :  { %v5539_v39 = vpop.f32.mrb[12].mxu1 }
 0xb88   :  { %v2011_v10 = vadd.f32 %v5539_v39, %v6544_v45  ;;  %v2005_v13 = vpop.f32.mrb[13].mxu1 }
 0xb89   :  { %v2006_v14 = vadd.f32 %v2005_v13, %v6544_v45 }
 0xb8a   :  { %v2015_v23 = vmax.f32 %v2011_v10, 0.0 }
 0xb8b   :  { %v2014_v15 = vmax.f32 %v2006_v14, 0.0 }
 0xb8d   :  { %5556 = vmatprep.mubr.msk.f32.mxu0 %vm2020_vm6, %v2014_v15 }
 0xb8e   :  { %5557 = vmatmul.mubr.msk.f32.vlgmr.msra.gmra.mrb[10].mxu0 %vm2020_vm6, %v2015_v23 }
 0xc61   :  { %v5558_v6 = vpop.f32.mrb[10].mxu0 }
 0xc62   :  { %v2099_v7 = vadd.f32 %v5558_v6, %v2018_v24  ;;  %v2093_v16 = vpop.f32.mrb[11].mxu0 }
 0xc63   :  { %v2094_v25 = vadd.f32 %v2093_v16, %v2018_v24 }
 0xc64   :  { %v2121_v26 = vcombine.high %v2099_v7, %v2099_v7  ;;  %v2128_v12 = vrot.slane %v2099_v7, %v6221_v30 }
 0xc65   :  { %v2104_v21 = vcombine.high %v2094_v25, %v2094_v25  ;;  %v2111_v22 = vrot.slane %v2094_v25, %v6221_v30 }
 0xc66   :  { %v2135_v45 = vrot.slane %v2121_v26, %v6221_v30  ;;  %v2136_v28 = vcombine.high %v2128_v12, %v2128_v12  ;;  %v2150_v54 = vadd.f32 %v2128_v12, %v1885_v32 }
 0xc67   :  { %v2118_v29 = vrot.slane %v2104_v21, %v6221_v30  ;;  %v2119_v53 = vcombine.high %v2111_v22, %v2111_v22  ;;  %v2146_v56 = vadd.f32 %v2111_v22, %v1881_v35 }
 0xc68   :  { %v2137_v31 = vcombine.high %v2135_v45, %v2135_v45  ;;  %v2151_v55 = vadd.f32 %v2136_v28, %v1886_v48  ;;  %v2152_v52 = vadd.f32 %v2135_v45, %v1887_v34 }
 0xc69   :  { %v2120_v57 = vcombine.high %v2118_v29, %v2118_v29  ;;  %v2147_v58 = vadd.f32 %v2119_v53, %v1882_v41  ;;  %v2148_v44 = vadd.f32 %v2118_v29, %v1883_v42 }
 0xc6a   :  { %v2153_v61 = vadd.f32 %v2137_v31, %v1888_v60  ;;  %v2179_v43 = vcombine.low %v2150_v54, %v2151_v55 }
 0xc6b   :  { %v2149_v49 = vadd.f32 %v2120_v57, %v1884_v3  ;;  %v2162_v51 = vcombine.low %v2146_v56, %v2147_v58 }
 0xc6c   :  { %v2180_v62 = vcombine.low %v2152_v52, %v2153_v61  ;;  %v2187_v50 = vrot.slane %v2179_v43, %v6221_v30 }
 0xc6d   :  { %v2163_v0 = vcombine.low %v2148_v44, %v2149_v49  ;;  %v2170_v63 = vrot.slane %v2162_v51, %v6221_v30 }
 0xc6e   :  { %v2194_v1 = vrot.slane %v2180_v62, %v6221_v30  ;;  %v6651_v62 = vld [vmem:[%s7197_s2 + $0x40] sm:$0xff] }
 0xc6f   :  { %v2177_v32 = vrot.slane %v2163_v0, %v6221_v30  ;;  %v6656_v0 = vld [vmem:[%s7197_s2 + $0x50] sm:$0xff] }
 0xc70   :  { %v2195_v48 = vcombine.low %v2187_v50, %v2194_v1  ;;  %v5767_v50 = vpack.c.bf16 %v6656_v0, %v6651_v62 }
 0xc71   :  { %v2178_v8 = vcombine.low %v2170_v63, %v2177_v32 }
 0xc72   :  { %v2201_v35 = vsel %vm156_vm0, %v2195_v48, 0.0  ;;  %5768 = vmatprep.subr.bf16.mxu1 %v5767_v50 }
 0xc73   :  { %2202 = vadd.xlane.f32.xlu1 %v2201_v35  ;;  %v2198_v60 = vsel %vm156_vm0, %v2178_v8, 0.0  ;;  %5770 = vmatpush3.bf16.msra.mxu1 %v5767_v50  ;;  %v6051_v50 = vld [vmem:[%s7196_s1 + $0xc] sm:$0x3] }
 0xc74   :  { %2199 = vadd.xlane.f32.xlu0 %v2198_v60 }
 0xc84   :  { %2418 = vrot.lane.b32.xlu1 %v6489_v18, %s6084_s15 }
 0xc88   :  { %2422 = vrot.lane.b32.xlu1 %v6498_v27, %s6084_s15 }
 0xc8a   :  { %2420 = vrot.lane.b32.xlu0 %v6493_v20, %s6084_s15 }
 0xc8c   :  { %2424 = vrot.lane.b32.xlu1 %v6506_v38, %s6084_s15 }
 0xc90   :  { %2440 = vrot.lane.b32.xlu1 %v6493_v20, %s6091_s21 }
 0xc94   :  { %2444 = vrot.lane.b32.xlu1 %v6506_v38, %s6091_s21 }
 0xd00   :  { %v2203_v34 = vpop.xlane.xlu1 %2202 }
 0xd01   :  { %v2205_v41 = vmul.f32 0.03125, %v2203_v34  ;;  %v2200_v3 = vpop.xlane.xlu0 %2199 }
 0xd02   :  { %v2204_v42 = vmul.f32 0.03125, %v2200_v3 }
 0xd03   :  { %v2242_v47 = vrot.slane %v2205_v41, %v6427_v17  ;;  %v2249_v4 = vrot.slane %v2205_v41, %v6430_v33  ;;  %v2256_v9 = vrot.slane %v2205_v41, %v6433_v5  ;;  %v2263_v39 = vrot.slane %v2205_v41, %v6436_v2 }
 0xd04   :  { %v2214_v10 = vrot.slane %v2204_v42, %v6427_v17  ;;  %v2221_v13 = vrot.slane %v2204_v42, %v6430_v33  ;;  %v2228_v20 = vrot.slane %v2204_v42, %v6433_v5  ;;  %v2235_v38 = vrot.slane %v2204_v42, %v6436_v2  ;;  %v2419_v32 = vpop.permute.xlu1 %2418 }
 0xd05   :  { %v2276_v14 = vsub.f32 %v2150_v54, %v2242_v47  ;;  %v6618_v15 = vsub.f32 %v2151_v55, %v2249_v4  ;;  %v2278_v23 = vsub.f32 %v2152_v52, %v2256_v9  ;;  %v2279_v24 = vsub.f32 %v2153_v61, %v2263_v39  ;;  %v2421_v63 = vpop.permute.xlu0 %2420 }
 0xd06   :  { %v6620_v6 = vsub.f32 %v2146_v56, %v2214_v10  ;;  %v6622_v7 = vsub.f32 %v2147_v58, %v2221_v13  ;;  %v6624_v16 = vsub.f32 %v2148_v44, %v2228_v20  ;;  %v6626_v25 = vsub.f32 %v2149_v49, %v2235_v38 }
 0xd07   :  { %v2284_v26 = vmul.f32 %v2276_v14, %v2276_v14  ;;  %v2285_v12 = vmul.f32 %v6618_v15, %v6618_v15  ;;  %v2286_v21 = vmul.f32 %v2278_v23, %v2278_v23  ;;  %v2287_v22 = vmul.f32 %v2279_v24, %v2279_v24 }
 0xd08   :  { %v2280_v45 = vmul.f32 %v6620_v6, %v6620_v6  ;;  %v2281_v28 = vmul.f32 %v6622_v7, %v6622_v7  ;;  %v2282_v29 = vmul.f32 %v6624_v16, %v6624_v16  ;;  %v2283_v53 = vmul.f32 %v6626_v25, %v6626_v25  ;;  %v2423_v35 = vpop.permute.xlu1 %2422 }
 0xd09   :  { %v2313_v31 = vcombine.low %v2284_v26, %v2285_v12  ;;  %v2314_v54 = vcombine.low %v2286_v21, %v2287_v22 }
 0xd0a   :  { %v2296_v55 = vcombine.low %v2280_v45, %v2281_v28  ;;  %v2297_v57 = vcombine.low %v2282_v29, %v2283_v53 }
 0xd0b   :  { %v2321_v56 = vrot.slane %v2313_v31, %v6221_v30  ;;  %v2328_v58 = vrot.slane %v2314_v54, %v6221_v30 }
 0xd0c   :  { %v2304_v52 = vrot.slane %v2296_v55, %v6221_v30  ;;  %v2311_v61 = vrot.slane %v2297_v57, %v6221_v30  ;;  %v2425_v42 = vpop.permute.xlu1 %2424 }
 0xd0d   :  { %v2329_v43 = vcombine.low %v2321_v56, %v2328_v58 }
 0xd0e   :  { %v2312_v49 = vcombine.low %v2304_v52, %v2311_v61 }
 0xd0f   :  { %v2335_v44 = vsel %vm156_vm0, %v2329_v43, 0.0 }
 0xd10   :  { %2336 = vadd.xlane.f32.xlu0 %v2335_v44  ;;  %v2332_v51 = vsel %vm156_vm0, %v2312_v49, 0.0  ;;  %v2441_v4 = vpop.permute.xlu1 %2440 }
 0xd14   :  { %2333 = vadd.xlane.f32.xlu0 %v2332_v51  ;;  %v2445_v54 = vpop.permute.xlu1 %2444 }
 0xd2a   :  { %2438 = vrot.lane.b32.xlu0 %v6489_v18, %s6091_s21  ;;  %v6663_v18 = vld [vmem:[%s7197_s2 + $0x60] sm:$0xff] }
 0xd2e   :  { %2442 = vrot.lane.b32.xlu0 %v6498_v27, %s6091_s21  ;;  %v6668_v27 = vld [vmem:[%s7197_s2 + $0x70] sm:$0xff] }
 0xd2f   :  { %v5771_v1 = vpack.c.bf16 %v6668_v27, %v6663_v18 }
 0xd31   :  { %5772 = vmatprep.subr.bf16.mxu1 %v5771_v1 }
 0xd32   :  { %5774 = vmatpush3.bf16.msra.mxu1 %v5771_v1 }
 0xd9d   :  { %v2337_v48 = vpop.xlane.xlu0 %2336 }
 0xd9e   :  { %v2339_v8 = vmul.f32 0.03125, %v2337_v48  ;;  %v6052_v48 = vld [vmem:[%s7196_s1 + $0xa] sm:$0x3] }
 0xda0   :  { %v2341_v60 = vadd.f32 1e-05, %v2339_v8 }
 0xda1   :  { %v2334_v34 = vpop.xlane.xlu0 %2333 }
 0xda2   :  { %6002 = vrsqrt.f32 %v2341_v60  ;;  %v2338_v41 = vmul.f32 0.03125, %v2334_v34 }
 0xda4   :  { %v2340_v3 = vadd.f32 1e-05, %v2338_v41 }
 0xda5   :  { %v2439_v47 = vpop.permute.xlu0 %2438 }
 0xda6   :  { %6004 = vrsqrt.f32 %v2340_v3 }
 0xda9   :  { %v2443_v45 = vpop.permute.xlu0 %2442 }
 0xdac   :  { %v6003_v9 = vpop.eup %6002 }
 0xdad   :  { %v2380_v39 = vrot.slane %v6003_v9, %v6427_v17  ;;  %v2394_v10 = vrot.slane %v6003_v9, %v6433_v5  ;;  %v2401_v13 = vrot.slane %v6003_v9, %v6436_v2  ;;  %v2387_v20 = vrot.slane %v6003_v9, %v6430_v33  ;;  %v6055_v9 = vld [vmem:[%s7196_s1 + $0x4] sm:$0x3] }
 0xdaf   :  { %v2414_v38 = vmul.f32 %v2380_v39, %v2276_v14  ;;  %v2416_v26 = vmul.f32 %v2394_v10, %v2278_v23  ;;  %v2417_v12 = vmul.f32 %v2401_v13, %v2279_v24  ;;  %v2415_v21 = vmul.f32 %v2387_v20, %v6618_v15 }
 0xdb0   :  { %v6005_v22 = vpop.eup %6004 }
 0xdb1   :  { %v2352_v28 = vrot.slane %v6005_v22, %v6427_v17  ;;  %v2434_v29 = vmul.f32 %v2419_v32, %v2414_v38  ;;  %v2366_v53 = vrot.slane %v6005_v22, %v6433_v5  ;;  %v2436_v31 = vmul.f32 %v2423_v35, %v2416_v26  ;;  %v6057_v38 = vld [vmem:[%s7196_s1 + $0x6] sm:$0x3] }
 0xdb2   :  { %v2373_v55 = vrot.slane %v6005_v22, %v6436_v2  ;;  %v2437_v57 = vmul.f32 %v2425_v42, %v2417_v12  ;;  %v2359_v56 = vrot.slane %v6005_v22, %v6430_v33  ;;  %v2435_v58 = vmul.f32 %v2421_v63, %v2415_v21 }
 0xdb3   :  { %v2410_v14 = vmul.f32 %v2352_v28, %v6620_v6  ;;  %v2412_v23 = vmul.f32 %v2366_v53, %v6624_v16  ;;  %v6683_v15 = vadd.f32 %v2439_v47, %v2434_v29  ;;  %v6685_v24 = vadd.f32 %v2443_v45, %v2436_v31  ;;  %v6050_v6 = vld [vmem:[%s7196_s1 + $0x8] sm:$0x3] }
 0xdb4   :  { %v2413_v52 = vmul.f32 %v2373_v55, %v6626_v25  ;;  %v2411_v61 = vmul.f32 %v2359_v56, %v6622_v7  ;;  %v6689_v43 = vadd.f32 %v2441_v4, %v2435_v58  ;;  %v6691_v44 = vadd.f32 %v2445_v54, %v2437_v57 }
 0xdb5   :  { %v2430_v49 = vmul.f32 %v2419_v32, %v2410_v14  ;;  %v2432_v51 = vmul.f32 %v2423_v35, %v2412_v23  ;;  %v2482_v16 = vadd.f32 %v6050_v6, %v6683_v15  ;;  %v2484_v25 = vadd.f32 %v6051_v50, %v6685_v24  ;;  %v6053_v35 = vld [vmem:[%s7196_s1 + $0xe] sm:$0x3] }
 0xdb6   :  { %v2433_v1 = vmul.f32 %v2425_v42, %v2413_v52  ;;  %v2431_v7 = vmul.f32 %v2421_v63, %v2411_v61  ;;  %v2483_v32 = vadd.f32 %v6052_v48, %v6689_v43  ;;  %v2485_v60 = vadd.f32 %v6053_v35, %v6691_v44  ;;  %v6054_v63 = vld [vmem:[%s7196_s1] sm:$0x3]  ;;  %v6752_v61 = vld [vmem:[%s7199_s4 + $0x8] sm:$0xff] }
 0xdb7   :  { %v6705_v8 = vadd.f32 %v2439_v47, %v2430_v49  ;;  %v6711_v34 = vadd.f32 %v2443_v45, %v2432_v51  ;;  %v5926_v58 = vpack.i.bf16 %v6656_v0, %v6651_v62  ;;  %v6757_v51 = vrot.slane %v6752_v61, %v112_v46 }
 0xdb8   :  { %v6713_v41 = vadd.f32 %v2441_v4, %v2431_v7  ;;  %v6715_v3 = vadd.f32 %v2445_v54, %v2433_v1  ;;  %v2515_v47 = vcombine.low %v2482_v16, %v2483_v32  ;;  %v2516_v10 = vcombine.low %v2484_v25, %v2485_v60  ;;  %v6056_v4 = vld [vmem:[%s7196_s1 + $0x2] sm:$0x3] }
 0xdb9   :  { %v2478_v42 = vadd.f32 %v6054_v63, %v6705_v8  ;;  %v2480_v39 = vadd.f32 %v6055_v9, %v6711_v34  ;;  %5927 = vrot.lane.b32.xlu1 %v5926_v58, %s6084_s15  ;;  %v5931_v46 = vpack.i.bf16 %v6668_v27, %v6663_v18  ;;  %v2636_v35 = vcombine.low %v6683_v15, %v6689_v43 }
 0xdba   :  { %v2479_v13 = vadd.f32 %v6056_v4, %v6713_v41  ;;  %v2619_v20 = vcombine.low %v6705_v8, %v6713_v41  ;;  %v2481_v26 = vadd.f32 %v6057_v38, %v6715_v3  ;;  %v2620_v12 = vcombine.low %v6711_v34, %v6715_v3 }
 0xdbb   :  { %v2523_v45 = vrot.slane %v2515_v47, %v6221_v30  ;;  %v2530_v28 = vrot.slane %v2516_v10, %v6221_v30  ;;  %v2637_v60 = vcombine.low %v6685_v24, %v6691_v44 }
 0xdbc   :  { %v2498_v21 = vcombine.low %v2478_v42, %v2479_v13  ;;  %v2499_v22 = vcombine.low %v2480_v39, %v2481_v26  ;;  %v2627_v29 = vrot.slane %v2619_v20, %v6221_v30  ;;  %v2634_v53 = vrot.slane %v2620_v12, %v6221_v30 }
 0xdbd   :  { %v2531_v57 = vcombine.low %v2523_v45, %v2530_v28  ;;  %v2644_v39 = vrot.slane %v2636_v35, %v6221_v30  ;;  %v2651_v10 = vrot.slane %v2637_v60, %v6221_v30 }
 0xdbe   :  { %v2506_v31 = vrot.slane %v2498_v21, %v6221_v30  ;;  %v2513_v54 = vrot.slane %v2499_v22, %v6221_v30  ;;  %v2635_v56 = vcombine.low %v2627_v29, %v2634_v53 }
 0xdbf   :  { %v2652_v13 = vcombine.low %v2644_v39, %v2651_v10 }
 0xdc0   :  { %v2514_v55 = vcombine.low %v2506_v31, %v2513_v54 }
 0xdc2   :  { %5567 = vmatprep.mubr.msk.f32.mxu1 %vm156_vm0, %v2514_v55 }
 0xdc3   :  { %5568 = vmatmul.mubr.msk.f32.vlgmr.msra.gmra.mrb[14].mxu1 %vm156_vm0, %v2531_v57 }
 0xdc4   :  { %5578 = vmatprep.mubr.msk.f32.mxu1 %vm156_vm0, %v2635_v56 }
 0xe2b   :  { %v5928_v14 = vpop.permute.xlu1 %5927 }
 0xe2c   :  { %v5930_v23 = vunpack.i.h.bf16 %v5928_v14  ;;  %v5929_v52 = vunpack.i.l.bf16 %v5928_v14 }
 0xe2e   :  { %v5775_v49 = vpack.c.bf16 %v5930_v23, %v5929_v52 }
 0xe30   :  { %5776 = vmatprep.subr.bf16.mxu1 %v5775_v49 }
 0xe31   :  { %5778 = vmatpush3.bf16.msra.mxu1 %v5775_v49 }
 0xe96   :  { %v5569_v6 = vpop.f32.mrb[14].mxu1 }
 0xe97   :  { %v6760_v16 = vadd.f32 %v5569_v6, %v6757_v51  ;;  %v2602_v50 = vpop.f32.mrb[15].mxu1 }
 0xe98   :  { %v6763_v25 = vadd.f32 %v2602_v50, %v6757_v51 }
 0xe9a   :  { %5585 = vmatprep.mubr.msk.f32.mxu0 %vm383_vm1, %v6763_v25  ;;  %v6769_v1 = vpack.i.bf16 %v6760_v16, %v6763_v25 }
 0xe9c   :  { %5922 = vrot.lane.b32.xlu0 %v6769_v1, %s6083_s14 }
 0xea0   :  { %5932 = vrot.lane.b32.xlu0 %v5931_v46, %s6084_s15 }
 0xf0e   :  { %v5923_v7 = vpop.permute.xlu0 %5922 }
 0xf0f   :  { %v5925_v48 = vunpack.i.h.bf16 %v5923_v7  ;;  %v5924_v32 = vunpack.i.l.bf16 %v5923_v7 }
 0xf11   :  { %v5783_v63 = vpack.c.bf16 %v5925_v48, %v5924_v32 }
 0xf12   :  { %v5933_v42 = vpop.permute.xlu0 %5932 }
 0xf13   :  { %v5935_v47 = vunpack.i.h.bf16 %v5933_v42  ;;  %v5934_v9 = vunpack.i.l.bf16 %v5933_v42  ;;  %5785 = vmatprep.subr.msk.bf16.mxu0 %vm6275_vm2, %v5783_v63 }
 0xf14   :  { %5788 = vmatpush3.bf16.xpose.msk.msra.mxu0 %vm6275_vm2, %v5783_v63 }
 0xf15   :  { %v5779_v4 = vpack.c.bf16 %v5935_v47, %v5934_v9 }
 0xf17   :  { %5780 = vmatprep.subr.bf16.mxu1 %v5779_v4 }
 0xf18   :  { %5782 = vmatpush3.bf16.msra.mxu1 %v5779_v4 }
 0xf1b   :  { %5579 = vmatmul.mubr.msk.f32.vlgmr.msra.gmra.mrb[16].mxu1 %vm156_vm0, %v2652_v13  ;;  %5586 = vmatmul.mubr.msk.f32.vlgmr.msra.gmra.mrb[12].mxu0 %vm383_vm1, %v6760_v16 }
 0xfee   :  { %v5580_v20 = vpop.f32.mrb[16].mxu1  ;;  %v5587_v38 = vpop.f32.mrb[12].mxu0 }
 0xfef   :  { %v2838_v26 = vadd.f32 %v5587_v38, %v6302_v36  ;;  %v2743_v12 = vpop.f32.mrb[17].mxu1  ;;  %v2832_v21 = vpop.f32.mrb[13].mxu0 }
 0xff0   :  { %v2833_v22 = vadd.f32 %v2832_v21, %v6304_v37 }
 0xff1   :  { %v2844_v45 = vsel %vm467_vm5, %v2838_v26, -inf }
 0xff2   :  { %2845 = vmax.xlane.f32.xlu0 %v2844_v45  ;;  %v2841_v28 = vsel %vm467_vm5, %v2833_v22, -inf }
 0xff3   :  { %2842 = vmax.xlane.f32.xlu1 %v2841_v28 }
0x107f   :  { %v2846_v29 = vpop.xlane.xlu0 %2845 }
0x1080   :  { %v2848_v53 = vsub.f32 %v2838_v26, %v2846_v29  ;;  %v2843_v31 = vpop.xlane.xlu1 %2842 }
0x1081   :  { %v2847_v54 = vsub.f32 %v2833_v22, %v2843_v31 }
0x1082   :  { %v2851_v55 = vmul.f32 1.442695, %v2848_v53 }
0x1083   :  { %v2849_v57 = vmul.f32 1.442695, %v2847_v54 }
0x1084   :  { %6006 = vpow2.f32 %v2851_v55 }
0x1085   :  { %6008 = vpow2.f32 %v2849_v57 }
0x108e   :  { %v6007_v56 = vpop.eup %6006 }
0x108f   :  { %v6009_v58 = vpop.eup %6008  ;;  %v2856_v14 = vsel %vm467_vm5, %v6007_v56, 0.0 }
0x1090   :  { %2857 = vadd.xlane.f32.xlu1 %v2856_v14  ;;  %v2853_v23 = vsel %vm467_vm5, %v6009_v58, 0.0 }
0x1091   :  { %2854 = vadd.xlane.f32.xlu0 %v2853_v23 }
0x10a1   :  { %5937 = vrot.lane.b32.xlu1 %v6769_v1, %s6086_s16 }
0x10a5   :  { %2944 = vrot.lane.b32.xlu1 %v6763_v25, %s6087_s17 }
0x10a7   :  { %2670 = vrot.lane.b32.xlu0 %v6757_v51, %s6084_s15 }
0x10a9   :  { %5942 = vrot.lane.b32.xlu1 %v6769_v1, %s6088_s18 }
0x10ab   :  { %2946 = vrot.lane.b32.xlu0 %v6760_v16, %s6087_s17 }
0x10ad   :  { %3316 = vrot.lane.b32.xlu1 %v6760_v16, %s6089_s19 }
0x10af   :  { %3314 = vrot.lane.b32.xlu0 %v6763_v25, %s6089_s19 }
0x111d   :  { %v2858_v52 = vpop.xlane.xlu1 %2857 }
0x111e   :  { %6010 = vrcp.f32 %v2858_v52  ;;  %v2855_v49 = vpop.xlane.xlu0 %2854 }
0x111f   :  { %6012 = vrcp.f32 %v2855_v49 }
0x1121   :  { %v5938_v6 = vpop.permute.xlu1 %5937 }
0x1122   :  { %v2671_v50 = vpop.permute.xlu0 %2670  ;;  %v5940_v46 = vunpack.i.h.bf16 %v5938_v6  ;;  %v5939_v7 = vunpack.i.l.bf16 %v5938_v6 }
0x1123   :  { %v2744_v48 = vadd.f32 %v2743_v12, %v2671_v50  ;;  %v2749_v32 = vadd.f32 %v5580_v20, %v2671_v50 }
0x1124   :  { %v5793_v42 = vpack.c.bf16 %v5940_v46, %v5939_v7 }
0x1125   :  { %v2945_v35 = vpop.permute.xlu1 %2944  ;;  %v5789_v60 = vpack.c.bf16 %v2749_v32, %v2744_v48  ;;  %v6809_v63 = vpack.i.bf16 %v2749_v32, %v2744_v48 }
0x1126   :  { %v2947_v26 = vpop.permute.xlu0 %2946 }
0x1127   :  { %5790 = vmatprep.subr.bf16.mxu1 %v5789_v60 }
0x1128   :  { %v6011_v47 = vpop.eup %6010  ;;  %5792 = vmatpush3.bf16.msra.mxu1 %v5789_v60 }
0x1129   :  { %v6013_v9 = vpop.eup %6012  ;;  %v5943_v39 = vpop.permute.xlu1 %5942  ;;  %5795 = vmatprep.subr.msk.bf16.mxu1 %vm6275_vm2, %v5793_v42  ;;  %v2862_v4 = vmul.f32 %v6011_v47, %v6007_v56 }
0x112a   :  { %v2861_v10 = vmul.f32 %v6013_v9, %v6009_v58  ;;  %v5945_v13 = vunpack.i.h.bf16 %v5943_v39  ;;  %v5944_v38 = vunpack.i.l.bf16 %v5943_v39  ;;  %v3315_v12 = vpop.permute.xlu0 %3314 }
0x112c   :  { %5592 = vmatprep.mubr.msk.f32.mxu1 %vm467_vm5, %v2861_v10  ;;  %v5803_v20 = vpack.c.bf16 %v5945_v13, %v5944_v38 }
0x112d   :  { %5593 = vmatmul.mubr.msk.f32.vlgmr.msra.gmra.mrb[18].mxu1 %vm467_vm5, %v2862_v4  ;;  %v3317_v21 = vpop.permute.xlu1 %3316 }
0x112e   :  { %5599 = vmatprep.mubr.msk.f32.mxu1 %vm383_vm1, %v2945_v35 }
0x1131   :  { %5798 = vmatpush3.bf16.xpose.msk.msra.mxu1 %vm6275_vm2, %v5793_v42 }
0x1132   :  { %5805 = vmatprep.subr.msk.bf16.mxu1 %vm6275_vm2, %v5803_v20 }
0x1138   :  { %5600 = vmatmul.mubr.msk.f32.vlgmr.msra.gmra.mrb[20].mxu1 %vm383_vm1, %v2947_v26 }
0x1139   :  { %5808 = vmatpush3.bf16.xpose.msk.msra.mxu1 %vm6275_vm2, %v5803_v20  ;;  %5623 = vmatprep.mubr.msk.f32.mxu1 %vm383_vm1, %v3315_v12 }
0x1140   :  { %5624 = vmatmul.mubr.msk.f32.vlgmr.msra.gmra.mrb[22].mxu1 %vm383_vm1, %v3317_v21 }
0x1200   :  { %v6825_v22 = vpop.f32.mrb[18].mxu1 }
0x1201   :  { %v6827_v45 = vpop.f32.mrb[19].mxu1 }
0x120b   :  { %v5601_v28 = vpop.f32.mrb[20].mxu1 }
0x120c   :  { %v3032_v29 = vadd.f32 %v5601_v28, %v6302_v36  ;;  %v3026_v53 = vpop.f32.mrb[21].mxu1 }
0x120d   :  { %v3027_v31 = vadd.f32 %v3026_v53, %v6304_v37 }
0x120e   :  { %v3038_v54 = vsel %vm467_vm5, %v3032_v29, -inf }
0x120f   :  { %3039 = vmax.xlane.f32.xlu1 %v3038_v54  ;;  %v3035_v55 = vsel %vm467_vm5, %v3027_v31, -inf }
0x1210   :  { %3036 = vmax.xlane.f32.xlu0 %v3035_v55 }
0x1213   :  { %v5625_v57 = vpop.f32.mrb[22].mxu1 }
0x1214   :  { %v3396_v56 = vpop.f32.mrb[23].mxu1  ;;  %v3402_v58 = vadd.f32 %v5625_v57, %v6302_v36 }
0x1215   :  { %v3397_v13 = vadd.f32 %v3396_v56, %v6304_v37 }
0x1216   :  { %v3408_v14 = vsel %vm467_vm5, %v3402_v58, -inf }
0x1217   :  { %v3405_v38 = vsel %vm467_vm5, %v3397_v13, -inf }
0x1220   :  { %5947 = vrot.lane.b32.xlu1 %v6809_v63, %s6087_s17 }
0x1224   :  { %3600 = vrot.lane.b32.xlu1 %v6763_v25, %s6090_s20 }
0x1228   :  { %3602 = vrot.lane.b32.xlu1 %v6760_v16, %s6090_s20 }
0x124c   :  { %3409 = vmax.xlane.f32.xlu1 %v3408_v14 }
0x125d   :  { %3146 = vrot.lane.b32.xlu1 %v6656_v0, %s6091_s21 }
0x1261   :  { %5957 = vrot.lane.b32.xlu1 %v6809_v63, %s6089_s19 }
0x129c   :  { %v3040_v23 = vpop.xlane.xlu1 %3039 }
0x129d   :  { %v3042_v52 = vsub.f32 %v3032_v29, %v3040_v23  ;;  %v3037_v49 = vpop.xlane.xlu0 %3036 }
0x129e   :  { %v3041_v6 = vsub.f32 %v3027_v31, %v3037_v49 }
0x129f   :  { %v3045_v50 = vmul.f32 1.442695, %v3042_v52 }
0x12a0   :  { %v3043_v25 = vmul.f32 1.442695, %v3041_v6  ;;  %v5948_v46 = vpop.permute.xlu1 %5947 }
0x12a1   :  { %v5950_v7 = vunpack.i.h.bf16 %v5948_v46  ;;  %v5949_v16 = vunpack.i.l.bf16 %v5948_v46 }
0x12a2   :  { %6014 = vpow2.f32 %v3043_v25 }
0x12a3   :  { %v5799_v48 = vpack.c.bf16 %v5950_v7, %v5949_v16  ;;  %6016 = vpow2.f32 %v3045_v50 }
0x12a4   :  { %v3601_v32 = vpop.permute.xlu1 %3600 }
0x12a5   :  { %5800 = vmatprep.subr.bf16.mxu0 %v5799_v48  ;;  %5642 = vmatprep.mubr.msk.f32.mxu1 %vm383_vm1, %v3601_v32 }
0x12a6   :  { %5802 = vmatpush3.bf16.msra.mxu0 %v5799_v48 }
0x12a8   :  { %v3603_v47 = vpop.permute.xlu1 %3602 }
0x12ac   :  { %v6015_v0 = vpop.eup %6014 }
0x12ad   :  { %v3047_v35 = vsel %vm467_vm5, %v6015_v0, 0.0  ;;  %v6017_v60 = vpop.eup %6016 }
0x12ae   :  { %3048 = vadd.xlane.f32.xlu0 %v3047_v35  ;;  %v3050_v42 = vsel %vm467_vm5, %v6017_v60, 0.0 }
0x12b2   :  { %3051 = vadd.xlane.f32.xlu0 %v3050_v42 }
0x12c8   :  { %5952 = vrot.lane.b32.xlu0 %v6769_v1, %s6092_s22 }
0x12d9   :  { %v3410_v9 = vpop.xlane.xlu1 %3409 }
0x12da   :  { %v3412_v39 = vsub.f32 %v3402_v58, %v3410_v9 }
0x12dc   :  { %v3415_v10 = vmul.f32 1.442695, %v3412_v39 }
0x12dd   :  { %v3147_v4 = vpop.permute.xlu1 %3146 }
0x12de   :  { %6018 = vpow2.f32 %v3415_v10  ;;  %5609 = vmatprep.subr.mxu0 %v3147_v4 }
0x12e1   :  { %v5958_v50 = vpop.permute.xlu1 %5957 }
0x12e2   :  { %v5960_v25 = vunpack.i.h.bf16 %v5958_v50  ;;  %v5959_v46 = vunpack.i.l.bf16 %v5958_v50 }
0x12e4   :  { %v5809_v48 = vpack.c.bf16 %v5960_v25, %v5959_v46 }
0x12e7   :  { %3406 = vmax.xlane.f32.xlu0 %v3405_v38 }
0x12e8   :  { %v6019_v20 = vpop.eup %6018 }
0x12e9   :  { %v3420_v26 = vsel %vm467_vm5, %v6019_v20, 0.0 }
0x12eb   :  { %3421 = vadd.xlane.f32.xlu0 %v3420_v26 }
0x133b   :  { %v3049_v12 = vpop.xlane.xlu0 %3048 }
0x133c   :  { %6020 = vrcp.f32 %v3049_v12 }
0x133f   :  { %v3052_v21 = vpop.xlane.xlu0 %3051 }
0x1340   :  { %6022 = vrcp.f32 %v3052_v21 }
0x1343   :  { %v5953_v1 = vpop.permute.xlu0 %5952 }
0x1344   :  { %v5955_v28 = vunpack.i.h.bf16 %v5953_v1  ;;  %v5954_v29 = vunpack.i.l.bf16 %v5953_v1 }
0x1346   :  { %v6021_v53 = vpop.eup %6020  ;;  %v5813_v31 = vpack.c.bf16 %v5955_v28, %v5954_v29 }
0x1347   :  { %v3055_v54 = vmul.f32 %v6021_v53, %v6015_v0 }
0x1348   :  { %5815 = vmatprep.subr.msk.bf16.mxu1 %vm6275_vm2, %v5813_v31 }
0x1349   :  { %5606 = vmatprep.mubr.msk.f32.mxu0 %vm467_vm5, %v3055_v54  ;;  %5818 = vmatpush3.bf16.xpose.msk.msra.mxu1 %vm6275_vm2, %v5813_v31 }
0x134a   :  { %v6023_v55 = vpop.eup %6022 }
0x134b   :  { %v3056_v57 = vmul.f32 %v6023_v55, %v6017_v60 }
0x134d   :  { %5607 = vmatmul.mubr.msk.f32.vlgmr.msra.gmra.mrb[14].mxu0 %vm467_vm5, %v3056_v57 }
0x134e   :  { %5610 = vmatpush3.msra.mxu0 %v3147_v4 }
0x1350   :  { %5643 = vmatmul.mubr.msk.f32.vlgmr.msra.gmra.mrb[24].mxu1 %vm383_vm1, %v3603_v47 }
0x1374   :  { %v3407_v56 = vpop.xlane.xlu0 %3406 }
0x1375   :  { %v3411_v58 = vsub.f32 %v3397_v13, %v3407_v56 }
0x1377   :  { %v3413_v14 = vmul.f32 1.442695, %v3411_v58 }
0x1378   :  { %v3422_v59 = vpop.xlane.xlu0 %3421 }
0x1379   :  { %6024 = vpow2.f32 %v3413_v14 }
0x1383   :  { %v6025_v23 = vpop.eup %6024 }
0x1384   :  { %v3417_v52 = vsel %vm467_vm5, %v6025_v23, 0.0 }
0x1385   :  { %3418 = vadd.xlane.f32.xlu0 %v3417_v52 }
0x139b   :  { %3230 = vrot.lane.b32.xlu0 %v6651_v62, %s6091_s21 }
0x1412   :  { %v3419_v49 = vpop.xlane.xlu0 %3418 }
0x1413   :  { %6026 = vrcp.f32 %v3419_v49 }
0x1414   :  { %6028 = vrcp.f32 %v3422_v59 }
0x1416   :  { %v3231_v6 = vpop.permute.xlu0 %3230 }
0x1417   :  { %5614 = vmatprep.subr.mxu0 %v3231_v6 }
0x141d   :  { %v6027_v42 = vpop.eup %6026 }
0x141e   :  { %v6029_v9 = vpop.eup %6028  ;;  %v3425_v39 = vmul.f32 %v6027_v42, %v6025_v23 }
0x1420   :  { %v5608_v7 = vpop.f32.mrb[14].mxu0 }
0x1421   :  { %v3137_v16 = vpop.f32.mrb[15].mxu0 }
0x1422   :  { %5611 = vmatprep.mubr.msk.f32.mxu0 %vm383_vm1, %v3137_v16 }
0x1423   :  { %5612 = vmatmul.mubr.msk.f32.vlgmr.msra.gmra.mrb[16].mxu0 %vm383_vm1, %v5608_v7  ;;  %v5644_v32 = vpop.f32.mrb[24].mxu1 }
0x1424   :  { %5615 = vmatpush3.msra.mxu0 %v3231_v6  ;;  %v3688_v62 = vadd.f32 %v5644_v32, %v6302_v36  ;;  %5616 = vmatprep.mubr.msk.f32.mxu0 %vm383_vm1, %v6827_v45  ;;  %v3682_v0 = vpop.f32.mrb[25].mxu1  ;;  %v3426_v36 = vmul.f32 %v6029_v9, %v6019_v20 }
0x1425   :  { %5810 = vmatprep.subr.bf16.mxu0 %v5809_v48  ;;  %v3683_v35 = vadd.f32 %v3682_v0, %v6304_v37 }
0x1426   :  { %v3694_v60 = vsel %vm467_vm5, %v3688_v62, -inf }
0x1427   :  { %3695 = vmax.xlane.f32.xlu0 %v3694_v60  ;;  %v3691_v47 = vsel %vm467_vm5, %v3683_v35, -inf }
0x1428   :  { %3692 = vmax.xlane.f32.xlu1 %v3691_v47 }
0x142b   :  { %5617 = vmatmul.mubr.msk.f32.vlgmr.msra.gmra.mrb[16].mxu0 %vm383_vm1, %v6825_v22 }
0x142c   :  { %5812 = vmatpush3.bf16.msra.mxu0 %v5809_v48  ;;  %5630 = vmatprep.mubr.msk.f32.mxu0 %vm467_vm5, %v3425_v39 }
0x142f   :  { %5631 = vmatmul.mubr.msk.f32.vlgmr.msra.gmra.mrb[18].mxu0 %vm467_vm5, %v3426_v36 }
0x14b4   :  { %v3696_v45 = vpop.xlane.xlu0 %3695 }
0x14b5   :  { %v3698_v37 = vsub.f32 %v3688_v62, %v3696_v45  ;;  %v3693_v10 = vpop.xlane.xlu1 %3692 }
0x14b6   :  { %v3697_v4 = vsub.f32 %v3683_v35, %v3693_v10 }
0x14b7   :  { %v3701_v13 = vmul.f32 1.442695, %v3698_v37 }
0x14b8   :  { %v3699_v38 = vmul.f32 1.442695, %v3697_v4 }
0x14b9   :  { %6030 = vpow2.f32 %v3701_v13 }
0x14ba   :  { %6032 = vpow2.f32 %v3699_v38 }
0x14c3   :  { %v6031_v26 = vpop.eup %6030 }
0x14c4   :  { %v6033_v12 = vpop.eup %6032  ;;  %v3706_v21 = vsel %vm467_vm5, %v6031_v26, 0.0 }
0x14c5   :  { %3707 = vadd.xlane.f32.xlu1 %v3706_v21  ;;  %v3703_v22 = vsel %vm467_vm5, %v6033_v12, 0.0 }
0x14c6   :  { %3704 = vadd.xlane.f32.xlu0 %v3703_v22 }
0x14d6   :  { %5962 = vrot.lane.b32.xlu1 %v6809_v63, %s6090_s20 }
0x14da   :  { %3800 = vrot.lane.b32.xlu1 %v6668_v27, %s6091_s21 }
0x14dc   :  { %3514 = vrot.lane.b32.xlu0 %v6663_v18, %s6091_s21 }
0x14e0   :  { %3886 = vrot.lane.b32.xlu0 %v6757_v51, %s6091_s21 }
0x1502   :  { %v5632_v20 = vpop.f32.mrb[18].mxu0 }
0x1503   :  { %v3505_v1 = vpop.f32.mrb[19].mxu0 }
0x1504   :  { %5635 = vmatprep.mubr.msk.f32.mxu0 %vm383_vm1, %v3505_v1 }
0x1552   :  { %v3708_v28 = vpop.xlane.xlu1 %3707 }
0x1553   :  { %6034 = vrcp.f32 %v3708_v28  ;;  %v3705_v29 = vpop.xlane.xlu0 %3704 }
0x1554   :  { %6036 = vrcp.f32 %v3705_v29 }
0x1556   :  { %v5963_v53 = vpop.permute.xlu1 %5962 }
0x1557   :  { %v5965_v31 = vunpack.i.h.bf16 %v5963_v53  ;;  %v5964_v63 = vunpack.i.l.bf16 %v5963_v53  ;;  %v3515_v54 = vpop.permute.xlu0 %3514 }
0x1558   :  { %5633 = vmatprep.subr.mxu0 %v3515_v54 }
0x1559   :  { %v5819_v27 = vpack.c.bf16 %v5965_v31, %v5964_v63  ;;  %5634 = vmatpush3.msra.mxu0 %v3515_v54 }
0x155a   :  { %5636 = vmatmul.mubr.msk.f32.vlgmr.msra.gmra.mrb[16].mxu0 %vm383_vm1, %v5632_v20  ;;  %v3801_v18 = vpop.permute.xlu1 %3800 }
0x155b   :  { %5820 = vmatprep.subr.bf16.mxu0 %v5819_v27  ;;  %v3887_v23 = vpop.permute.xlu0 %3886 }
0x155c   :  { %5822 = vmatpush3.bf16.msra.mxu0 %v5819_v27 }
0x155d   :  { %v6035_v51 = vpop.eup %6034  ;;  %5652 = vmatprep.subr.mxu0 %v3801_v18 }
0x155e   :  { %v6037_v55 = vpop.eup %6036  ;;  %v3712_v56 = vmul.f32 %v6035_v51, %v6031_v26 }
0x155f   :  { %v3711_v57 = vmul.f32 %v6037_v55, %v6033_v12 }
0x1561   :  { %5649 = vmatprep.mubr.msk.f32.mxu0 %vm467_vm5, %v3711_v57 }
0x1562   :  { %5650 = vmatmul.mubr.msk.f32.vlgmr.msra.gmra.mrb[20].mxu0 %vm467_vm5, %v3712_v56 }
0x1563   :  { %5653 = vmatpush3.msra.mxu0 %v3801_v18 }
0x1635   :  { %v5651_v58 = vpop.f32.mrb[20].mxu0 }
0x1636   :  { %v3791_v14 = vpop.f32.mrb[21].mxu0 }
0x1637   :  { %5654 = vmatprep.mubr.msk.f32.mxu0 %vm383_vm1, %v3791_v14 }
0x1638   :  { %5655 = vmatmul.mubr.msk.f32.vlgmr.msra.gmra.mrb[16].mxu0 %vm383_vm1, %v5651_v58 }
0x170b   :  { %v5656_v52 = vpop.f32.mrb[16].mxu0 }
0x170c   :  { %v3890_v59 = vadd.f32 %v5656_v52, %v3887_v23  ;;  %v3875_v49 = vpop.f32.mrb[17].mxu0 }
0x170d   :  { %v3889_v6 = vadd.f32 %v3887_v23, %v3875_v49 }
0x170e   :  { %v3910_v50 = vcombine.high %v3890_v59, %v3890_v59  ;;  %v3917_v25 = vrot.slane %v3890_v59, %v6221_v30 }
0x170f   :  { %v3893_v46 = vcombine.high %v3889_v6, %v3889_v6  ;;  %v3900_v7 = vrot.slane %v3889_v6, %v6221_v30 }
0x1710   :  { %v3924_v16 = vrot.slane %v3910_v50, %v6221_v30  ;;  %v3925_v48 = vcombine.high %v3917_v25, %v3917_v25  ;;  %v3939_v35 = vadd.f32 %v3917_v25, %v6683_v15 }
0x1711   :  { %v3907_v32 = vrot.slane %v3893_v46, %v6221_v30  ;;  %v3908_v62 = vcombine.high %v3900_v7, %v3900_v7  ;;  %v3935_v47 = vadd.f32 %v3900_v7, %v6705_v8 }
0x1712   :  { %v3926_v0 = vcombine.high %v3924_v16, %v3924_v16  ;;  %v3940_v60 = vadd.f32 %v3925_v48, %v6689_v43  ;;  %v3941_v39 = vadd.f32 %v3924_v16, %v6685_v24 }
0x1713   :  { %v3909_v42 = vcombine.high %v3907_v32, %v3907_v32  ;;  %v3936_v9 = vadd.f32 %v3908_v62, %v6713_v41  ;;  %v3937_v37 = vadd.f32 %v3907_v32, %v6711_v34 }
0x1714   :  { %v3942_v36 = vadd.f32 %v3926_v0, %v6691_v44  ;;  %v3968_v45 = vcombine.low %v3939_v35, %v3940_v60 }
0x1715   :  { %v3938_v10 = vadd.f32 %v3909_v42, %v6715_v3  ;;  %v3951_v4 = vcombine.low %v3935_v47, %v3936_v9 }
0x1716   :  { %v3969_v13 = vcombine.low %v3941_v39, %v3942_v36  ;;  %v3976_v15 = vrot.slane %v3968_v45, %v6221_v30 }
0x1717   :  { %v3952_v38 = vcombine.low %v3937_v37, %v3938_v10  ;;  %v3959_v8 = vrot.slane %v3951_v4, %v6221_v30 }
0x1718   :  { %v3983_v43 = vrot.slane %v3969_v13, %v6221_v30  ;;  %v5229_v13 = vld [vmem:[%s7197_s2 + $0x48] sm:$0xff] }
0x1719   :  { %v3966_v41 = vrot.slane %v3952_v38, %v6221_v30  ;;  %v5231_v38 = vld [vmem:[%s7197_s2 + $0x58] sm:$0xff] }
0x171a   :  { %v3984_v26 = vcombine.low %v3976_v15, %v3983_v43  ;;  %v5823_v15 = vpack.c.bf16 %v5231_v38, %v5229_v13  ;;  %v5233_v43 = vld [vmem:[%s7197_s2 + $0x68] sm:$0xff] }
0x171b   :  { %v3967_v24 = vcombine.low %v3959_v8, %v3966_v41  ;;  %v5235_v8 = vld [vmem:[%s7197_s2 + $0x78] sm:$0xff] }
0x171c   :  { %v3990_v44 = vsel %vm156_vm0, %v3984_v26, 0.0  ;;  %5824 = vmatprep.subr.bf16.mxu1 %v5823_v15  ;;  %v5827_v41 = vpack.c.bf16 %v5235_v8, %v5233_v43  ;;  %v5236_v26 = vld [vmem:[%s7198_s3 + $0x40] sm:$0xff] }
0x171d   :  { %3991 = vadd.xlane.f32.xlu0 %v3990_v44  ;;  %v3987_v34 = vsel %vm156_vm0, %v3967_v24, 0.0  ;;  %5826 = vmatpush3.bf16.msra.mxu1 %v5823_v15  ;;  %v5237_v24 = vld [vmem:[%s7198_s3 + $0x48] sm:$0xff]  ;;  %v5238_v44 = vld [vmem:[%s7198_s3 + $0x50] sm:$0xff] }
0x171e   :  { %3988 = vadd.xlane.f32.xlu1 %v3987_v34  ;;  %5828 = vmatprep.subr.bf16.mxu1 %v5827_v41  ;;  %v7004_v34 = vrot.slane %v6752_v61, %v1891_v40 }
0x1721   :  { %5830 = vmatpush3.bf16.msra.mxu1 %v5827_v41 }
0x17aa   :  { %v3992_v3 = vpop.xlane.xlu0 %3991 }
0x17ab   :  { %v3994_v12 = vmul.f32 0.03125, %v3992_v3  ;;  %v3989_v21 = vpop.xlane.xlu1 %3988  ;;  %v5831_v3 = vpack.c.bf16 %v5237_v24, %v5236_v26 }
0x17ac   :  { %v3993_v22 = vmul.f32 0.03125, %v3989_v21 }
0x17ad   :  { %v4031_v20 = vrot.slane %v3994_v12, %v6427_v17  ;;  %v4038_v1 = vrot.slane %v3994_v12, %v6430_v33  ;;  %v4045_v28 = vrot.slane %v3994_v12, %v6433_v5  ;;  %v4052_v29 = vrot.slane %v3994_v12, %v6436_v2  ;;  %v5239_v12 = vld [vmem:[%s7198_s3 + $0x58] sm:$0xff]  ;;  %5832 = vmatprep.subr.bf16.mxu0 %v5831_v3 }
0x17ae   :  { %v4003_v53 = vrot.slane %v3993_v22, %v6427_v17  ;;  %v4010_v31 = vrot.slane %v3993_v22, %v6430_v33  ;;  %v4017_v63 = vrot.slane %v3993_v22, %v6433_v5  ;;  %v4024_v54 = vrot.slane %v3993_v22, %v6436_v2  ;;  %v5240_v22 = vld [vmem:[%s7198_s3 + $0x60] sm:$0xff]  ;;  %5834 = vmatpush3.bf16.msra.mxu0 %v5831_v3 }
0x17af   :  { %v6917_v27 = vsub.f32 %v3939_v35, %v4031_v20  ;;  %v6919_v18 = vsub.f32 %v3940_v60, %v4038_v1  ;;  %v6921_v51 = vsub.f32 %v3941_v39, %v4045_v28  ;;  %v6923_v55 = vsub.f32 %v3942_v36, %v4052_v29  ;;  %v5241_v20 = vld [vmem:[%s7198_s3 + $0x68] sm:$0xff] }
0x17b0   :  { %v6925_v57 = vsub.f32 %v3935_v47, %v4003_v53  ;;  %v6927_v56 = vsub.f32 %v3936_v9, %v4010_v31  ;;  %v6929_v58 = vsub.f32 %v3937_v37, %v4017_v63  ;;  %v6931_v14 = vsub.f32 %v3938_v10, %v4024_v54 }
0x17b1   :  { %v4073_v23 = vmul.f32 %v6917_v27, %v6917_v27  ;;  %v4074_v52 = vmul.f32 %v6919_v18, %v6919_v18  ;;  %v4075_v59 = vmul.f32 %v6921_v51, %v6921_v51  ;;  %v4076_v49 = vmul.f32 %v6923_v55, %v6923_v55 }
0x17b2   :  { %v4069_v6 = vmul.f32 %v6925_v57, %v6925_v57  ;;  %v4070_v50 = vmul.f32 %v6927_v56, %v6927_v56  ;;  %v4071_v25 = vmul.f32 %v6929_v58, %v6929_v58  ;;  %v4072_v46 = vmul.f32 %v6931_v14, %v6931_v14 }
0x17b3   :  { %v4102_v7 = vcombine.low %v4073_v23, %v4074_v52  ;;  %v4103_v16 = vcombine.low %v4075_v59, %v4076_v49  ;;  %v4210_v36 = vrot.slane %v6752_v61, %v1837_v11  ;;  %v5835_v21 = vpack.c.bf16 %v5239_v12, %v5238_v44 }
0x17b4   :  { %v4085_v48 = vcombine.low %v4069_v6, %v4070_v50  ;;  %v4086_v32 = vcombine.low %v4071_v25, %v4072_v46  ;;  %v5839_v19 = vpack.c.bf16 %v5241_v20, %v5240_v22 }
0x17b5   :  { %v4110_v62 = vrot.slane %v4102_v7, %v6221_v30  ;;  %v4117_v0 = vrot.slane %v4103_v16, %v6221_v30  ;;  %v6959_v45 = vrot.slane %v4210_v36, %v6221_v30  ;;  %v4212_v10 = vcombine.high %v4210_v36, %v4210_v36  ;;  %5836 = vmatprep.subr.bf16.mxu0 %v5835_v21 }
0x17b6   :  { %v4093_v35 = vrot.slane %v4085_v48, %v6221_v30  ;;  %v4100_v60 = vrot.slane %v4086_v32, %v6221_v30  ;;  %5838 = vmatpush3.bf16.msra.mxu0 %v5835_v21 }
0x17b7   :  { %v4118_v42 = vcombine.low %v4110_v62, %v4117_v0  ;;  %v6963_v37 = vcombine.high %v6959_v45, %v6959_v45  ;;  %v6968_v4 = vrot.slane %v4212_v10, %v6221_v30  ;;  %5840 = vmatprep.subr.bf16.mxu0 %v5839_v19 }
0x17b8   :  { %v4101_v47 = vcombine.low %v4093_v35, %v4100_v60 }
0x17b9   :  { %v4124_v9 = vsel %vm156_vm0, %v4118_v42, 0.0  ;;  %v6976_v11 = vcombine.high %v6968_v4, %v6968_v4 }
0x17ba   :  { %4125 = vadd.xlane.f32.xlu1 %v4124_v9  ;;  %v4121_v39 = vsel %vm156_vm0, %v4101_v47, 0.0  ;;  %5842 = vmatpush3.bf16.msra.mxu0 %v5839_v19 }
0x17bb   :  { %4122 = vadd.xlane.f32.xlu0 %v4121_v39 }
0x17cb   :  { %4243 = vrot.lane.b32.xlu1 %v6963_v37, %s6083_s14 }
0x17cf   :  { %4245 = vrot.lane.b32.xlu1 %v6968_v4, %s6083_s14 }
0x17d1   :  { %4241 = vrot.lane.b32.xlu0 %v6959_v45, %s6083_s14 }
0x17d3   :  { %4389 = vrot.lane.b32.xlu1 %v7004_v34, %s6084_s15 }
0x17d5   :  { %4247 = vrot.lane.b32.xlu0 %v6976_v11, %s6083_s14 }
0x1847   :  { %v4126_v40 = vpop.xlane.xlu1 %4125 }
0x1848   :  { %v4128_v61 = vmul.f32 0.03125, %v4126_v40  ;;  %v4123_v1 = vpop.xlane.xlu0 %4122  ;;  %v5242_v40 = vld [vmem:[%s7198_s3 + $0x70] sm:$0xff] }
0x1849   :  { %v4127_v28 = vmul.f32 0.03125, %v4123_v1 }
0x184a   :  { %v4130_v29 = vadd.f32 1e-05, %v4128_v61  ;;  %v5243_v61 = vld [vmem:[%s7198_s3 + $0x78] sm:$0xff] }
0x184b   :  { %v4129_v53 = vadd.f32 1e-05, %v4127_v28  ;;  %v4244_v63 = vpop.permute.xlu1 %4243  ;;  %v5843_v1 = vpack.c.bf16 %v5243_v61, %v5242_v40 }
0x184c   :  { %6038 = vrsqrt.f32 %v4130_v29  ;;  %v4242_v31 = vpop.permute.xlu0 %4241 }
0x184d   :  { %6040 = vrsqrt.f32 %v4129_v53  ;;  %5844 = vmatprep.subr.bf16.mxu0 %v5843_v1 }
0x184e   :  { %5846 = vmatpush3.bf16.msra.mxu0 %v5843_v1 }
0x184f   :  { %v4246_v9 = vpop.permute.xlu1 %4245 }
0x1850   :  { %v4248_v42 = vpop.permute.xlu0 %4247 }
0x1856   :  { %v6039_v54 = vpop.eup %6038 }
0x1857   :  { %v6041_v23 = vpop.eup %6040  ;;  %v4169_v52 = vrot.slane %v6039_v54, %v6427_v17  ;;  %v4176_v59 = vrot.slane %v6039_v54, %v6430_v33  ;;  %v4190_v49 = vrot.slane %v6039_v54, %v6436_v2  ;;  %v4183_v6 = vrot.slane %v6039_v54, %v6433_v5 }
0x1858   :  { %v4141_v50 = vrot.slane %v6041_v23, %v6427_v17  ;;  %v4148_v25 = vrot.slane %v6041_v23, %v6430_v33  ;;  %v4162_v46 = vrot.slane %v6041_v23, %v6436_v2  ;;  %v4155_v7 = vrot.slane %v6041_v23, %v6433_v5  ;;  %v4390_v23 = vpop.permute.xlu1 %4389 }
0x1859   :  { %v4203_v16 = vmul.f32 %v4169_v52, %v6917_v27  ;;  %v4204_v48 = vmul.f32 %v4176_v59, %v6919_v18  ;;  %v4206_v32 = vmul.f32 %v4190_v49, %v6923_v55  ;;  %v4205_v62 = vmul.f32 %v4183_v6, %v6921_v51 }
0x185a   :  { %v4199_v0 = vmul.f32 %v4141_v50, %v6925_v57  ;;  %v4200_v35 = vmul.f32 %v4148_v25, %v6927_v56  ;;  %v4202_v60 = vmul.f32 %v4162_v46, %v6931_v14  ;;  %v4201_v47 = vmul.f32 %v4155_v7, %v6929_v58 }
0x185b   :  { %v4237_v39 = vmul.f32 %v6959_v45, %v4203_v16  ;;  %v4238_v27 = vmul.f32 %v6963_v37, %v4204_v48  ;;  %v4240_v18 = vmul.f32 %v6976_v11, %v4206_v32  ;;  %v4239_v55 = vmul.f32 %v6968_v4, %v4205_v62 }
0x185c   :  { %v4233_v51 = vmul.f32 %v6959_v45, %v4199_v0  ;;  %v4234_v57 = vmul.f32 %v6963_v37, %v4200_v35  ;;  %v4236_v56 = vmul.f32 %v6976_v11, %v4202_v60  ;;  %v4235_v14 = vmul.f32 %v6968_v4, %v4201_v47 }
0x185d   :  { %v4257_v36 = vadd.f32 %v4242_v31, %v4237_v39  ;;  %v4258_v10 = vadd.f32 %v4244_v63, %v4238_v27  ;;  %v4260_v58 = vadd.f32 %v4248_v42, %v4240_v18  ;;  %v4259_v13 = vadd.f32 %v4246_v9, %v4239_v55 }
0x185e   :  { %v4253_v38 = vadd.f32 %v4242_v31, %v4233_v51  ;;  %v4254_v15 = vadd.f32 %v4244_v63, %v4234_v57  ;;  %v4256_v43 = vadd.f32 %v4248_v42, %v4236_v56  ;;  %v4255_v8 = vadd.f32 %v4246_v9, %v4235_v14 }
0x185f   :  { %v4290_v41 = vcombine.low %v4257_v36, %v4258_v10  ;;  %v4291_v26 = vcombine.low %v4259_v13, %v4260_v58 }
0x1860   :  { %v4273_v24 = vcombine.low %v4253_v38, %v4254_v15  ;;  %v4274_v44 = vcombine.low %v4255_v8, %v4256_v43 }
0x1861   :  { %v4298_v3 = vrot.slane %v4290_v41, %v6221_v30  ;;  %v4305_v12 = vrot.slane %v4291_v26, %v6221_v30 }
0x1862   :  { %v4281_v21 = vrot.slane %v4273_v24, %v6221_v30  ;;  %v4288_v22 = vrot.slane %v4274_v44, %v6221_v30 }
0x1863   :  { %v4306_v19 = vcombine.low %v4298_v3, %v4305_v12 }
0x1864   :  { %v4289_v20 = vcombine.low %v4281_v21, %v4288_v22 }
0x1866   :  { %5665 = vmatprep.mubr.msk.f32.mxu1 %vm156_vm0, %v4289_v20 }
0x1867   :  { %5666 = vmatmul.mubr.msk.f32.vlgmr.msra.gmra.mrb[26].mxu1 %vm156_vm0, %v4306_v19 }
0x193a   :  { %v5667_v28 = vpop.f32.mrb[26].mxu1 }
0x193b   :  { %v4383_v29 = vadd.f32 %v5667_v28, %v7004_v34  ;;  %v4377_v53 = vpop.f32.mrb[27].mxu1 }
0x193c   :  { %v4378_v31 = vadd.f32 %v4377_v53, %v7004_v34 }
0x193d   :  { %v4387_v54 = vmax.f32 %v4383_v29, 0.0 }
0x193e   :  { %v4386_v63 = vmax.f32 %v4378_v31, 0.0 }
0x1940   :  { %5684 = vmatprep.mubr.msk.f32.mxu0 %vm2020_vm6, %v4386_v63 }
0x1941   :  { %5685 = vmatmul.mubr.msk.f32.vlgmr.msra.gmra.mrb[22].mxu0 %vm2020_vm6, %v4387_v54 }
0x1a14   :  { %v5686_v52 = vpop.f32.mrb[22].mxu0 }
0x1a15   :  { %v4470_v59 = vadd.f32 %v5686_v52, %v4390_v23  ;;  %v4464_v49 = vpop.f32.mrb[23].mxu0 }
0x1a16   :  { %v4465_v6 = vadd.f32 %v4464_v49, %v4390_v23 }
0x1a17   :  { %v4492_v50 = vcombine.high %v4470_v59, %v4470_v59  ;;  %v4499_v25 = vrot.slane %v4470_v59, %v6221_v30 }
0x1a18   :  { %v4475_v46 = vcombine.high %v4465_v6, %v4465_v6  ;;  %v4482_v7 = vrot.slane %v4465_v6, %v6221_v30 }
0x1a19   :  { %v4506_v16 = vrot.slane %v4492_v50, %v6221_v30  ;;  %v4507_v34 = vcombine.high %v4499_v25, %v4499_v25  ;;  %v4521_v0 = vadd.f32 %v4499_v25, %v4257_v36 }
0x1a1a   :  { %v4489_v48 = vrot.slane %v4475_v46, %v6221_v30  ;;  %v4490_v32 = vcombine.high %v4482_v7, %v4482_v7  ;;  %v4517_v42 = vadd.f32 %v4482_v7, %v4253_v38 }
0x1a1b   :  { %v4508_v62 = vcombine.high %v4506_v16, %v4506_v16  ;;  %v4522_v35 = vadd.f32 %v4507_v34, %v4258_v10  ;;  %v4523_v9 = vadd.f32 %v4506_v16, %v4259_v13 }
0x1a1c   :  { %v4491_v60 = vcombine.high %v4489_v48, %v4489_v48  ;;  %v4518_v47 = vadd.f32 %v4490_v32, %v4254_v15  ;;  %v4519_v18 = vadd.f32 %v4489_v48, %v4255_v8 }
0x1a1d   :  { %v4524_v39 = vadd.f32 %v4508_v62, %v4260_v58  ;;  %v4550_v27 = vcombine.low %v4521_v0, %v4522_v35 }
0x1a1e   :  { %v4520_v55 = vadd.f32 %v4491_v60, %v4256_v43  ;;  %v4533_v51 = vcombine.low %v4517_v42, %v4518_v47 }
0x1a1f   :  { %v4551_v57 = vcombine.low %v4523_v9, %v4524_v39  ;;  %v4558_v14 = vrot.slane %v4550_v27, %v6221_v30 }
0x1a20   :  { %v4534_v56 = vcombine.low %v4519_v18, %v4520_v55  ;;  %v4541_v26 = vrot.slane %v4533_v51, %v6221_v30 }
0x1a21   :  { %v4565_v41 = vrot.slane %v4551_v57, %v6221_v30 }
0x1a22   :  { %v4548_v36 = vrot.slane %v4534_v56, %v6221_v30 }
0x1a23   :  { %v4566_v10 = vcombine.low %v4558_v14, %v4565_v41 }
0x1a24   :  { %v4549_v24 = vcombine.low %v4541_v26, %v4548_v36 }
0x1a25   :  { %v4572_v38 = vsel %vm156_vm0, %v4566_v10, 0.0 }
0x1a26   :  { %4573 = vadd.xlane.f32.xlu1 %v4572_v38  ;;  %v4569_v58 = vsel %vm156_vm0, %v4549_v24, 0.0 }
0x1a27   :  { %4570 = vadd.xlane.f32.xlu0 %v4569_v58 }
0x1a37   :  { %4789 = vrot.lane.b32.xlu1 %v6959_v45, %s6084_s15 }
0x1a3b   :  { %4793 = vrot.lane.b32.xlu1 %v6968_v4, %s6084_s15 }
0x1a3d   :  { %4791 = vrot.lane.b32.xlu0 %v6963_v37, %s6084_s15 }
0x1a3f   :  { %4795 = vrot.lane.b32.xlu1 %v6976_v11, %s6084_s15 }
0x1a43   :  { %4811 = vrot.lane.b32.xlu1 %v6963_v37, %s6091_s21 }
0x1a47   :  { %4815 = vrot.lane.b32.xlu1 %v6976_v11, %s6091_s21 }
0x1ab3   :  { %v4574_v13 = vpop.xlane.xlu1 %4573 }
0x1ab4   :  { %v4576_v15 = vmul.f32 0.03125, %v4574_v13  ;;  %v4571_v43 = vpop.xlane.xlu0 %4570 }
0x1ab5   :  { %v4575_v8 = vmul.f32 0.03125, %v4571_v43 }
0x1ab6   :  { %v4613_v44 = vrot.slane %v4576_v15, %v6427_v17  ;;  %v4620_v3 = vrot.slane %v4576_v15, %v6430_v33  ;;  %v4627_v12 = vrot.slane %v4576_v15, %v6433_v5  ;;  %v4634_v21 = vrot.slane %v4576_v15, %v6436_v2 }
0x1ab7   :  { %v4585_v22 = vrot.slane %v4575_v8, %v6427_v17  ;;  %v4592_v20 = vrot.slane %v4575_v8, %v6430_v33  ;;  %v4599_v37 = vrot.slane %v4575_v8, %v6433_v5  ;;  %v4606_v11 = vrot.slane %v4575_v8, %v6436_v2 }
0x1ab8   :  { %v4647_v19 = vsub.f32 %v4521_v0, %v4613_v44  ;;  %v4648_v40 = vsub.f32 %v4522_v35, %v4620_v3  ;;  %v4649_v61 = vsub.f32 %v4523_v9, %v4627_v12  ;;  %v4650_v1 = vsub.f32 %v4524_v39, %v4634_v21  ;;  %v4790_v9 = vpop.permute.xlu1 %4789 }
0x1ab9   :  { %v4643_v28 = vsub.f32 %v4517_v42, %v4585_v22  ;;  %v7087_v29 = vsub.f32 %v4518_v47, %v4592_v20  ;;  %v4645_v53 = vsub.f32 %v4519_v18, %v4599_v37  ;;  %v7089_v31 = vsub.f32 %v4520_v55, %v4606_v11  ;;  %v4792_v47 = vpop.permute.xlu0 %4791 }
0x1aba   :  { %v4655_v63 = vmul.f32 %v4647_v19, %v4647_v19  ;;  %v4656_v54 = vmul.f32 %v4648_v40, %v4648_v40  ;;  %v4657_v23 = vmul.f32 %v4649_v61, %v4649_v61  ;;  %v4658_v52 = vmul.f32 %v4650_v1, %v4650_v1 }
0x1abb   :  { %v4651_v59 = vmul.f32 %v4643_v28, %v4643_v28  ;;  %v4652_v49 = vmul.f32 %v7087_v29, %v7087_v29  ;;  %v4653_v6 = vmul.f32 %v4645_v53, %v4645_v53  ;;  %v4654_v50 = vmul.f32 %v7089_v31, %v7089_v31 }
0x1abc   :  { %v4684_v25 = vcombine.low %v4655_v63, %v4656_v54  ;;  %v4685_v46 = vcombine.low %v4657_v23, %v4658_v52  ;;  %v4794_v18 = vpop.permute.xlu1 %4793 }
0x1abd   :  { %v4667_v7 = vcombine.low %v4651_v59, %v4652_v49  ;;  %v4668_v16 = vcombine.low %v4653_v6, %v4654_v50 }
0x1abe   :  { %v4692_v34 = vrot.slane %v4684_v25, %v6221_v30  ;;  %v4699_v48 = vrot.slane %v4685_v46, %v6221_v30 }
0x1abf   :  { %v4675_v32 = vrot.slane %v4667_v7, %v6221_v30  ;;  %v4682_v62 = vrot.slane %v4668_v16, %v6221_v30 }
0x1ac0   :  { %v4700_v0 = vcombine.low %v4692_v34, %v4699_v48  ;;  %v4796_v14 = vpop.permute.xlu1 %4795 }
0x1ac1   :  { %v4683_v60 = vcombine.low %v4675_v32, %v4682_v62 }
0x1ac2   :  { %v4706_v35 = vsel %vm156_vm0, %v4700_v0, 0.0 }
0x1ac3   :  { %4707 = vadd.xlane.f32.xlu0 %v4706_v35  ;;  %v4703_v42 = vsel %vm156_vm0, %v4683_v60, 0.0 }
0x1ac4   :  { %v4812_v26 = vpop.permute.xlu1 %4811 }
0x1ac7   :  { %4704 = vadd.xlane.f32.xlu0 %v4703_v42 }
0x1ac8   :  { %v4816_v22 = vpop.permute.xlu1 %4815 }
0x1add   :  { %4809 = vrot.lane.b32.xlu0 %v6959_v45, %s6091_s21 }
0x1ae1   :  { %4813 = vrot.lane.b32.xlu0 %v6968_v4, %s6091_s21 }
0x1b50   :  { %v4708_v39 = vpop.xlane.xlu0 %4707 }
0x1b51   :  { %v4710_v27 = vmul.f32 0.03125, %v4708_v39 }
0x1b53   :  { %v4712_v55 = vadd.f32 1e-05, %v4710_v27 }
0x1b54   :  { %v4705_v51 = vpop.xlane.xlu0 %4704 }
0x1b55   :  { %6042 = vrsqrt.f32 %v4712_v55  ;;  %v4709_v57 = vmul.f32 0.03125, %v4705_v51 }
0x1b57   :  { %v4711_v56 = vadd.f32 1e-05, %v4709_v57 }
0x1b58   :  { %v4810_v41 = vpop.permute.xlu0 %4809 }
0x1b59   :  { %6044 = vrsqrt.f32 %v4711_v56 }
0x1b5c   :  { %v4814_v8 = vpop.permute.xlu0 %4813 }
0x1b5f   :  { %v6043_v36 = vpop.eup %6042 }
0x1b60   :  { %v4751_v45 = vrot.slane %v6043_v36, %v6427_v17  ;;  %v4765_v10 = vrot.slane %v6043_v36, %v6433_v5  ;;  %v4772_v4 = vrot.slane %v6043_v36, %v6436_v2  ;;  %v4758_v24 = vrot.slane %v6043_v36, %v6430_v33 }
0x1b62   :  { %v4785_v38 = vmul.f32 %v4751_v45, %v4647_v19  ;;  %v4787_v58 = vmul.f32 %v4765_v10, %v4649_v61  ;;  %v4788_v13 = vmul.f32 %v4772_v4, %v4650_v1  ;;  %v4786_v15 = vmul.f32 %v4758_v24, %v4648_v40 }
0x1b63   :  { %v6045_v43 = vpop.eup %6044 }
0x1b64   :  { %v4723_v44 = vrot.slane %v6045_v43, %v6427_v17  ;;  %v4805_v3 = vmul.f32 %v4790_v9, %v4785_v38  ;;  %v4737_v12 = vrot.slane %v6045_v43, %v6433_v5  ;;  %v4807_v21 = vmul.f32 %v4794_v18, %v4787_v58 }
0x1b65   :  { %v4744_v20 = vrot.slane %v6045_v43, %v6436_v2  ;;  %v4808_v37 = vmul.f32 %v4796_v14, %v4788_v13  ;;  %v4730_v11 = vrot.slane %v6045_v43, %v6430_v33  ;;  %v4806_v63 = vmul.f32 %v4792_v47, %v4786_v15 }
0x1b66   :  { %v4781_v54 = vmul.f32 %v4723_v44, %v4643_v28  ;;  %v4783_v19 = vmul.f32 %v4737_v12, %v4645_v53  ;;  %v4825_v61 = vadd.f32 %v4810_v41, %v4805_v3  ;;  %v4827_v1 = vadd.f32 %v4814_v8, %v4807_v21 }
0x1b67   :  { %v4784_v40 = vmul.f32 %v4744_v20, %v7089_v31  ;;  %v4782_v23 = vmul.f32 %v4730_v11, %v7087_v29  ;;  %v4826_v52 = vadd.f32 %v4812_v26, %v4806_v63  ;;  %v4828_v59 = vadd.f32 %v4816_v22, %v4808_v37 }
0x1b68   :  { %v4801_v49 = vmul.f32 %v4790_v9, %v4781_v54  ;;  %v4803_v6 = vmul.f32 %v4794_v18, %v4783_v19 }
0x1b69   :  { %v4804_v50 = vmul.f32 %v4796_v14, %v4784_v40  ;;  %v4802_v25 = vmul.f32 %v4792_v47, %v4782_v23  ;;  %v4856_v46 = vcombine.low %v4825_v61, %v4826_v52  ;;  %v4857_v7 = vcombine.low %v4827_v1, %v4828_v59 }
0x1b6a   :  { %v4821_v16 = vadd.f32 %v4810_v41, %v4801_v49  ;;  %v4823_v34 = vadd.f32 %v4814_v8, %v4803_v6 }
0x1b6b   :  { %v4822_v48 = vadd.f32 %v4812_v26, %v4802_v25  ;;  %v4824_v32 = vadd.f32 %v4816_v22, %v4804_v50  ;;  %v4864_v28 = vrot.slane %v4856_v46, %v6221_v30  ;;  %v4871_v53 = vrot.slane %v4857_v7, %v6221_v30 }
0x1b6d   :  { %v4839_v62 = vcombine.low %v4821_v16, %v4822_v48  ;;  %v4840_v31 = vcombine.low %v4823_v34, %v4824_v32  ;;  %v4872_v0 = vcombine.low %v4864_v28, %v4871_v53 }
0x1b6f   :  { %v4878_v29 = vsel %vm156_vm0, %v4872_v0, 0.0  ;;  %v4847_v35 = vrot.slane %v4839_v62, %v6221_v30  ;;  %v4854_v60 = vrot.slane %v4840_v31, %v6221_v30 }
0x1b70   :  { %4879 = vadd.xlane.f32.xlu1 %v4878_v29 }
0x1b71   :  { %v4855_v42 = vcombine.low %v4847_v35, %v4854_v60 }
0x1b73   :  { %v4875_v47 = vsel %vm156_vm0, %v4855_v42, 0.0 }
0x1b74   :  { %4876 = vadd.xlane.f32.xlu0 %v4875_v47 }
0x1bfd   :  { %v4880_v9 = vpop.xlane.xlu1 %4879 }
0x1bfe   :  { %v4882_v39 = vmul.f32 0.03125, %v4880_v9 }
0x1c00   :  { %v4919_v27 = vrot.slane %v4882_v39, %v6427_v17  ;;  %v4926_v18 = vrot.slane %v4882_v39, %v6430_v33  ;;  %v4933_v55 = vrot.slane %v4882_v39, %v6433_v5  ;;  %v4940_v51 = vrot.slane %v4882_v39, %v6436_v2 }
0x1c01   :  { %v4877_v57 = vpop.xlane.xlu0 %4876 }
0x1c02   :  { %v7125_v56 = vsub.f32 %v4825_v61, %v4919_v27  ;;  %v7127_v14 = vsub.f32 %v4826_v52, %v4926_v18  ;;  %v7129_v41 = vsub.f32 %v4827_v1, %v4933_v55  ;;  %v7131_v26 = vsub.f32 %v4828_v59, %v4940_v51 }
0x1c03   :  { %v4881_v36 = vmul.f32 0.03125, %v4877_v57 }
0x1c04   :  { %v4961_v45 = vmul.f32 %v7125_v56, %v7125_v56  ;;  %v4962_v10 = vmul.f32 %v7127_v14, %v7127_v14  ;;  %v4963_v4 = vmul.f32 %v7129_v41, %v7129_v41  ;;  %v4964_v24 = vmul.f32 %v7131_v26, %v7131_v26 }
0x1c05   :  { %v4891_v38 = vrot.slane %v4881_v36, %v6427_v17  ;;  %v4898_v58 = vrot.slane %v4881_v36, %v6430_v33  ;;  %v4905_v13 = vrot.slane %v4881_v36, %v6433_v5  ;;  %v4912_v15 = vrot.slane %v4881_v36, %v6436_v2 }
0x1c06   :  { %v4990_v12 = vcombine.low %v4961_v45, %v4962_v10  ;;  %v4991_v21 = vcombine.low %v4963_v4, %v4964_v24 }
0x1c07   :  { %v4949_v43 = vsub.f32 %v4821_v16, %v4891_v38  ;;  %v4950_v8 = vsub.f32 %v4822_v48, %v4898_v58  ;;  %v4951_v44 = vsub.f32 %v4823_v34, %v4905_v13  ;;  %v4952_v3 = vsub.f32 %v4824_v32, %v4912_v15  ;;  %v5285_v16 = vld [vmem:[%s7200_s5] ss:$0 sm:$0xff]  ;;  %v5286_v48 = vld [vmem:[%s7200_s5 + $0x1] ss:$0 sm:$0xff]  ;;  %s6097_s5 = smov [#allocation2]  }
0x1c08   :  { %v4998_v1 = vrot.slane %v4990_v12, %v6221_v30  ;;  %v5005_v40 = vrot.slane %v4991_v21, %v6221_v30  ;;  %v5100_v32 = vcombine.high %v5285_v16, %v5285_v16  ;;  %v5134_v28 = vcombine.high %v5286_v48, %v5286_v48  ;;  %s5177_s4 = sshll.u32 %s6097_s5, 4  ;;  %s5178_s4 = int_to_ptr.vmem [resolvable:$true] %s5177_s4 }
0x1c09   :  { %v4957_v22 = vmul.f32 %v4949_v43, %v4949_v43  ;;  %v4958_v20 = vmul.f32 %v4950_v8, %v4950_v8  ;;  %v4959_v37 = vmul.f32 %v4951_v44, %v4951_v44  ;;  %v4960_v11 = vmul.f32 %v4952_v3, %v4952_v3  ;;  %s6058_s16 = scalar_lea.vmem %s5178_s4, 256  ;;  %p6063_p1 = scmp.lt.s32.totalorder %s5178_s4, %s5178_s4 }
0x1c0a   :  { %v5006_v59 = vcombine.low %v4998_v1, %v5005_v40  ;;  %v5107_v53 = vrot.slane %v5285_v16, %v6221_v30  ;;  %v5114_v62 = vrot.slane %v5100_v32, %v6221_v30  ;;  %v5141_v0 = vrot.slane %v5286_v48, %v6221_v30  ;;  %p6059_p0 = scmp.ne.s32.totalorder %s5178_s4, %s6058_s16  ;;  %p6064_p2 = scmp.lt.s32.totalorder %s6058_s16, %s6058_s16 }
0x1c0b   :  { %v4973_v63 = vcombine.low %v4957_v22, %v4958_v20  ;;  %v4974_v54 = vcombine.low %v4959_v37, %v4960_v11  ;;  %v5148_v29 = vrot.slane %v5134_v28, %v6221_v30 }
0x1c0c   :  { %v5012_v49 = vsel %vm156_vm0, %v5006_v59, 0.0  ;;  %v5115_v9 = vcombine.high %v5107_v53, %v5107_v53  ;;  %v5116_v39 = vcombine.high %v5114_v62, %v5114_v62  ;;  %v5149_v36 = vcombine.high %v5141_v0, %v5141_v0  ;;  %p6065_p3 = por %p6064_p2, %p6063_p1 }
0x1c0d   :  { %v4981_v19 = vrot.slane %v4973_v63, %v6221_v30  ;;  %v4988_v61 = vrot.slane %v4974_v54, %v6221_v30  ;;  %v5150_v45 = vcombine.high %v5148_v29, %v5148_v29 }
0x1c0e   :  { %p6066_p4 = pnand %p6065_p3, %p6059_p0 }
0x1c0f   :  { %v4989_v23 = vcombine.low %v4981_v19, %v4988_v61 }
0x1c11   :  { %v5009_v52 = vsel %vm156_vm0, %v4989_v23, 0.0 }
0x1c12   :  { %5010 = vadd.xlane.f32.xlu0 %v5009_v52 }
0x1c16   :  { %5013 = vadd.xlane.f32.xlu0 %v5012_v49 }
0x1c9f   :  { %v5011_v6 = vpop.xlane.xlu0 %5010 }
0x1ca0   :  { %v5015_v50 = vmul.f32 0.03125, %v5011_v6 }
0x1ca2   :  { %v5017_v25 = vadd.f32 1e-05, %v5015_v50 }
0x1ca3   :  { %v5014_v46 = vpop.xlane.xlu0 %5013 }
0x1ca4   :  { %6046 = vrsqrt.f32 %v5017_v25  ;;  %v5016_v7 = vmul.f32 0.03125, %v5014_v46 }
0x1ca6   :  { %v5018_v34 = vadd.f32 1e-05, %v5016_v7 }
0x1ca8   :  { %6048 = vrsqrt.f32 %v5018_v34 }
0x1cae   :  { %v6047_v31 = vpop.eup %6046 }
0x1caf   :  { %v5029_v35 = vrot.slane %v6047_v31, %v6427_v17  ;;  %v5036_v60 = vrot.slane %v6047_v31, %v6430_v33  ;;  %v5043_v42 = vrot.slane %v6047_v31, %v6433_v5  ;;  %v5050_v47 = vrot.slane %v6047_v31, %v6436_v2 }
0x1cb1   :  { %v5087_v27 = vmul.f32 %v5029_v35, %v4949_v43  ;;  %v5088_v18 = vmul.f32 %v5036_v60, %v4950_v8  ;;  %v5089_v55 = vmul.f32 %v5043_v42, %v4951_v44  ;;  %v5090_v51 = vmul.f32 %v5050_v47, %v4952_v3 }
0x1cb2   :  { %v6049_v57 = vpop.eup %6048 }
0x1cb3   :  { %v5057_v30 = vrot.slane %v6049_v57, %v6427_v17  ;;  %v5064_v10 = vrot.slane %v6049_v57, %v6430_v33  ;;  %v5071_v4 = vrot.slane %v6049_v57, %v6433_v5  ;;  %v5078_v24 = vrot.slane %v6049_v57, %v6436_v2 }
0x1cb4   :  { %v5121_v38 = vmul.f32 %v5107_v53, %v5087_v27  ;;  %v5122_v58 = vmul.f32 %v5115_v9, %v5088_v18  ;;  %v5123_v13 = vmul.f32 %v5114_v62, %v5089_v55  ;;  %v5124_v15 = vmul.f32 %v5116_v39, %v5090_v51 }
0x1cb5   :  { %v5091_v43 = vmul.f32 %v5057_v30, %v7125_v56  ;;  %v5092_v8 = vmul.f32 %v5064_v10, %v7127_v14  ;;  %v5093_v44 = vmul.f32 %v5071_v4, %v7129_v41  ;;  %v5094_v3 = vmul.f32 %v5078_v24, %v7131_v26 }
0x1cb6   :  { %v5155_v12 = vadd.f32 %v5141_v0, %v5121_v38  ;;  %v5156_v17 = vadd.f32 %v5149_v36, %v5122_v58  ;;  %v5157_v21 = vadd.f32 %v5148_v29, %v5123_v13  ;;  %v5158_v33 = vadd.f32 %v5150_v45, %v5124_v15 }
0x1cb7   :  { %v5125_v5 = vmul.f32 %v5107_v53, %v5091_v43  ;;  %v5126_v2 = vmul.f32 %v5115_v9, %v5092_v8  ;;  %v5127_v22 = vmul.f32 %v5114_v62, %v5093_v44  ;;  %v5128_v20 = vmul.f32 %v5116_v39, %v5094_v3 }
0x1cb8   :  { %5164 = vst.msk [vmem:[#allocation2] sm:$0x3] %vm5163_vm7, %v5155_v12  ;;  %5165 = vst.msk [vmem:[#allocation2 + $0x2] sm:$0x3] %vm5163_vm7, %v5156_v17 }
0x1cb9   :  { %5166 = vst.msk [vmem:[#allocation2 + $0x4] sm:$0x3] %vm5163_vm7, %v5157_v21  ;;  %5167 = vst.msk [vmem:[#allocation2 + $0x6] sm:$0x3] %vm5163_vm7, %v5158_v33  ;;  %v5159_v56 = vadd.f32 %v5141_v0, %v5125_v5  ;;  %v5160_v14 = vadd.f32 %v5149_v36, %v5126_v2  ;;  %v5161_v41 = vadd.f32 %v5148_v29, %v5127_v22 }
0x1cba   :  { %v5162_v26 = vadd.f32 %v5150_v45, %v5128_v20 }
0x1cbb   :  { %5168 = vst.msk [vmem:[#allocation2 + $0x8] sm:$0x3] %vm5163_vm7, %v5159_v56  ;;  %5169 = vst.msk [vmem:[#allocation2 + $0xa] sm:$0x3] %vm5163_vm7, %v5160_v14 }
0x1cbc   :  { %5170 = vst.msk [vmem:[#allocation2 + $0xc] sm:$0x3] %vm5163_vm7, %v5161_v41  ;;  %5171 = vst.msk [vmem:[#allocation2 + $0xe] sm:$0x3] %vm5163_vm7, %v5162_v26 }
0x1cbd   :  { %6069 = shalt.err (!%p6066_p4)
}
0x1cbe   :  { %s6070_s19 = scalar_lea.hbm %s7201_s6, 256 }
0x1cbf   :  { %p6071_p5 = scmp.ne.s32.totalorder %s7201_s6, %s6070_s19  ;;  %p6074_p6 = scmp.lt.u32.totalorder %s6070_s19, %s7201_s6 }
0x1cc1   :  { %p6076_p7 = pnand %p6074_p6, %p6071_p5 }
0x1cc3   :  { %6079 = shalt.err (!%p6076_p7)
}
0x1cc4   :  { %s6098_s25 = smov 2  }
0x1cc5   :  { %5183 = dma.vmem_to_hbm [thread:$0]  %s5178_s4, 256, %s7201_s6, [#allocation3], %s6091_s21, %s6091_s21, %s6098_s25  }
0x1cc6   :  { %6080 = dma.done.wait [#allocation3], 256  }
0x1cc7   :  { %6081 = vsyncadd [#allocation3], 4294967040 }
0x1cc8   :  { %5187 = vsyncpa [#allocation3], 1 }

</bundles_post_ra>
